<compile_context>
chip_gen: v7x
topology: tpu7x:2x2x1
jax: 0.10.0
libtpu: 0.0.40
codegen_flags: <defaults>
</compile_context>

<pallas_src>
import functools
import math

import jax
import jax.numpy as jnp
from jax.experimental import pallas as pl
from jax.experimental.pallas import tpu as pltpu

# ---------------- config ----------------
VOCAB = 100
TYPE_VOCAB = 2
MAX_POS = 32
HIDDEN = 32
NUM_HEADS = 4
HEAD_DIM = HIDDEN // NUM_HEADS
INTERMEDIATE = 64
NUM_LAYERS = 2
NUM_CLASSES = 2
LN_EPS = 1e-12
ATTN_SCALE = 1.0 / math.sqrt(HEAD_DIM)


# ---------------- in-kernel helpers (f32 math) ----------------
def _layernorm(x, g, b):
    mu = jnp.mean(x, axis=-1, keepdims=True)
    var = jnp.mean((x - mu) ** 2, axis=-1, keepdims=True)
    return (x - mu) * jax.lax.rsqrt(var + LN_EPS) * g + b


def _gelu(x):
    # TODO(synk): reference BertModel uses exact erf-GELU; tanh approximation here.
    return 0.5 * x * (1.0 + jnp.tanh(0.7978845608028654 * (x + 0.044715 * x * x * x)))


# ---------------- fused whole-model kernel ----------------
def _bert_kernel(emb_ref, mask_ref,
                 emb_ln_g_ref, emb_ln_b_ref,
                 q_w_ref, q_b_ref, k_w_ref, k_b_ref, v_w_ref, v_b_ref,
                 ao_w_ref, ao_b_ref, attn_ln_g_ref, attn_ln_b_ref,
                 fi_w_ref, fi_b_ref, fo_w_ref, fo_b_ref,
                 ffn_ln_g_ref, ffn_ln_b_ref,
                 pool_w_ref, pool_b_ref, fc_w_ref, fc_b_ref,
                 logits_ref, probs_ref,
                 *, batch, seq):
    f32 = jnp.float32
    bf16 = jnp.bfloat16

    # embedding LayerNorm (no zero-residual add); activations carried in f32
    h = _layernorm(emb_ref[...], emb_ln_g_ref[...], emb_ln_b_ref[...])

    for l in range(NUM_LAYERS):
        h_bf = h.astype(bf16)
        # three projections, each starting at lane offset 0 (fused QKV split in wrapper)
        q = jnp.dot(h_bf, q_w_ref[l], preferred_element_type=f32) + q_b_ref[l]
        k = jnp.dot(h_bf, k_w_ref[l], preferred_element_type=f32) + k_b_ref[l]
        v = jnp.dot(h_bf, v_w_ref[l], preferred_element_type=f32) + v_b_ref[l]
        q = (q * ATTN_SCALE).astype(bf16)   # fold 1/sqrt(Dh) into q once
        k = k.astype(bf16)
        v = v.astype(bf16)

        # ---- scores for every (batch, head) pair, kept in registers ----
        scores = []
        for b in range(batch):
            m_row = mask_ref[b]                               # [1, S] additive mask
            rows = slice(b * seq, (b + 1) * seq)
            for hh in range(NUM_HEADS):
                cols = slice(hh * HEAD_DIM, (hh + 1) * HEAD_DIM)
                s = jax.lax.dot_general(
                    q[rows, cols], k[rows, cols], (((1,), (1,)), ((), ())),
                    preferred_element_type=f32) + m_row
                scores.append(s)

        # ---- ONE batched softmax over all (b, head) tiles ----
        s_all = jnp.concatenate(scores, axis=0)               # [B*NH*S, S]
        s_all = s_all - jnp.max(s_all, axis=-1, keepdims=True)
        p_all = jnp.exp(s_all)
        p_all = p_all * pl.reciprocal(jnp.sum(p_all, axis=-1, keepdims=True),
                                      approx=True)
        p_all = p_all.astype(bf16)

        # ---- context: heads concat along lanes per batch, batches stacked on rows ----
        ctx_rows = []
        idx = 0
        for b in range(batch):
            rows = slice(b * seq, (b + 1) * seq)
            heads = []
            for hh in range(NUM_HEADS):
                cols = slice(hh * HEAD_DIM, (hh + 1) * HEAD_DIM)
                p_bh = p_all[idx * seq:(idx + 1) * seq, :]     # sublane slice (mult. of 8)
                heads.append(jnp.dot(p_bh, v[rows, cols],
                                     preferred_element_type=f32))
                idx += 1
            ctx_rows.append(jnp.concatenate(heads, axis=-1))   # [S, H]
        ctx = jnp.concatenate(ctx_rows, axis=0).astype(bf16)   # [B*S, H], no VMEM round-trip

        attn_out = jnp.dot(ctx, ao_w_ref[l], preferred_element_type=f32) + ao_b_ref[l]
        h = _layernorm(attn_out + h, attn_ln_g_ref[l], attn_ln_b_ref[l])

        ffn = _gelu(jnp.dot(h.astype(bf16), fi_w_ref[l],
                            preferred_element_type=f32) + fi_b_ref[l])
        ffn_out = jnp.dot(ffn.astype(bf16), fo_w_ref[l],
                          preferred_element_type=f32) + fo_b_ref[l]
        h = _layernorm(ffn_out + h, ffn_ln_g_ref[l], ffn_ln_b_ref[l])

    # pooler (first token of each sequence) + fc + softmax, all in registers
    first = jnp.concatenate([h[b * seq:b * seq + 1, :] for b in range(batch)], axis=0)
    pooled = jnp.tanh(jnp.dot(first.astype(bf16), pool_w_ref[...],
                              preferred_element_type=f32) + pool_b_ref[...])
    logits = jnp.dot(pooled.astype(bf16), fc_w_ref[...],
                     preferred_element_type=f32) + fc_b_ref[...]
    m = jnp.max(logits, axis=-1, keepdims=True)
    e = jnp.exp(logits - m)
    probs = e / jnp.sum(e, axis=-1, keepdims=True)             # exact normalization
    logits_ref[...] = logits.astype(logits_ref.dtype)
    probs_ref[...] = probs.astype(probs_ref.dtype)


# ---------------- parameter init (deterministic, synthetic, layer-stacked) ----------------
def init_params(key):
    ks = iter(jax.random.split(key, 64))

    def nrm(shape, scale=0.02):
        return scale * jax.random.normal(next(ks), shape, dtype=jnp.float32)

    L, H, I, C = NUM_LAYERS, HIDDEN, INTERMEDIATE, NUM_CLASSES
    return {
        "word_emb": nrm((VOCAB, H)),
        "pos_emb": nrm((MAX_POS, H)),
        "type_emb": nrm((TYPE_VOCAB, H)),
        "emb_ln_g": jnp.ones((1, H), jnp.float32),
        "emb_ln_b": jnp.zeros((1, H), jnp.float32),
        # fused QKV (checkpoint layout): [L, H, 3H]; split at trace time in the wrapper
        "qkv_w": nrm((L, H, 3 * H)),
        "qkv_b": jnp.zeros((L, 1, 3 * H), jnp.float32),
        "ao_w": nrm((L, H, H)),
        "ao_b": jnp.zeros((L, 1, H), jnp.float32),
        "attn_ln_g": jnp.ones((L, 1, H), jnp.float32),
        "attn_ln_b": jnp.zeros((L, 1, H), jnp.float32),
        "fi_w": nrm((L, H, I)),
        "fi_b": jnp.zeros((L, 1, I), jnp.float32),
        "fo_w": nrm((L, I, H)),
        "fo_b": jnp.zeros((L, 1, H), jnp.float32),
        "ffn_ln_g": jnp.ones((L, 1, H), jnp.float32),
        "ffn_ln_b": jnp.zeros((L, 1, H), jnp.float32),
        "pool_w": nrm((H, H)),
        "pool_b": jnp.zeros((1, H), jnp.float32),
        "fc_w": nrm((H, C)),
        "fc_b": jnp.zeros((1, C), jnp.float32),
    }


# ---------------- forward pass ----------------
def bert_forward(params, input_ids, token_type_ids, attention_mask):
    B, S = input_ids.shape
    H = HIDDEN
    bf16 = jnp.bfloat16

    # Embedding lookups are gathers -> plain JAX glue; their sum feeds the fused kernel.
    pos_ids = jnp.arange(S, dtype=jnp.int32)[None, :]
    emb = (jnp.take(params["word_emb"], input_ids, axis=0)
           + jnp.take(params["pos_emb"], pos_ids, axis=0)
           + jnp.take(params["type_emb"], token_type_ids, axis=0)).reshape(B * S, H)

    # extended attention mask: (1 - mask) * -10000, broadcast over heads & query rows
    add_mask = ((1.0 - attention_mask.astype(jnp.float32)) * -10000.0).reshape(B, 1, S)

    # trace-time split of the fused QKV weight (free) so q/k/v start at lane offset 0
    qkv_w, qkv_b = params["qkv_w"], params["qkv_b"]
    q_w = qkv_w[:, :, 0 * H:1 * H].astype(bf16)
    k_w = qkv_w[:, :, 1 * H:2 * H].astype(bf16)
    v_w = qkv_w[:, :, 2 * H:3 * H].astype(bf16)
    q_b = qkv_b[:, :, 0 * H:1 * H]
    k_b = qkv_b[:, :, 1 * H:2 * H]
    v_b = qkv_b[:, :, 2 * H:3 * H]

    vmem = pl.BlockSpec(memory_space=pltpu.MemorySpace.VMEM)
    num_inputs = 24

    logits, probs = pl.pallas_call(
        functools.partial(_bert_kernel, batch=B, seq=S),
        out_shape=(jax.ShapeDtypeStruct((B, NUM_CLASSES), jnp.float32),
                   jax.ShapeDtypeStruct((B, NUM_CLASSES), jnp.float32)),
        in_specs=[vmem] * num_inputs,
        out_specs=(vmem, vmem),
        compiler_params=pltpu.CompilerParams(vmem_limit_bytes=16 * 1024 * 1024),
    )(emb, add_mask,
      params["emb_ln_g"], params["emb_ln_b"],
      q_w, q_b, k_w, k_b, v_w, v_b,
      params["ao_w"].astype(bf16), params["ao_b"],
      params["attn_ln_g"], params["attn_ln_b"],
      params["fi_w"].astype(bf16), params["fi_b"],
      params["fo_w"].astype(bf16), params["fo_b"],
      params["ffn_ln_g"], params["ffn_ln_b"],
      params["pool_w"].astype(bf16), params["pool_b"],
      params["fc_w"].astype(bf16), params["fc_b"])
    return logits, probs


# ---------------- main ----------------
if __name__ == "__main__":
    key = jax.random.PRNGKey(0)
    k_params, k_ids, k_types = jax.random.split(key, 3)

    B, S = 2, 8
    params = init_params(k_params)
    input_ids = jax.random.randint(k_ids, (B, S), 0, VOCAB, dtype=jnp.int32)
    token_type_ids = jax.random.randint(k_types, (B, S), 0, TYPE_VOCAB, dtype=jnp.int32)
    # second sequence has 2 padding tokens masked out
    attention_mask = jnp.array([[1] * S, [1] * (S - 2) + [0, 0]], dtype=jnp.int32)

    fwd = jax.jit(bert_forward)
    logits, probs = fwd(params, input_ids, token_type_ids, attention_mask)
    jax.block_until_ready((logits, probs))

    assert logits.shape == (B, NUM_CLASSES) and probs.shape == (B, NUM_CLASSES)
    assert bool(jnp.all(jnp.isfinite(logits))) and bool(jnp.all(jnp.isfinite(probs)))
    assert bool(jnp.allclose(jnp.sum(probs, axis=-1), 1.0, atol=1e-5))
    print("KERNEL_OK")
</pallas_src>

<mosaic_0001>
module attributes {stable_mosaic.version = 11 : i64} {
  func.func @_bert_kernel(%arg0: memref<16x32xf32, #tpu.memory_space<vmem>>, %arg1: memref<2x1x8xf32, #tpu.memory_space<vmem>>, %arg2: memref<1x32xf32, #tpu.memory_space<vmem>>, %arg3: memref<1x32xf32, #tpu.memory_space<vmem>>, %arg4: memref<2x32x32xbf16, #tpu.memory_space<vmem>>, %arg5: memref<2x1x32xf32, #tpu.memory_space<vmem>>, %arg6: memref<2x32x32xbf16, #tpu.memory_space<vmem>>, %arg7: memref<2x1x32xf32, #tpu.memory_space<vmem>>, %arg8: memref<2x32x32xbf16, #tpu.memory_space<vmem>>, %arg9: memref<2x1x32xf32, #tpu.memory_space<vmem>>, %arg10: memref<2x32x32xbf16, #tpu.memory_space<vmem>>, %arg11: memref<2x1x32xf32, #tpu.memory_space<vmem>>, %arg12: memref<2x1x32xf32, #tpu.memory_space<vmem>>, %arg13: memref<2x1x32xf32, #tpu.memory_space<vmem>>, %arg14: memref<2x32x64xbf16, #tpu.memory_space<vmem>>, %arg15: memref<2x1x64xf32, #tpu.memory_space<vmem>>, %arg16: memref<2x64x32xbf16, #tpu.memory_space<vmem>>, %arg17: memref<2x1x32xf32, #tpu.memory_space<vmem>>, %arg18: memref<2x1x32xf32, #tpu.memory_space<vmem>>, %arg19: memref<2x1x32xf32, #tpu.memory_space<vmem>>, %arg20: memref<32x32xbf16, #tpu.memory_space<vmem>>, %arg21: memref<1x32xf32, #tpu.memory_space<vmem>>, %arg22: memref<32x2xbf16, #tpu.memory_space<vmem>>, %arg23: memref<1x2xf32, #tpu.memory_space<vmem>>, %arg24: memref<2x2xf32, #tpu.memory_space<vmem>>, %arg25: memref<2x2xf32, #tpu.memory_space<vmem>>) attributes {dimension_semantics = [], scalar_prefetch = 0 : i64, scratch_operands = 0 : i64, tpu.core_type = #tpu.core_type<tc>} {
    %c0 = arith.constant 0 : index
    %c0_0 = arith.constant 0 : index
    %0 = vector.load %arg0[%c0, %c0_0] : memref<16x32xf32, #tpu.memory_space<vmem>>, vector<16x32xf32>
    %c0_1 = arith.constant 0 : index
    %c0_2 = arith.constant 0 : index
    %1 = vector.load %arg2[%c0_1, %c0_2] : memref<1x32xf32, #tpu.memory_space<vmem>>, vector<1x32xf32>
    %c0_3 = arith.constant 0 : index
    %c0_4 = arith.constant 0 : index
    %2 = vector.load %arg3[%c0_3, %c0_4] : memref<1x32xf32, #tpu.memory_space<vmem>>, vector<1x32xf32>
    %cst = arith.constant dense<0.000000e+00> : vector<16xf32>
    %3 = vector.multi_reduction <add>, %0, %cst [1] : vector<16x32xf32> to vector<16xf32>
    %4 = vector.shape_cast %3 : vector<16xf32> to vector<16x1xf32>
    %cst_5 = arith.constant 3.200000e+01 : f32
    %5 = vector.broadcast %cst_5 : f32 to vector<16x1xf32>
    %6 = arith.divf %4, %5 : vector<16x1xf32>
    %7 = vector.broadcast %6 : vector<16x1xf32> to vector<16x32xf32>
    %8 = arith.subf %0, %7 : vector<16x32xf32>
    %9 = arith.mulf %8, %8 : vector<16x32xf32>
    %cst_6 = arith.constant dense<0.000000e+00> : vector<16xf32>
    %10 = vector.multi_reduction <add>, %9, %cst_6 [1] : vector<16x32xf32> to vector<16xf32>
    %11 = vector.shape_cast %10 : vector<16xf32> to vector<16x1xf32>
    %cst_7 = arith.constant 3.200000e+01 : f32
    %12 = vector.broadcast %cst_7 : f32 to vector<16x1xf32>
    %13 = arith.divf %11, %12 : vector<16x1xf32>
    %14 = vector.broadcast %6 : vector<16x1xf32> to vector<16x32xf32>
    %15 = arith.subf %0, %14 : vector<16x32xf32>
    %cst_8 = arith.constant 9.99999996E-13 : f32
    %16 = vector.broadcast %cst_8 : f32 to vector<16x1xf32>
    %17 = arith.addf %13, %16 : vector<16x1xf32>
    %18 = math.rsqrt %17 : vector<16x1xf32>
    %19 = vector.broadcast %18 : vector<16x1xf32> to vector<16x32xf32>
    %20 = arith.mulf %15, %19 : vector<16x32xf32>
    %21 = vector.broadcast %1 : vector<1x32xf32> to vector<16x32xf32>
    %22 = arith.mulf %20, %21 : vector<16x32xf32>
    %23 = vector.broadcast %2 : vector<1x32xf32> to vector<16x32xf32>
    %24 = arith.addf %22, %23 : vector<16x32xf32>
    %25 = arith.truncf %24 : vector<16x32xf32> to vector<16x32xbf16>
    %c0_9 = arith.constant 0 : index
    %c0_10 = arith.constant 0 : index
    %c0_11 = arith.constant 0 : index
    %26 = vector.load %arg4[%c0_9, %c0_10, %c0_11] : memref<2x32x32xbf16, #tpu.memory_space<vmem>>, vector<1x32x32xbf16>
    %27 = vector.shape_cast %26 : vector<1x32x32xbf16> to vector<32x32xbf16>
    %cst_12 = arith.constant dense<0.000000e+00> : vector<16x32xf32>
    %28 = tpu.matmul %25, %27, %cst_12 {dimension_numbers = #tpu.dot_dimension_numbers<[1], [0], [0], [1], [0, 0, 1, 1], [], []>} : vector<16x32xbf16>, vector<32x32xbf16>, vector<16x32xf32> -> vector<16x32xf32>
    %c0_13 = arith.constant 0 : index
    %c0_14 = arith.constant 0 : index
    %c0_15 = arith.constant 0 : index
    %29 = vector.load %arg5[%c0_13, %c0_14, %c0_15] : memref<2x1x32xf32, #tpu.memory_space<vmem>>, vector<1x1x32xf32>
    %30 = vector.shape_cast %29 : vector<1x1x32xf32> to vector<1x32xf32>
    %31 = vector.broadcast %30 : vector<1x32xf32> to vector<16x32xf32>
    %32 = arith.addf %28, %31 : vector<16x32xf32>
    %c0_16 = arith.constant 0 : index
    %c0_17 = arith.constant 0 : index
    %c0_18 = arith.constant 0 : index
    %33 = vector.load %arg6[%c0_16, %c0_17, %c0_18] : memref<2x32x32xbf16, #tpu.memory_space<vmem>>, vector<1x32x32xbf16>
    %34 = vector.shape_cast %33 : vector<1x32x32xbf16> to vector<32x32xbf16>
    %cst_19 = arith.constant dense<0.000000e+00> : vector<16x32xf32>
    %35 = tpu.matmul %25, %34, %cst_19 {dimension_numbers = #tpu.dot_dimension_numbers<[1], [0], [0], [1], [0, 0, 1, 1], [], []>} : vector<16x32xbf16>, vector<32x32xbf16>, vector<16x32xf32> -> vector<16x32xf32>
    %c0_20 = arith.constant 0 : index
    %c0_21 = arith.constant 0 : index
    %c0_22 = arith.constant 0 : index
    %36 = vector.load %arg7[%c0_20, %c0_21, %c0_22] : memref<2x1x32xf32, #tpu.memory_space<vmem>>, vector<1x1x32xf32>
    %37 = vector.shape_cast %36 : vector<1x1x32xf32> to vector<1x32xf32>
    %38 = vector.broadcast %37 : vector<1x32xf32> to vector<16x32xf32>
    %39 = arith.addf %35, %38 : vector<16x32xf32>
    %c0_23 = arith.constant 0 : index
    %c0_24 = arith.constant 0 : index
    %c0_25 = arith.constant 0 : index
    %40 = vector.load %arg8[%c0_23, %c0_24, %c0_25] : memref<2x32x32xbf16, #tpu.memory_space<vmem>>, vector<1x32x32xbf16>
    %41 = vector.shape_cast %40 : vector<1x32x32xbf16> to vector<32x32xbf16>
    %cst_26 = arith.constant dense<0.000000e+00> : vector<16x32xf32>
    %42 = tpu.matmul %25, %41, %cst_26 {dimension_numbers = #tpu.dot_dimension_numbers<[1], [0], [0], [1], [0, 0, 1, 1], [], []>} : vector<16x32xbf16>, vector<32x32xbf16>, vector<16x32xf32> -> vector<16x32xf32>
    %c0_27 = arith.constant 0 : index
    %c0_28 = arith.constant 0 : index
    %c0_29 = arith.constant 0 : index
    %43 = vector.load %arg9[%c0_27, %c0_28, %c0_29] : memref<2x1x32xf32, #tpu.memory_space<vmem>>, vector<1x1x32xf32>
    %44 = vector.shape_cast %43 : vector<1x1x32xf32> to vector<1x32xf32>
    %45 = vector.broadcast %44 : vector<1x32xf32> to vector<16x32xf32>
    %46 = arith.addf %42, %45 : vector<16x32xf32>
    %cst_30 = arith.constant 0.353553385 : f32
    %47 = vector.broadcast %cst_30 : f32 to vector<16x32xf32>
    %48 = arith.mulf %32, %47 : vector<16x32xf32>
    %49 = arith.truncf %48 : vector<16x32xf32> to vector<16x32xbf16>
    %50 = arith.truncf %39 : vector<16x32xf32> to vector<16x32xbf16>
    %51 = arith.truncf %46 : vector<16x32xf32> to vector<16x32xbf16>
    %c0_31 = arith.constant 0 : index
    %c0_32 = arith.constant 0 : index
    %c0_33 = arith.constant 0 : index
    %52 = vector.load %arg1[%c0_31, %c0_32, %c0_33] : memref<2x1x8xf32, #tpu.memory_space<vmem>>, vector<1x1x8xf32>
    %53 = vector.shape_cast %52 : vector<1x1x8xf32> to vector<1x8xf32>
    %54 = vector.extract_strided_slice %49 {offsets = [0, 0], sizes = [8, 8], strides = [1, 1]} : vector<16x32xbf16> to vector<8x8xbf16>
    %55 = vector.extract_strided_slice %50 {offsets = [0, 0], sizes = [8, 8], strides = [1, 1]} : vector<16x32xbf16> to vector<8x8xbf16>
    %cst_34 = arith.constant dense<0.000000e+00> : vector<8x8xf32>
    %56 = tpu.matmul %54, %55, %cst_34 {dimension_numbers = #tpu.dot_dimension_numbers<[1], [1], [0], [0], [0, 0, 1, 0], [], []>} : vector<8x8xbf16>, vector<8x8xbf16>, vector<8x8xf32> -> vector<8x8xf32>
    %57 = vector.broadcast %53 : vector<1x8xf32> to vector<8x8xf32>
    %58 = arith.addf %56, %57 : vector<8x8xf32>
    %59 = vector.extract_strided_slice %49 {offsets = [0, 8], sizes = [8, 8], strides = [1, 1]} : vector<16x32xbf16> to vector<8x8xbf16>
    %60 = vector.extract_strided_slice %50 {offsets = [0, 8], sizes = [8, 8], strides = [1, 1]} : vector<16x32xbf16> to vector<8x8xbf16>
    %cst_35 = arith.constant dense<0.000000e+00> : vector<8x8xf32>
    %61 = tpu.matmul %59, %60, %cst_35 {dimension_numbers = #tpu.dot_dimension_numbers<[1], [1], [0], [0], [0, 0, 1, 0], [], []>} : vector<8x8xbf16>, vector<8x8xbf16>, vector<8x8xf32> -> vector<8x8xf32>
    %62 = vector.broadcast %53 : vector<1x8xf32> to vector<8x8xf32>
    %63 = arith.addf %61, %62 : vector<8x8xf32>
    %64 = vector.extract_strided_slice %49 {offsets = [0, 16], sizes = [8, 8], strides = [1, 1]} : vector<16x32xbf16> to vector<8x8xbf16>
    %65 = vector.extract_strided_slice %50 {offsets = [0, 16], sizes = [8, 8], strides = [1, 1]} : vector<16x32xbf16> to vector<8x8xbf16>
    %cst_36 = arith.constant dense<0.000000e+00> : vector<8x8xf32>
    %66 = tpu.matmul %64, %65, %cst_36 {dimension_numbers = #tpu.dot_dimension_numbers<[1], [1], [0], [0], [0, 0, 1, 0], [], []>} : vector<8x8xbf16>, vector<8x8xbf16>, vector<8x8xf32> -> vector<8x8xf32>
    %67 = vector.broadcast %53 : vector<1x8xf32> to vector<8x8xf32>
    %68 = arith.addf %66, %67 : vector<8x8xf32>
    %69 = vector.extract_strided_slice %49 {offsets = [0, 24], sizes = [8, 8], strides = [1, 1]} : vector<16x32xbf16> to vector<8x8xbf16>
    %70 = vector.extract_strided_slice %50 {offsets = [0, 24], sizes = [8, 8], strides = [1, 1]} : vector<16x32xbf16> to vector<8x8xbf16>
    %cst_37 = arith.constant dense<0.000000e+00> : vector<8x8xf32>
    %71 = tpu.matmul %69, %70, %cst_37 {dimension_numbers = #tpu.dot_dimension_numbers<[1], [1], [0], [0], [0, 0, 1, 0], [], []>} : vector<8x8xbf16>, vector<8x8xbf16>, vector<8x8xf32> -> vector<8x8xf32>
    %72 = vector.broadcast %53 : vector<1x8xf32> to vector<8x8xf32>
    %73 = arith.addf %71, %72 : vector<8x8xf32>
    %c1 = arith.constant 1 : index
    %c0_38 = arith.constant 0 : index
    %c0_39 = arith.constant 0 : index
    %74 = vector.load %arg1[%c1, %c0_38, %c0_39] : memref<2x1x8xf32, #tpu.memory_space<vmem>>, vector<1x1x8xf32>
    %75 = vector.shape_cast %74 : vector<1x1x8xf32> to vector<1x8xf32>
    %76 = vector.extract_strided_slice %49 {offsets = [8, 0], sizes = [8, 8], strides = [1, 1]} : vector<16x32xbf16> to vector<8x8xbf16>
    %77 = vector.extract_strided_slice %50 {offsets = [8, 0], sizes = [8, 8], strides = [1, 1]} : vector<16x32xbf16> to vector<8x8xbf16>
    %cst_40 = arith.constant dense<0.000000e+00> : vector<8x8xf32>
    %78 = tpu.matmul %76, %77, %cst_40 {dimension_numbers = #tpu.dot_dimension_numbers<[1], [1], [0], [0], [0, 0, 1, 0], [], []>} : vector<8x8xbf16>, vector<8x8xbf16>, vector<8x8xf32> -> vector<8x8xf32>
    %79 = vector.broadcast %75 : vector<1x8xf32> to vector<8x8xf32>
    %80 = arith.addf %78, %79 : vector<8x8xf32>
    %81 = vector.extract_strided_slice %49 {offsets = [8, 8], sizes = [8, 8], strides = [1, 1]} : vector<16x32xbf16> to vector<8x8xbf16>
    %82 = vector.extract_strided_slice %50 {offsets = [8, 8], sizes = [8, 8], strides = [1, 1]} : vector<16x32xbf16> to vector<8x8xbf16>
    %cst_41 = arith.constant dense<0.000000e+00> : vector<8x8xf32>
    %83 = tpu.matmul %81, %82, %cst_41 {dimension_numbers = #tpu.dot_dimension_numbers<[1], [1], [0], [0], [0, 0, 1, 0], [], []>} : vector<8x8xbf16>, vector<8x8xbf16>, vector<8x8xf32> -> vector<8x8xf32>
    %84 = vector.broadcast %75 : vector<1x8xf32> to vector<8x8xf32>
    %85 = arith.addf %83, %84 : vector<8x8xf32>
    %86 = vector.extract_strided_slice %49 {offsets = [8, 16], sizes = [8, 8], strides = [1, 1]} : vector<16x32xbf16> to vector<8x8xbf16>
    %87 = vector.extract_strided_slice %50 {offsets = [8, 16], sizes = [8, 8], strides = [1, 1]} : vector<16x32xbf16> to vector<8x8xbf16>
    %cst_42 = arith.constant dense<0.000000e+00> : vector<8x8xf32>
    %88 = tpu.matmul %86, %87, %cst_42 {dimension_numbers = #tpu.dot_dimension_numbers<[1], [1], [0], [0], [0, 0, 1, 0], [], []>} : vector<8x8xbf16>, vector<8x8xbf16>, vector<8x8xf32> -> vector<8x8xf32>
    %89 = vector.broadcast %75 : vector<1x8xf32> to vector<8x8xf32>
    %90 = arith.addf %88, %89 : vector<8x8xf32>
    %91 = vector.extract_strided_slice %49 {offsets = [8, 24], sizes = [8, 8], strides = [1, 1]} : vector<16x32xbf16> to vector<8x8xbf16>
    %92 = vector.extract_strided_slice %50 {offsets = [8, 24], sizes = [8, 8], strides = [1, 1]} : vector<16x32xbf16> to vector<8x8xbf16>
    %cst_43 = arith.constant dense<0.000000e+00> : vector<8x8xf32>
    %93 = tpu.matmul %91, %92, %cst_43 {dimension_numbers = #tpu.dot_dimension_numbers<[1], [1], [0], [0], [0, 0, 1, 0], [], []>} : vector<8x8xbf16>, vector<8x8xbf16>, vector<8x8xf32> -> vector<8x8xf32>
    %94 = vector.broadcast %75 : vector<1x8xf32> to vector<8x8xf32>
    %95 = arith.addf %93, %94 : vector<8x8xf32>
    %96 = tpu.concatenate %58, %63, %68, %73, %80, %85, %90, %95 in 0 : vector<8x8xf32>, vector<8x8xf32>, vector<8x8xf32>, vector<8x8xf32>, vector<8x8xf32>, vector<8x8xf32>, vector<8x8xf32>, vector<8x8xf32> -> vector<64x8xf32>
    %cst_44 = arith.constant dense<0xFF800000> : vector<64xf32>
    %97 = vector.multi_reduction <maximumf>, %96, %cst_44 [1] : vector<64x8xf32> to vector<64xf32>
    %98 = vector.shape_cast %97 : vector<64xf32> to vector<64x1xf32>
    %99 = vector.broadcast %98 : vector<64x1xf32> to vector<64x8xf32>
    %100 = arith.subf %96, %99 : vector<64x8xf32>
    %101 = math.exp %100 : vector<64x8xf32>
    %cst_45 = arith.constant dense<0.000000e+00> : vector<64xf32>
    %102 = vector.multi_reduction <add>, %101, %cst_45 [1] : vector<64x8xf32> to vector<64xf32>
    %103 = vector.shape_cast %102 : vector<64xf32> to vector<64x1xf32>
    %104 = tpu.reciprocal %103 {approx = true} : vector<64x1xf32> -> vector<64x1xf32>
    %105 = vector.broadcast %104 : vector<64x1xf32> to vector<64x8xf32>
    %106 = arith.mulf %101, %105 : vector<64x8xf32>
    %107 = arith.truncf %106 : vector<64x8xf32> to vector<64x8xbf16>
    %108 = vector.extract_strided_slice %107 {offsets = [0, 0], sizes = [8, 8], strides = [1, 1]} : vector<64x8xbf16> to vector<8x8xbf16>
    %109 = vector.extract_strided_slice %51 {offsets = [0, 0], sizes = [8, 8], strides = [1, 1]} : vector<16x32xbf16> to vector<8x8xbf16>
    %cst_46 = arith.constant dense<0.000000e+00> : vector<8x8xf32>
    %110 = tpu.matmul %108, %109, %cst_46 {dimension_numbers = #tpu.dot_dimension_numbers<[1], [0], [0], [1], [0, 0, 1, 1], [], []>} : vector<8x8xbf16>, vector<8x8xbf16>, vector<8x8xf32> -> vector<8x8xf32>
    %111 = vector.extract_strided_slice %107 {offsets = [8, 0], sizes = [8, 8], strides = [1, 1]} : vector<64x8xbf16> to vector<8x8xbf16>
    %112 = vector.extract_strided_slice %51 {offsets = [0, 8], sizes = [8, 8], strides = [1, 1]} : vector<16x32xbf16> to vector<8x8xbf16>
    %cst_47 = arith.constant dense<0.000000e+00> : vector<8x8xf32>
    %113 = tpu.matmul %111, %112, %cst_47 {dimension_numbers = #tpu.dot_dimension_numbers<[1], [0], [0], [1], [0, 0, 1, 1], [], []>} : vector<8x8xbf16>, vector<8x8xbf16>, vector<8x8xf32> -> vector<8x8xf32>
    %114 = vector.extract_strided_slice %107 {offsets = [16, 0], sizes = [8, 8], strides = [1, 1]} : vector<64x8xbf16> to vector<8x8xbf16>
    %115 = vector.extract_strided_slice %51 {offsets = [0, 16], sizes = [8, 8], strides = [1, 1]} : vector<16x32xbf16> to vector<8x8xbf16>
    %cst_48 = arith.constant dense<0.000000e+00> : vector<8x8xf32>
    %116 = tpu.matmul %114, %115, %cst_48 {dimension_numbers = #tpu.dot_dimension_numbers<[1], [0], [0], [1], [0, 0, 1, 1], [], []>} : vector<8x8xbf16>, vector<8x8xbf16>, vector<8x8xf32> -> vector<8x8xf32>
    %117 = vector.extract_strided_slice %107 {offsets = [24, 0], sizes = [8, 8], strides = [1, 1]} : vector<64x8xbf16> to vector<8x8xbf16>
    %118 = vector.extract_strided_slice %51 {offsets = [0, 24], sizes = [8, 8], strides = [1, 1]} : vector<16x32xbf16> to vector<8x8xbf16>
    %cst_49 = arith.constant dense<0.000000e+00> : vector<8x8xf32>
    %119 = tpu.matmul %117, %118, %cst_49 {dimension_numbers = #tpu.dot_dimension_numbers<[1], [0], [0], [1], [0, 0, 1, 1], [], []>} : vector<8x8xbf16>, vector<8x8xbf16>, vector<8x8xf32> -> vector<8x8xf32>
    %120 = tpu.concatenate %110, %113, %116, %119 in 1 : vector<8x8xf32>, vector<8x8xf32>, vector<8x8xf32>, vector<8x8xf32> -> vector<8x32xf32>
    %121 = vector.extract_strided_slice %107 {offsets = [32, 0], sizes = [8, 8], strides = [1, 1]} : vector<64x8xbf16> to vector<8x8xbf16>
    %122 = vector.extract_strided_slice %51 {offsets = [8, 0], sizes = [8, 8], strides = [1, 1]} : vector<16x32xbf16> to vector<8x8xbf16>
    %cst_50 = arith.constant dense<0.000000e+00> : vector<8x8xf32>
    %123 = tpu.matmul %121, %122, %cst_50 {dimension_numbers = #tpu.dot_dimension_numbers<[1], [0], [0], [1], [0, 0, 1, 1], [], []>} : vector<8x8xbf16>, vector<8x8xbf16>, vector<8x8xf32> -> vector<8x8xf32>
    %124 = vector.extract_strided_slice %107 {offsets = [40, 0], sizes = [8, 8], strides = [1, 1]} : vector<64x8xbf16> to vector<8x8xbf16>
    %125 = vector.extract_strided_slice %51 {offsets = [8, 8], sizes = [8, 8], strides = [1, 1]} : vector<16x32xbf16> to vector<8x8xbf16>
    %cst_51 = arith.constant dense<0.000000e+00> : vector<8x8xf32>
    %126 = tpu.matmul %124, %125, %cst_51 {dimension_numbers = #tpu.dot_dimension_numbers<[1], [0], [0], [1], [0, 0, 1, 1], [], []>} : vector<8x8xbf16>, vector<8x8xbf16>, vector<8x8xf32> -> vector<8x8xf32>
    %127 = vector.extract_strided_slice %107 {offsets = [48, 0], sizes = [8, 8], strides = [1, 1]} : vector<64x8xbf16> to vector<8x8xbf16>
    %128 = vector.extract_strided_slice %51 {offsets = [8, 16], sizes = [8, 8], strides = [1, 1]} : vector<16x32xbf16> to vector<8x8xbf16>
    %cst_52 = arith.constant dense<0.000000e+00> : vector<8x8xf32>
    %129 = tpu.matmul %127, %128, %cst_52 {dimension_numbers = #tpu.dot_dimension_numbers<[1], [0], [0], [1], [0, 0, 1, 1], [], []>} : vector<8x8xbf16>, vector<8x8xbf16>, vector<8x8xf32> -> vector<8x8xf32>
    %130 = vector.extract_strided_slice %107 {offsets = [56, 0], sizes = [8, 8], strides = [1, 1]} : vector<64x8xbf16> to vector<8x8xbf16>
    %131 = vector.extract_strided_slice %51 {offsets = [8, 24], sizes = [8, 8], strides = [1, 1]} : vector<16x32xbf16> to vector<8x8xbf16>
    %cst_53 = arith.constant dense<0.000000e+00> : vector<8x8xf32>
    %132 = tpu.matmul %130, %131, %cst_53 {dimension_numbers = #tpu.dot_dimension_numbers<[1], [0], [0], [1], [0, 0, 1, 1], [], []>} : vector<8x8xbf16>, vector<8x8xbf16>, vector<8x8xf32> -> vector<8x8xf32>
    %133 = tpu.concatenate %123, %126, %129, %132 in 1 : vector<8x8xf32>, vector<8x8xf32>, vector<8x8xf32>, vector<8x8xf32> -> vector<8x32xf32>
    %134 = tpu.concatenate %120, %133 in 0 : vector<8x32xf32>, vector<8x32xf32> -> vector<16x32xf32>
    %135 = arith.truncf %134 : vector<16x32xf32> to vector<16x32xbf16>
    %c0_54 = arith.constant 0 : index
    %c0_55 = arith.constant 0 : index
    %c0_56 = arith.constant 0 : index
    %136 = vector.load %arg10[%c0_54, %c0_55, %c0_56] : memref<2x32x32xbf16, #tpu.memory_space<vmem>>, vector<1x32x32xbf16>
    %137 = vector.shape_cast %136 : vector<1x32x32xbf16> to vector<32x32xbf16>
    %cst_57 = arith.constant dense<0.000000e+00> : vector<16x32xf32>
    %138 = tpu.matmul %135, %137, %cst_57 {dimension_numbers = #tpu.dot_dimension_numbers<[1], [0], [0], [1], [0, 0, 1, 1], [], []>} : vector<16x32xbf16>, vector<32x32xbf16>, vector<16x32xf32> -> vector<16x32xf32>
    %c0_58 = arith.constant 0 : index
    %c0_59 = arith.constant 0 : index
    %c0_60 = arith.constant 0 : index
    %139 = vector.load %arg11[%c0_58, %c0_59, %c0_60] : memref<2x1x32xf32, #tpu.memory_space<vmem>>, vector<1x1x32xf32>
    %140 = vector.shape_cast %139 : vector<1x1x32xf32> to vector<1x32xf32>
    %141 = vector.broadcast %140 : vector<1x32xf32> to vector<16x32xf32>
    %142 = arith.addf %138, %141 : vector<16x32xf32>
    %143 = arith.addf %142, %24 : vector<16x32xf32>
    %c0_61 = arith.constant 0 : index
    %c0_62 = arith.constant 0 : index
    %c0_63 = arith.constant 0 : index
    %144 = vector.load %arg12[%c0_61, %c0_62, %c0_63] : memref<2x1x32xf32, #tpu.memory_space<vmem>>, vector<1x1x32xf32>
    %145 = vector.shape_cast %144 : vector<1x1x32xf32> to vector<1x32xf32>
    %c0_64 = arith.constant 0 : index
    %c0_65 = arith.constant 0 : index
    %c0_66 = arith.constant 0 : index
    %146 = vector.load %arg13[%c0_64, %c0_65, %c0_66] : memref<2x1x32xf32, #tpu.memory_space<vmem>>, vector<1x1x32xf32>
    %147 = vector.shape_cast %146 : vector<1x1x32xf32> to vector<1x32xf32>
    %cst_67 = arith.constant dense<0.000000e+00> : vector<16xf32>
    %148 = vector.multi_reduction <add>, %143, %cst_67 [1] : vector<16x32xf32> to vector<16xf32>
    %149 = vector.shape_cast %148 : vector<16xf32> to vector<16x1xf32>
    %cst_68 = arith.constant 3.200000e+01 : f32
    %150 = vector.broadcast %cst_68 : f32 to vector<16x1xf32>
    %151 = arith.divf %149, %150 : vector<16x1xf32>
    %152 = vector.broadcast %151 : vector<16x1xf32> to vector<16x32xf32>
    %153 = arith.subf %143, %152 : vector<16x32xf32>
    %154 = arith.mulf %153, %153 : vector<16x32xf32>
    %cst_69 = arith.constant dense<0.000000e+00> : vector<16xf32>
    %155 = vector.multi_reduction <add>, %154, %cst_69 [1] : vector<16x32xf32> to vector<16xf32>
    %156 = vector.shape_cast %155 : vector<16xf32> to vector<16x1xf32>
    %cst_70 = arith.constant 3.200000e+01 : f32
    %157 = vector.broadcast %cst_70 : f32 to vector<16x1xf32>
    %158 = arith.divf %156, %157 : vector<16x1xf32>
    %159 = vector.broadcast %151 : vector<16x1xf32> to vector<16x32xf32>
    %160 = arith.subf %143, %159 : vector<16x32xf32>
    %cst_71 = arith.constant 9.99999996E-13 : f32
    %161 = vector.broadcast %cst_71 : f32 to vector<16x1xf32>
    %162 = arith.addf %158, %161 : vector<16x1xf32>
    %163 = math.rsqrt %162 : vector<16x1xf32>
    %164 = vector.broadcast %163 : vector<16x1xf32> to vector<16x32xf32>
    %165 = arith.mulf %160, %164 : vector<16x32xf32>
    %166 = vector.broadcast %145 : vector<1x32xf32> to vector<16x32xf32>
    %167 = arith.mulf %165, %166 : vector<16x32xf32>
    %168 = vector.broadcast %147 : vector<1x32xf32> to vector<16x32xf32>
    %169 = arith.addf %167, %168 : vector<16x32xf32>
    %170 = arith.truncf %169 : vector<16x32xf32> to vector<16x32xbf16>
    %c0_72 = arith.constant 0 : index
    %c0_73 = arith.constant 0 : index
    %c0_74 = arith.constant 0 : index
    %171 = vector.load %arg14[%c0_72, %c0_73, %c0_74] : memref<2x32x64xbf16, #tpu.memory_space<vmem>>, vector<1x32x64xbf16>
    %172 = vector.shape_cast %171 : vector<1x32x64xbf16> to vector<32x64xbf16>
    %cst_75 = arith.constant dense<0.000000e+00> : vector<16x64xf32>
    %173 = tpu.matmul %170, %172, %cst_75 {dimension_numbers = #tpu.dot_dimension_numbers<[1], [0], [0], [1], [0, 0, 1, 1], [], []>} : vector<16x32xbf16>, vector<32x64xbf16>, vector<16x64xf32> -> vector<16x64xf32>
    %c0_76 = arith.constant 0 : index
    %c0_77 = arith.constant 0 : index
    %c0_78 = arith.constant 0 : index
    %174 = vector.load %arg15[%c0_76, %c0_77, %c0_78] : memref<2x1x64xf32, #tpu.memory_space<vmem>>, vector<1x1x64xf32>
    %175 = vector.shape_cast %174 : vector<1x1x64xf32> to vector<1x64xf32>
    %176 = vector.broadcast %175 : vector<1x64xf32> to vector<16x64xf32>
    %177 = arith.addf %173, %176 : vector<16x64xf32>
    %cst_79 = arith.constant 5.000000e-01 : f32
    %178 = vector.broadcast %cst_79 : f32 to vector<16x64xf32>
    %179 = arith.mulf %178, %177 : vector<16x64xf32>
    %cst_80 = arith.constant 4.471500e-02 : f32
    %180 = vector.broadcast %cst_80 : f32 to vector<16x64xf32>
    %181 = arith.mulf %180, %177 : vector<16x64xf32>
    %182 = arith.mulf %181, %177 : vector<16x64xf32>
    %183 = arith.mulf %182, %177 : vector<16x64xf32>
    %184 = arith.addf %177, %183 : vector<16x64xf32>
    %cst_81 = arith.constant 0.797884583 : f32
    %185 = vector.broadcast %cst_81 : f32 to vector<16x64xf32>
    %186 = arith.mulf %185, %184 : vector<16x64xf32>
    %187 = math.tanh %186 : vector<16x64xf32>
    %cst_82 = arith.constant 1.000000e+00 : f32
    %188 = vector.broadcast %cst_82 : f32 to vector<16x64xf32>
    %189 = arith.addf %188, %187 : vector<16x64xf32>
    %190 = arith.mulf %179, %189 : vector<16x64xf32>
    %191 = arith.truncf %190 : vector<16x64xf32> to vector<16x64xbf16>
    %c0_83 = arith.constant 0 : index
    %c0_84 = arith.constant 0 : index
    %c0_85 = arith.constant 0 : index
    %192 = vector.load %arg16[%c0_83, %c0_84, %c0_85] : memref<2x64x32xbf16, #tpu.memory_space<vmem>>, vector<1x64x32xbf16>
    %193 = vector.shape_cast %192 : vector<1x64x32xbf16> to vector<64x32xbf16>
    %cst_86 = arith.constant dense<0.000000e+00> : vector<16x32xf32>
    %194 = tpu.matmul %191, %193, %cst_86 {dimension_numbers = #tpu.dot_dimension_numbers<[1], [0], [0], [1], [0, 0, 1, 1], [], []>} : vector<16x64xbf16>, vector<64x32xbf16>, vector<16x32xf32> -> vector<16x32xf32>
    %c0_87 = arith.constant 0 : index
    %c0_88 = arith.constant 0 : index
    %c0_89 = arith.constant 0 : index
    %195 = vector.load %arg17[%c0_87, %c0_88, %c0_89] : memref<2x1x32xf32, #tpu.memory_space<vmem>>, vector<1x1x32xf32>
    %196 = vector.shape_cast %195 : vector<1x1x32xf32> to vector<1x32xf32>
    %197 = vector.broadcast %196 : vector<1x32xf32> to vector<16x32xf32>
    %198 = arith.addf %194, %197 : vector<16x32xf32>
    %199 = arith.addf %198, %169 : vector<16x32xf32>
    %c0_90 = arith.constant 0 : index
    %c0_91 = arith.constant 0 : index
    %c0_92 = arith.constant 0 : index
    %200 = vector.load %arg18[%c0_90, %c0_91, %c0_92] : memref<2x1x32xf32, #tpu.memory_space<vmem>>, vector<1x1x32xf32>
    %201 = vector.shape_cast %200 : vector<1x1x32xf32> to vector<1x32xf32>
    %c0_93 = arith.constant 0 : index
    %c0_94 = arith.constant 0 : index
    %c0_95 = arith.constant 0 : index
    %202 = vector.load %arg19[%c0_93, %c0_94, %c0_95] : memref<2x1x32xf32, #tpu.memory_space<vmem>>, vector<1x1x32xf32>
    %203 = vector.shape_cast %202 : vector<1x1x32xf32> to vector<1x32xf32>
    %cst_96 = arith.constant dense<0.000000e+00> : vector<16xf32>
    %204 = vector.multi_reduction <add>, %199, %cst_96 [1] : vector<16x32xf32> to vector<16xf32>
    %205 = vector.shape_cast %204 : vector<16xf32> to vector<16x1xf32>
    %cst_97 = arith.constant 3.200000e+01 : f32
    %206 = vector.broadcast %cst_97 : f32 to vector<16x1xf32>
    %207 = arith.divf %205, %206 : vector<16x1xf32>
    %208 = vector.broadcast %207 : vector<16x1xf32> to vector<16x32xf32>
    %209 = arith.subf %199, %208 : vector<16x32xf32>
    %210 = arith.mulf %209, %209 : vector<16x32xf32>
    %cst_98 = arith.constant dense<0.000000e+00> : vector<16xf32>
    %211 = vector.multi_reduction <add>, %210, %cst_98 [1] : vector<16x32xf32> to vector<16xf32>
    %212 = vector.shape_cast %211 : vector<16xf32> to vector<16x1xf32>
    %cst_99 = arith.constant 3.200000e+01 : f32
    %213 = vector.broadcast %cst_99 : f32 to vector<16x1xf32>
    %214 = arith.divf %212, %213 : vector<16x1xf32>
    %215 = vector.broadcast %207 : vector<16x1xf32> to vector<16x32xf32>
    %216 = arith.subf %199, %215 : vector<16x32xf32>
    %cst_100 = arith.constant 9.99999996E-13 : f32
    %217 = vector.broadcast %cst_100 : f32 to vector<16x1xf32>
    %218 = arith.addf %214, %217 : vector<16x1xf32>
    %219 = math.rsqrt %218 : vector<16x1xf32>
    %220 = vector.broadcast %219 : vector<16x1xf32> to vector<16x32xf32>
    %221 = arith.mulf %216, %220 : vector<16x32xf32>
    %222 = vector.broadcast %201 : vector<1x32xf32> to vector<16x32xf32>
    %223 = arith.mulf %221, %222 : vector<16x32xf32>
    %224 = vector.broadcast %203 : vector<1x32xf32> to vector<16x32xf32>
    %225 = arith.addf %223, %224 : vector<16x32xf32>
    %226 = arith.truncf %225 : vector<16x32xf32> to vector<16x32xbf16>
    %c1_101 = arith.constant 1 : index
    %c0_102 = arith.constant 0 : index
    %c0_103 = arith.constant 0 : index
    %227 = vector.load %arg4[%c1_101, %c0_102, %c0_103] : memref<2x32x32xbf16, #tpu.memory_space<vmem>>, vector<1x32x32xbf16>
    %228 = vector.shape_cast %227 : vector<1x32x32xbf16> to vector<32x32xbf16>
    %cst_104 = arith.constant dense<0.000000e+00> : vector<16x32xf32>
    %229 = tpu.matmul %226, %228, %cst_104 {dimension_numbers = #tpu.dot_dimension_numbers<[1], [0], [0], [1], [0, 0, 1, 1], [], []>} : vector<16x32xbf16>, vector<32x32xbf16>, vector<16x32xf32> -> vector<16x32xf32>
    %c1_105 = arith.constant 1 : index
    %c0_106 = arith.constant 0 : index
    %c0_107 = arith.constant 0 : index
    %230 = vector.load %arg5[%c1_105, %c0_106, %c0_107] : memref<2x1x32xf32, #tpu.memory_space<vmem>>, vector<1x1x32xf32>
    %231 = vector.shape_cast %230 : vector<1x1x32xf32> to vector<1x32xf32>
    %232 = vector.broadcast %231 : vector<1x32xf32> to vector<16x32xf32>
    %233 = arith.addf %229, %232 : vector<16x32xf32>
    %c1_108 = arith.constant 1 : index
    %c0_109 = arith.constant 0 : index
    %c0_110 = arith.constant 0 : index
    %234 = vector.load %arg6[%c1_108, %c0_109, %c0_110] : memref<2x32x32xbf16, #tpu.memory_space<vmem>>, vector<1x32x32xbf16>
    %235 = vector.shape_cast %234 : vector<1x32x32xbf16> to vector<32x32xbf16>
    %cst_111 = arith.constant dense<0.000000e+00> : vector<16x32xf32>
    %236 = tpu.matmul %226, %235, %cst_111 {dimension_numbers = #tpu.dot_dimension_numbers<[1], [0], [0], [1], [0, 0, 1, 1], [], []>} : vector<16x32xbf16>, vector<32x32xbf16>, vector<16x32xf32> -> vector<16x32xf32>
    %c1_112 = arith.constant 1 : index
    %c0_113 = arith.constant 0 : index
    %c0_114 = arith.constant 0 : index
    %237 = vector.load %arg7[%c1_112, %c0_113, %c0_114] : memref<2x1x32xf32, #tpu.memory_space<vmem>>, vector<1x1x32xf32>
    %238 = vector.shape_cast %237 : vector<1x1x32xf32> to vector<1x32xf32>
    %239 = vector.broadcast %238 : vector<1x32xf32> to vector<16x32xf32>
    %240 = arith.addf %236, %239 : vector<16x32xf32>
    %c1_115 = arith.constant 1 : index
    %c0_116 = arith.constant 0 : index
    %c0_117 = arith.constant 0 : index
    %241 = vector.load %arg8[%c1_115, %c0_116, %c0_117] : memref<2x32x32xbf16, #tpu.memory_space<vmem>>, vector<1x32x32xbf16>
    %242 = vector.shape_cast %241 : vector<1x32x32xbf16> to vector<32x32xbf16>
    %cst_118 = arith.constant dense<0.000000e+00> : vector<16x32xf32>
    %243 = tpu.matmul %226, %242, %cst_118 {dimension_numbers = #tpu.dot_dimension_numbers<[1], [0], [0], [1], [0, 0, 1, 1], [], []>} : vector<16x32xbf16>, vector<32x32xbf16>, vector<16x32xf32> -> vector<16x32xf32>
    %c1_119 = arith.constant 1 : index
    %c0_120 = arith.constant 0 : index
    %c0_121 = arith.constant 0 : index
    %244 = vector.load %arg9[%c1_119, %c0_120, %c0_121] : memref<2x1x32xf32, #tpu.memory_space<vmem>>, vector<1x1x32xf32>
    %245 = vector.shape_cast %244 : vector<1x1x32xf32> to vector<1x32xf32>
    %246 = vector.broadcast %245 : vector<1x32xf32> to vector<16x32xf32>
    %247 = arith.addf %243, %246 : vector<16x32xf32>
    %cst_122 = arith.constant 0.353553385 : f32
    %248 = vector.broadcast %cst_122 : f32 to vector<16x32xf32>
    %249 = arith.mulf %233, %248 : vector<16x32xf32>
    %250 = arith.truncf %249 : vector<16x32xf32> to vector<16x32xbf16>
    %251 = arith.truncf %240 : vector<16x32xf32> to vector<16x32xbf16>
    %252 = arith.truncf %247 : vector<16x32xf32> to vector<16x32xbf16>
    %c0_123 = arith.constant 0 : index
    %c0_124 = arith.constant 0 : index
    %c0_125 = arith.constant 0 : index
    %253 = vector.load %arg1[%c0_123, %c0_124, %c0_125] : memref<2x1x8xf32, #tpu.memory_space<vmem>>, vector<1x1x8xf32>
    %254 = vector.shape_cast %253 : vector<1x1x8xf32> to vector<1x8xf32>
    %255 = vector.extract_strided_slice %250 {offsets = [0, 0], sizes = [8, 8], strides = [1, 1]} : vector<16x32xbf16> to vector<8x8xbf16>
    %256 = vector.extract_strided_slice %251 {offsets = [0, 0], sizes = [8, 8], strides = [1, 1]} : vector<16x32xbf16> to vector<8x8xbf16>
    %cst_126 = arith.constant dense<0.000000e+00> : vector<8x8xf32>
    %257 = tpu.matmul %255, %256, %cst_126 {dimension_numbers = #tpu.dot_dimension_numbers<[1], [1], [0], [0], [0, 0, 1, 0], [], []>} : vector<8x8xbf16>, vector<8x8xbf16>, vector<8x8xf32> -> vector<8x8xf32>
    %258 = vector.broadcast %254 : vector<1x8xf32> to vector<8x8xf32>
    %259 = arith.addf %257, %258 : vector<8x8xf32>
    %260 = vector.extract_strided_slice %250 {offsets = [0, 8], sizes = [8, 8], strides = [1, 1]} : vector<16x32xbf16> to vector<8x8xbf16>
    %261 = vector.extract_strided_slice %251 {offsets = [0, 8], sizes = [8, 8], strides = [1, 1]} : vector<16x32xbf16> to vector<8x8xbf16>
    %cst_127 = arith.constant dense<0.000000e+00> : vector<8x8xf32>
    %262 = tpu.matmul %260, %261, %cst_127 {dimension_numbers = #tpu.dot_dimension_numbers<[1], [1], [0], [0], [0, 0, 1, 0], [], []>} : vector<8x8xbf16>, vector<8x8xbf16>, vector<8x8xf32> -> vector<8x8xf32>
    %263 = vector.broadcast %254 : vector<1x8xf32> to vector<8x8xf32>
    %264 = arith.addf %262, %263 : vector<8x8xf32>
    %265 = vector.extract_strided_slice %250 {offsets = [0, 16], sizes = [8, 8], strides = [1, 1]} : vector<16x32xbf16> to vector<8x8xbf16>
    %266 = vector.extract_strided_slice %251 {offsets = [0, 16], sizes = [8, 8], strides = [1, 1]} : vector<16x32xbf16> to vector<8x8xbf16>
    %cst_128 = arith.constant dense<0.000000e+00> : vector<8x8xf32>
    %267 = tpu.matmul %265, %266, %cst_128 {dimension_numbers = #tpu.dot_dimension_numbers<[1], [1], [0], [0], [0, 0, 1, 0], [], []>} : vector<8x8xbf16>, vector<8x8xbf16>, vector<8x8xf32> -> vector<8x8xf32>
    %268 = vector.broadcast %254 : vector<1x8xf32> to vector<8x8xf32>
    %269 = arith.addf %267, %268 : vector<8x8xf32>
    %270 = vector.extract_strided_slice %250 {offsets = [0, 24], sizes = [8, 8], strides = [1, 1]} : vector<16x32xbf16> to vector<8x8xbf16>
    %271 = vector.extract_strided_slice %251 {offsets = [0, 24], sizes = [8, 8], strides = [1, 1]} : vector<16x32xbf16> to vector<8x8xbf16>
    %cst_129 = arith.constant dense<0.000000e+00> : vector<8x8xf32>
    %272 = tpu.matmul %270, %271, %cst_129 {dimension_numbers = #tpu.dot_dimension_numbers<[1], [1], [0], [0], [0, 0, 1, 0], [], []>} : vector<8x8xbf16>, vector<8x8xbf16>, vector<8x8xf32> -> vector<8x8xf32>
    %273 = vector.broadcast %254 : vector<1x8xf32> to vector<8x8xf32>
    %274 = arith.addf %272, %273 : vector<8x8xf32>
    %c1_130 = arith.constant 1 : index
    %c0_131 = arith.constant 0 : index
    %c0_132 = arith.constant 0 : index
    %275 = vector.load %arg1[%c1_130, %c0_131, %c0_132] : memref<2x1x8xf32, #tpu.memory_space<vmem>>, vector<1x1x8xf32>
    %276 = vector.shape_cast %275 : vector<1x1x8xf32> to vector<1x8xf32>
    %277 = vector.extract_strided_slice %250 {offsets = [8, 0], sizes = [8, 8], strides = [1, 1]} : vector<16x32xbf16> to vector<8x8xbf16>
    %278 = vector.extract_strided_slice %251 {offsets = [8, 0], sizes = [8, 8], strides = [1, 1]} : vector<16x32xbf16> to vector<8x8xbf16>
    %cst_133 = arith.constant dense<0.000000e+00> : vector<8x8xf32>
    %279 = tpu.matmul %277, %278, %cst_133 {dimension_numbers = #tpu.dot_dimension_numbers<[1], [1], [0], [0], [0, 0, 1, 0], [], []>} : vector<8x8xbf16>, vector<8x8xbf16>, vector<8x8xf32> -> vector<8x8xf32>
    %280 = vector.broadcast %276 : vector<1x8xf32> to vector<8x8xf32>
    %281 = arith.addf %279, %280 : vector<8x8xf32>
    %282 = vector.extract_strided_slice %250 {offsets = [8, 8], sizes = [8, 8], strides = [1, 1]} : vector<16x32xbf16> to vector<8x8xbf16>
    %283 = vector.extract_strided_slice %251 {offsets = [8, 8], sizes = [8, 8], strides = [1, 1]} : vector<16x32xbf16> to vector<8x8xbf16>
    %cst_134 = arith.constant dense<0.000000e+00> : vector<8x8xf32>
    %284 = tpu.matmul %282, %283, %cst_134 {dimension_numbers = #tpu.dot_dimension_numbers<[1], [1], [0], [0], [0, 0, 1, 0], [], []>} : vector<8x8xbf16>, vector<8x8xbf16>, vector<8x8xf32> -> vector<8x8xf32>
    %285 = vector.broadcast %276 : vector<1x8xf32> to vector<8x8xf32>
    %286 = arith.addf %284, %285 : vector<8x8xf32>
    %287 = vector.extract_strided_slice %250 {offsets = [8, 16], sizes = [8, 8], strides = [1, 1]} : vector<16x32xbf16> to vector<8x8xbf16>
    %288 = vector.extract_strided_slice %251 {offsets = [8, 16], sizes = [8, 8], strides = [1, 1]} : vector<16x32xbf16> to vector<8x8xbf16>
    %cst_135 = arith.constant dense<0.000000e+00> : vector<8x8xf32>
    %289 = tpu.matmul %287, %288, %cst_135 {dimension_numbers = #tpu.dot_dimension_numbers<[1], [1], [0], [0], [0, 0, 1, 0], [], []>} : vector<8x8xbf16>, vector<8x8xbf16>, vector<8x8xf32> -> vector<8x8xf32>
    %290 = vector.broadcast %276 : vector<1x8xf32> to vector<8x8xf32>
    %291 = arith.addf %289, %290 : vector<8x8xf32>
    %292 = vector.extract_strided_slice %250 {offsets = [8, 24], sizes = [8, 8], strides = [1, 1]} : vector<16x32xbf16> to vector<8x8xbf16>
    %293 = vector.extract_strided_slice %251 {offsets = [8, 24], sizes = [8, 8], strides = [1, 1]} : vector<16x32xbf16> to vector<8x8xbf16>
    %cst_136 = arith.constant dense<0.000000e+00> : vector<8x8xf32>
    %294 = tpu.matmul %292, %293, %cst_136 {dimension_numbers = #tpu.dot_dimension_numbers<[1], [1], [0], [0], [0, 0, 1, 0], [], []>} : vector<8x8xbf16>, vector<8x8xbf16>, vector<8x8xf32> -> vector<8x8xf32>
    %295 = vector.broadcast %276 : vector<1x8xf32> to vector<8x8xf32>
    %296 = arith.addf %294, %295 : vector<8x8xf32>
    %297 = tpu.concatenate %259, %264, %269, %274, %281, %286, %291, %296 in 0 : vector<8x8xf32>, vector<8x8xf32>, vector<8x8xf32>, vector<8x8xf32>, vector<8x8xf32>, vector<8x8xf32>, vector<8x8xf32>, vector<8x8xf32> -> vector<64x8xf32>
    %cst_137 = arith.constant dense<0xFF800000> : vector<64xf32>
    %298 = vector.multi_reduction <maximumf>, %297, %cst_137 [1] : vector<64x8xf32> to vector<64xf32>
    %299 = vector.shape_cast %298 : vector<64xf32> to vector<64x1xf32>
    %300 = vector.broadcast %299 : vector<64x1xf32> to vector<64x8xf32>
    %301 = arith.subf %297, %300 : vector<64x8xf32>
    %302 = math.exp %301 : vector<64x8xf32>
    %cst_138 = arith.constant dense<0.000000e+00> : vector<64xf32>
    %303 = vector.multi_reduction <add>, %302, %cst_138 [1] : vector<64x8xf32> to vector<64xf32>
    %304 = vector.shape_cast %303 : vector<64xf32> to vector<64x1xf32>
    %305 = tpu.reciprocal %304 {approx = true} : vector<64x1xf32> -> vector<64x1xf32>
    %306 = vector.broadcast %305 : vector<64x1xf32> to vector<64x8xf32>
    %307 = arith.mulf %302, %306 : vector<64x8xf32>
    %308 = arith.truncf %307 : vector<64x8xf32> to vector<64x8xbf16>
    %309 = vector.extract_strided_slice %308 {offsets = [0, 0], sizes = [8, 8], strides = [1, 1]} : vector<64x8xbf16> to vector<8x8xbf16>
    %310 = vector.extract_strided_slice %252 {offsets = [0, 0], sizes = [8, 8], strides = [1, 1]} : vector<16x32xbf16> to vector<8x8xbf16>
    %cst_139 = arith.constant dense<0.000000e+00> : vector<8x8xf32>
    %311 = tpu.matmul %309, %310, %cst_139 {dimension_numbers = #tpu.dot_dimension_numbers<[1], [0], [0], [1], [0, 0, 1, 1], [], []>} : vector<8x8xbf16>, vector<8x8xbf16>, vector<8x8xf32> -> vector<8x8xf32>
    %312 = vector.extract_strided_slice %308 {offsets = [8, 0], sizes = [8, 8], strides = [1, 1]} : vector<64x8xbf16> to vector<8x8xbf16>
    %313 = vector.extract_strided_slice %252 {offsets = [0, 8], sizes = [8, 8], strides = [1, 1]} : vector<16x32xbf16> to vector<8x8xbf16>
    %cst_140 = arith.constant dense<0.000000e+00> : vector<8x8xf32>
    %314 = tpu.matmul %312, %313, %cst_140 {dimension_numbers = #tpu.dot_dimension_numbers<[1], [0], [0], [1], [0, 0, 1, 1], [], []>} : vector<8x8xbf16>, vector<8x8xbf16>, vector<8x8xf32> -> vector<8x8xf32>
    %315 = vector.extract_strided_slice %308 {offsets = [16, 0], sizes = [8, 8], strides = [1, 1]} : vector<64x8xbf16> to vector<8x8xbf16>
    %316 = vector.extract_strided_slice %252 {offsets = [0, 16], sizes = [8, 8], strides = [1, 1]} : vector<16x32xbf16> to vector<8x8xbf16>
    %cst_141 = arith.constant dense<0.000000e+00> : vector<8x8xf32>
    %317 = tpu.matmul %315, %316, %cst_141 {dimension_numbers = #tpu.dot_dimension_numbers<[1], [0], [0], [1], [0, 0, 1, 1], [], []>} : vector<8x8xbf16>, vector<8x8xbf16>, vector<8x8xf32> -> vector<8x8xf32>
    %318 = vector.extract_strided_slice %308 {offsets = [24, 0], sizes = [8, 8], strides = [1, 1]} : vector<64x8xbf16> to vector<8x8xbf16>
    %319 = vector.extract_strided_slice %252 {offsets = [0, 24], sizes = [8, 8], strides = [1, 1]} : vector<16x32xbf16> to vector<8x8xbf16>
    %cst_142 = arith.constant dense<0.000000e+00> : vector<8x8xf32>
    %320 = tpu.matmul %318, %319, %cst_142 {dimension_numbers = #tpu.dot_dimension_numbers<[1], [0], [0], [1], [0, 0, 1, 1], [], []>} : vector<8x8xbf16>, vector<8x8xbf16>, vector<8x8xf32> -> vector<8x8xf32>
    %321 = tpu.concatenate %311, %314, %317, %320 in 1 : vector<8x8xf32>, vector<8x8xf32>, vector<8x8xf32>, vector<8x8xf32> -> vector<8x32xf32>
    %322 = vector.extract_strided_slice %308 {offsets = [32, 0], sizes = [8, 8], strides = [1, 1]} : vector<64x8xbf16> to vector<8x8xbf16>
    %323 = vector.extract_strided_slice %252 {offsets = [8, 0], sizes = [8, 8], strides = [1, 1]} : vector<16x32xbf16> to vector<8x8xbf16>
    %cst_143 = arith.constant dense<0.000000e+00> : vector<8x8xf32>
    %324 = tpu.matmul %322, %323, %cst_143 {dimension_numbers = #tpu.dot_dimension_numbers<[1], [0], [0], [1], [0, 0, 1, 1], [], []>} : vector<8x8xbf16>, vector<8x8xbf16>, vector<8x8xf32> -> vector<8x8xf32>
    %325 = vector.extract_strided_slice %308 {offsets = [40, 0], sizes = [8, 8], strides = [1, 1]} : vector<64x8xbf16> to vector<8x8xbf16>
    %326 = vector.extract_strided_slice %252 {offsets = [8, 8], sizes = [8, 8], strides = [1, 1]} : vector<16x32xbf16> to vector<8x8xbf16>
    %cst_144 = arith.constant dense<0.000000e+00> : vector<8x8xf32>
    %327 = tpu.matmul %325, %326, %cst_144 {dimension_numbers = #tpu.dot_dimension_numbers<[1], [0], [0], [1], [0, 0, 1, 1], [], []>} : vector<8x8xbf16>, vector<8x8xbf16>, vector<8x8xf32> -> vector<8x8xf32>
    %328 = vector.extract_strided_slice %308 {offsets = [48, 0], sizes = [8, 8], strides = [1, 1]} : vector<64x8xbf16> to vector<8x8xbf16>
    %329 = vector.extract_strided_slice %252 {offsets = [8, 16], sizes = [8, 8], strides = [1, 1]} : vector<16x32xbf16> to vector<8x8xbf16>
    %cst_145 = arith.constant dense<0.000000e+00> : vector<8x8xf32>
    %330 = tpu.matmul %328, %329, %cst_145 {dimension_numbers = #tpu.dot_dimension_numbers<[1], [0], [0], [1], [0, 0, 1, 1], [], []>} : vector<8x8xbf16>, vector<8x8xbf16>, vector<8x8xf32> -> vector<8x8xf32>
    %331 = vector.extract_strided_slice %308 {offsets = [56, 0], sizes = [8, 8], strides = [1, 1]} : vector<64x8xbf16> to vector<8x8xbf16>
    %332 = vector.extract_strided_slice %252 {offsets = [8, 24], sizes = [8, 8], strides = [1, 1]} : vector<16x32xbf16> to vector<8x8xbf16>
    %cst_146 = arith.constant dense<0.000000e+00> : vector<8x8xf32>
    %333 = tpu.matmul %331, %332, %cst_146 {dimension_numbers = #tpu.dot_dimension_numbers<[1], [0], [0], [1], [0, 0, 1, 1], [], []>} : vector<8x8xbf16>, vector<8x8xbf16>, vector<8x8xf32> -> vector<8x8xf32>
    %334 = tpu.concatenate %324, %327, %330, %333 in 1 : vector<8x8xf32>, vector<8x8xf32>, vector<8x8xf32>, vector<8x8xf32> -> vector<8x32xf32>
    %335 = tpu.concatenate %321, %334 in 0 : vector<8x32xf32>, vector<8x32xf32> -> vector<16x32xf32>
    %336 = arith.truncf %335 : vector<16x32xf32> to vector<16x32xbf16>
    %c1_147 = arith.constant 1 : index
    %c0_148 = arith.constant 0 : index
    %c0_149 = arith.constant 0 : index
    %337 = vector.load %arg10[%c1_147, %c0_148, %c0_149] : memref<2x32x32xbf16, #tpu.memory_space<vmem>>, vector<1x32x32xbf16>
    %338 = vector.shape_cast %337 : vector<1x32x32xbf16> to vector<32x32xbf16>
    %cst_150 = arith.constant dense<0.000000e+00> : vector<16x32xf32>
    %339 = tpu.matmul %336, %338, %cst_150 {dimension_numbers = #tpu.dot_dimension_numbers<[1], [0], [0], [1], [0, 0, 1, 1], [], []>} : vector<16x32xbf16>, vector<32x32xbf16>, vector<16x32xf32> -> vector<16x32xf32>
    %c1_151 = arith.constant 1 : index
    %c0_152 = arith.constant 0 : index
    %c0_153 = arith.constant 0 : index
    %340 = vector.load %arg11[%c1_151, %c0_152, %c0_153] : memref<2x1x32xf32, #tpu.memory_space<vmem>>, vector<1x1x32xf32>
    %341 = vector.shape_cast %340 : vector<1x1x32xf32> to vector<1x32xf32>
    %342 = vector.broadcast %341 : vector<1x32xf32> to vector<16x32xf32>
    %343 = arith.addf %339, %342 : vector<16x32xf32>
    %344 = arith.addf %343, %225 : vector<16x32xf32>
    %c1_154 = arith.constant 1 : index
    %c0_155 = arith.constant 0 : index
    %c0_156 = arith.constant 0 : index
    %345 = vector.load %arg12[%c1_154, %c0_155, %c0_156] : memref<2x1x32xf32, #tpu.memory_space<vmem>>, vector<1x1x32xf32>
    %346 = vector.shape_cast %345 : vector<1x1x32xf32> to vector<1x32xf32>
    %c1_157 = arith.constant 1 : index
    %c0_158 = arith.constant 0 : index
    %c0_159 = arith.constant 0 : index
    %347 = vector.load %arg13[%c1_157, %c0_158, %c0_159] : memref<2x1x32xf32, #tpu.memory_space<vmem>>, vector<1x1x32xf32>
    %348 = vector.shape_cast %347 : vector<1x1x32xf32> to vector<1x32xf32>
    %cst_160 = arith.constant dense<0.000000e+00> : vector<16xf32>
    %349 = vector.multi_reduction <add>, %344, %cst_160 [1] : vector<16x32xf32> to vector<16xf32>
    %350 = vector.shape_cast %349 : vector<16xf32> to vector<16x1xf32>
    %cst_161 = arith.constant 3.200000e+01 : f32
    %351 = vector.broadcast %cst_161 : f32 to vector<16x1xf32>
    %352 = arith.divf %350, %351 : vector<16x1xf32>
    %353 = vector.broadcast %352 : vector<16x1xf32> to vector<16x32xf32>
    %354 = arith.subf %344, %353 : vector<16x32xf32>
    %355 = arith.mulf %354, %354 : vector<16x32xf32>
    %cst_162 = arith.constant dense<0.000000e+00> : vector<16xf32>
    %356 = vector.multi_reduction <add>, %355, %cst_162 [1] : vector<16x32xf32> to vector<16xf32>
    %357 = vector.shape_cast %356 : vector<16xf32> to vector<16x1xf32>
    %cst_163 = arith.constant 3.200000e+01 : f32
    %358 = vector.broadcast %cst_163 : f32 to vector<16x1xf32>
    %359 = arith.divf %357, %358 : vector<16x1xf32>
    %360 = vector.broadcast %352 : vector<16x1xf32> to vector<16x32xf32>
    %361 = arith.subf %344, %360 : vector<16x32xf32>
    %cst_164 = arith.constant 9.99999996E-13 : f32
    %362 = vector.broadcast %cst_164 : f32 to vector<16x1xf32>
    %363 = arith.addf %359, %362 : vector<16x1xf32>
    %364 = math.rsqrt %363 : vector<16x1xf32>
    %365 = vector.broadcast %364 : vector<16x1xf32> to vector<16x32xf32>
    %366 = arith.mulf %361, %365 : vector<16x32xf32>
    %367 = vector.broadcast %346 : vector<1x32xf32> to vector<16x32xf32>
    %368 = arith.mulf %366, %367 : vector<16x32xf32>
    %369 = vector.broadcast %348 : vector<1x32xf32> to vector<16x32xf32>
    %370 = arith.addf %368, %369 : vector<16x32xf32>
    %371 = arith.truncf %370 : vector<16x32xf32> to vector<16x32xbf16>
    %c1_165 = arith.constant 1 : index
    %c0_166 = arith.constant 0 : index
    %c0_167 = arith.constant 0 : index
    %372 = vector.load %arg14[%c1_165, %c0_166, %c0_167] : memref<2x32x64xbf16, #tpu.memory_space<vmem>>, vector<1x32x64xbf16>
    %373 = vector.shape_cast %372 : vector<1x32x64xbf16> to vector<32x64xbf16>
    %cst_168 = arith.constant dense<0.000000e+00> : vector<16x64xf32>
    %374 = tpu.matmul %371, %373, %cst_168 {dimension_numbers = #tpu.dot_dimension_numbers<[1], [0], [0], [1], [0, 0, 1, 1], [], []>} : vector<16x32xbf16>, vector<32x64xbf16>, vector<16x64xf32> -> vector<16x64xf32>
    %c1_169 = arith.constant 1 : index
    %c0_170 = arith.constant 0 : index
    %c0_171 = arith.constant 0 : index
    %375 = vector.load %arg15[%c1_169, %c0_170, %c0_171] : memref<2x1x64xf32, #tpu.memory_space<vmem>>, vector<1x1x64xf32>
    %376 = vector.shape_cast %375 : vector<1x1x64xf32> to vector<1x64xf32>
    %377 = vector.broadcast %376 : vector<1x64xf32> to vector<16x64xf32>
    %378 = arith.addf %374, %377 : vector<16x64xf32>
    %cst_172 = arith.constant 5.000000e-01 : f32
    %379 = vector.broadcast %cst_172 : f32 to vector<16x64xf32>
    %380 = arith.mulf %379, %378 : vector<16x64xf32>
    %cst_173 = arith.constant 4.471500e-02 : f32
    %381 = vector.broadcast %cst_173 : f32 to vector<16x64xf32>
    %382 = arith.mulf %381, %378 : vector<16x64xf32>
    %383 = arith.mulf %382, %378 : vector<16x64xf32>
    %384 = arith.mulf %383, %378 : vector<16x64xf32>
    %385 = arith.addf %378, %384 : vector<16x64xf32>
    %cst_174 = arith.constant 0.797884583 : f32
    %386 = vector.broadcast %cst_174 : f32 to vector<16x64xf32>
    %387 = arith.mulf %386, %385 : vector<16x64xf32>
    %388 = math.tanh %387 : vector<16x64xf32>
    %cst_175 = arith.constant 1.000000e+00 : f32
    %389 = vector.broadcast %cst_175 : f32 to vector<16x64xf32>
    %390 = arith.addf %389, %388 : vector<16x64xf32>
    %391 = arith.mulf %380, %390 : vector<16x64xf32>
    %392 = arith.truncf %391 : vector<16x64xf32> to vector<16x64xbf16>
    %c1_176 = arith.constant 1 : index
    %c0_177 = arith.constant 0 : index
    %c0_178 = arith.constant 0 : index
    %393 = vector.load %arg16[%c1_176, %c0_177, %c0_178] : memref<2x64x32xbf16, #tpu.memory_space<vmem>>, vector<1x64x32xbf16>
    %394 = vector.shape_cast %393 : vector<1x64x32xbf16> to vector<64x32xbf16>
    %cst_179 = arith.constant dense<0.000000e+00> : vector<16x32xf32>
    %395 = tpu.matmul %392, %394, %cst_179 {dimension_numbers = #tpu.dot_dimension_numbers<[1], [0], [0], [1], [0, 0, 1, 1], [], []>} : vector<16x64xbf16>, vector<64x32xbf16>, vector<16x32xf32> -> vector<16x32xf32>
    %c1_180 = arith.constant 1 : index
    %c0_181 = arith.constant 0 : index
    %c0_182 = arith.constant 0 : index
    %396 = vector.load %arg17[%c1_180, %c0_181, %c0_182] : memref<2x1x32xf32, #tpu.memory_space<vmem>>, vector<1x1x32xf32>
    %397 = vector.shape_cast %396 : vector<1x1x32xf32> to vector<1x32xf32>
    %398 = vector.broadcast %397 : vector<1x32xf32> to vector<16x32xf32>
    %399 = arith.addf %395, %398 : vector<16x32xf32>
    %400 = arith.addf %399, %370 : vector<16x32xf32>
    %c1_183 = arith.constant 1 : index
    %c0_184 = arith.constant 0 : index
    %c0_185 = arith.constant 0 : index
    %401 = vector.load %arg18[%c1_183, %c0_184, %c0_185] : memref<2x1x32xf32, #tpu.memory_space<vmem>>, vector<1x1x32xf32>
    %402 = vector.shape_cast %401 : vector<1x1x32xf32> to vector<1x32xf32>
    %c1_186 = arith.constant 1 : index
    %c0_187 = arith.constant 0 : index
    %c0_188 = arith.constant 0 : index
    %403 = vector.load %arg19[%c1_186, %c0_187, %c0_188] : memref<2x1x32xf32, #tpu.memory_space<vmem>>, vector<1x1x32xf32>
    %404 = vector.shape_cast %403 : vector<1x1x32xf32> to vector<1x32xf32>
    %cst_189 = arith.constant dense<0.000000e+00> : vector<16xf32>
    %405 = vector.multi_reduction <add>, %400, %cst_189 [1] : vector<16x32xf32> to vector<16xf32>
    %406 = vector.shape_cast %405 : vector<16xf32> to vector<16x1xf32>
    %cst_190 = arith.constant 3.200000e+01 : f32
    %407 = vector.broadcast %cst_190 : f32 to vector<16x1xf32>
    %408 = arith.divf %406, %407 : vector<16x1xf32>
    %409 = vector.broadcast %408 : vector<16x1xf32> to vector<16x32xf32>
    %410 = arith.subf %400, %409 : vector<16x32xf32>
    %411 = arith.mulf %410, %410 : vector<16x32xf32>
    %cst_191 = arith.constant dense<0.000000e+00> : vector<16xf32>
    %412 = vector.multi_reduction <add>, %411, %cst_191 [1] : vector<16x32xf32> to vector<16xf32>
    %413 = vector.shape_cast %412 : vector<16xf32> to vector<16x1xf32>
    %cst_192 = arith.constant 3.200000e+01 : f32
    %414 = vector.broadcast %cst_192 : f32 to vector<16x1xf32>
    %415 = arith.divf %413, %414 : vector<16x1xf32>
    %416 = vector.broadcast %408 : vector<16x1xf32> to vector<16x32xf32>
    %417 = arith.subf %400, %416 : vector<16x32xf32>
    %cst_193 = arith.constant 9.99999996E-13 : f32
    %418 = vector.broadcast %cst_193 : f32 to vector<16x1xf32>
    %419 = arith.addf %415, %418 : vector<16x1xf32>
    %420 = math.rsqrt %419 : vector<16x1xf32>
    %421 = vector.broadcast %420 : vector<16x1xf32> to vector<16x32xf32>
    %422 = arith.mulf %417, %421 : vector<16x32xf32>
    %423 = vector.broadcast %402 : vector<1x32xf32> to vector<16x32xf32>
    %424 = arith.mulf %422, %423 : vector<16x32xf32>
    %425 = vector.broadcast %404 : vector<1x32xf32> to vector<16x32xf32>
    %426 = arith.addf %424, %425 : vector<16x32xf32>
    %427 = vector.extract_strided_slice %426 {offsets = [0, 0], sizes = [1, 32], strides = [1, 1]} : vector<16x32xf32> to vector<1x32xf32>
    %428 = vector.extract_strided_slice %426 {offsets = [8, 0], sizes = [1, 32], strides = [1, 1]} : vector<16x32xf32> to vector<1x32xf32>
    %429 = tpu.concatenate %427, %428 in 0 : vector<1x32xf32>, vector<1x32xf32> -> vector<2x32xf32>
    %430 = arith.truncf %429 : vector<2x32xf32> to vector<2x32xbf16>
    %c0_194 = arith.constant 0 : index
    %c0_195 = arith.constant 0 : index
    %431 = vector.load %arg20[%c0_194, %c0_195] : memref<32x32xbf16, #tpu.memory_space<vmem>>, vector<32x32xbf16>
    %cst_196 = arith.constant dense<0.000000e+00> : vector<2x32xf32>
    %432 = tpu.matmul %430, %431, %cst_196 {dimension_numbers = #tpu.dot_dimension_numbers<[1], [0], [0], [1], [0, 0, 1, 1], [], []>} : vector<2x32xbf16>, vector<32x32xbf16>, vector<2x32xf32> -> vector<2x32xf32>
    %c0_197 = arith.constant 0 : index
    %c0_198 = arith.constant 0 : index
    %433 = vector.load %arg21[%c0_197, %c0_198] : memref<1x32xf32, #tpu.memory_space<vmem>>, vector<1x32xf32>
    %434 = vector.broadcast %433 : vector<1x32xf32> to vector<2x32xf32>
    %435 = arith.addf %432, %434 : vector<2x32xf32>
    %436 = math.tanh %435 : vector<2x32xf32>
    %437 = arith.truncf %436 : vector<2x32xf32> to vector<2x32xbf16>
    %c0_199 = arith.constant 0 : index
    %c0_200 = arith.constant 0 : index
    %438 = vector.load %arg22[%c0_199, %c0_200] : memref<32x2xbf16, #tpu.memory_space<vmem>>, vector<32x2xbf16>
    %cst_201 = arith.constant dense<0.000000e+00> : vector<2x2xf32>
    %439 = tpu.matmul %437, %438, %cst_201 {dimension_numbers = #tpu.dot_dimension_numbers<[1], [0], [0], [1], [0, 0, 1, 1], [], []>} : vector<2x32xbf16>, vector<32x2xbf16>, vector<2x2xf32> -> vector<2x2xf32>
    %c0_202 = arith.constant 0 : index
    %c0_203 = arith.constant 0 : index
    %440 = vector.load %arg23[%c0_202, %c0_203] : memref<1x2xf32, #tpu.memory_space<vmem>>, vector<1x2xf32>
    %441 = vector.broadcast %440 : vector<1x2xf32> to vector<2x2xf32>
    %442 = arith.addf %439, %441 : vector<2x2xf32>
    %cst_204 = arith.constant dense<0xFF800000> : vector<2xf32>
    %443 = vector.multi_reduction <maximumf>, %442, %cst_204 [1] : vector<2x2xf32> to vector<2xf32>
    %444 = vector.shape_cast %443 : vector<2xf32> to vector<2x1xf32>
    %445 = vector.broadcast %444 : vector<2x1xf32> to vector<2x2xf32>
    %446 = arith.subf %442, %445 : vector<2x2xf32>
    %447 = math.exp %446 : vector<2x2xf32>
    %cst_205 = arith.constant dense<0.000000e+00> : vector<2xf32>
    %448 = vector.multi_reduction <add>, %447, %cst_205 [1] : vector<2x2xf32> to vector<2xf32>
    %449 = vector.shape_cast %448 : vector<2xf32> to vector<2x1xf32>
    %450 = vector.broadcast %449 : vector<2x1xf32> to vector<2x2xf32>
    %451 = arith.divf %447, %450 : vector<2x2xf32>
    %c0_206 = arith.constant 0 : index
    %c0_207 = arith.constant 0 : index
    %452 = vector.load %arg24[%c0_206, %c0_207] : memref<2x2xf32, #tpu.memory_space<vmem>>, vector<2x2xf32>
    tpu.vector_store %arg24[%c0_206, %c0_207], %442 {strides = array<i32>} : memref<2x2xf32, #tpu.memory_space<vmem>>, vector<2x2xf32>,
    %c0_208 = arith.constant 0 : index
    %c0_209 = arith.constant 0 : index
    %453 = vector.load %arg25[%c0_208, %c0_209] : memref<2x2xf32, #tpu.memory_space<vmem>>, vector<2x2xf32>
    tpu.vector_store %arg25[%c0_208, %c0_209], %451 {strides = array<i32>} : memref<2x2xf32, #tpu.memory_space<vmem>>, vector<2x2xf32>,
    return
  }
}

</mosaic_0001>

<bundles_post_ra>
// kernel: bert_forward.1
= control target key start
LH: loop header
LB: loop body
LE: loop exit
PB: predicated region body
PF: predicated region fallthrough
CT: control target
= control target key end

     0   :  { %s4807_s0 = inlined_call_operand.vmem [shape: f32[16,32], index: 0, kind: input, shape index: {}]   ;;  %s4808_s1 = inlined_call_operand.vmem [shape: f32[2,1,8], index: 1, kind: input, shape index: {}]   ;;  %s4809_s2 = inlined_call_operand.vmem [shape: f32[1,32], index: 2, kind: input, shape index: {}]   ;;  %s4810_s3 = inlined_call_operand.vmem [shape: f32[1,32], index: 3, kind: input, shape index: {}]   ;;  %s4811_s4 = inlined_call_operand.vmem [shape: bf16[2,32,32], index: 4, kind: input, shape index: {}]   ;;  %s4812_s5 = inlined_call_operand.vmem [shape: f32[2,1,32], index: 5, kind: input, shape index: {}]   ;;  %s4813_s6 = inlined_call_operand.vmem [shape: bf16[2,32,32], index: 6, kind: input, shape index: {}]   ;;  %s4814_s7 = inlined_call_operand.vmem [shape: f32[2,1,32], index: 7, kind: input, shape index: {}]   ;;  %s4815_s8 = inlined_call_operand.vmem [shape: bf16[2,32,32], index: 8, kind: input, shape index: {}]   ;;  %s4816_s9 = inlined_call_operand.vmem [shape: f32[2,1,32], index: 9, kind: input, shape index: {}]   ;;  %s4817_s10 = inlined_call_operand.vmem [shape: bf16[2,32,32], index: 10, kind: input, shape index: {}]   ;;  %s4818_s11 = inlined_call_operand.vmem [shape: f32[2,1,32], index: 11, kind: input, shape index: {}]   ;;  %s4819_s12 = inlined_call_operand.vmem [shape: f32[2,1,32], index: 12, kind: input, shape index: {}]   ;;  %s4820_s13 = inlined_call_operand.vmem [shape: f32[2,1,32], index: 13, kind: input, shape index: {}]   ;;  %s4821_s14 = inlined_call_operand.vmem [shape: bf16[2,32,64], index: 14, kind: input, shape index: {}]   ;;  %s4822_s15 = inlined_call_operand.vmem [shape: f32[2,1,64], index: 15, kind: input, shape index: {}]   ;;  %s4823_s16 = inlined_call_operand.vmem [shape: bf16[2,64,32], index: 16, kind: input, shape index: {}]   ;;  %s4824_s17 = inlined_call_operand.vmem [shape: f32[2,1,32], index: 17, kind: input, shape index: {}]   ;;  %s4825_s18 = inlined_call_operand.vmem [shape: f32[2,1,32], index: 18, kind: input, shape index: {}]   ;;  %s4826_s19 = inlined_call_operand.vmem [shape: f32[2,1,32], index: 19, kind: input, shape index: {}]   ;;  %s4827_s20 = inlined_call_operand.vmem [shape: bf16[32,32], index: 20, kind: input, shape index: {}]   ;;  %s4828_s21 = inlined_call_operand.vmem [shape: f32[1,32], index: 21, kind: input, shape index: {}]   ;;  %s4829_s22 = inlined_call_operand.vmem [shape: bf16[32,2], index: 22, kind: input, shape index: {}]   ;;  %s4830_s23 = inlined_call_operand.vmem [shape: f32[1,2], index: 23, kind: input, shape index: {}]   ;;  %s4831_s24 = inlined_call_operand.hbm [shape: f32[2,2], index: 24, kind: output, shape index: {0}]   ;;  %s4832_s25 = inlined_call_operand.hbm [shape: f32[2,2], index: 25, kind: output, shape index: {1}]  }
   0x1   :  { %4850 = sst [smem:[#allocation8_spill]] %s4807_s0 }
   0x2   :  { %4851 = sst [smem:[#allocation9_spill]] %s4808_s1 }
   0x3   :  { %4852 = sst [smem:[#allocation10_spill]] %s4809_s2 }
   0x4   :  { %4853 = sst [smem:[#allocation11_spill]] %s4810_s3 }
   0x5   :  { %4854 = sst [smem:[#allocation12_spill]] %s4811_s4 }
   0x6   :  { %4855 = sst [smem:[#allocation13_spill]] %s4812_s5 }
   0x7   :  { %4856 = sst [smem:[#allocation14_spill]] %s4813_s6 }
   0x8   :  { %4857 = sst [smem:[#allocation15_spill]] %s4814_s7 }
   0x9   :  { %4858 = sst [smem:[#allocation16_spill]] %s4815_s8 }
   0xa   :  { %4859 = sst [smem:[#allocation17_spill]] %s4816_s9 }
   0xb   :  { %31 = vsyncpa [#allocation3], 0  ;;  %s4860_s6 = sld [smem:[#allocation8_spill]]  ;;  %vm86_vm0 = vcmask 261120  }
  0x11   :  { %v82_v0 = vld [vmem:[%s4860_s6] sm:$0xff]  ;;  %v83_v1 = vld [vmem:[%s4860_s6 + $0x8] sm:$0xff] }
  0x12   :  { %v87_v2 = vsel %vm86_vm0, %v82_v0, 0.0  ;;  %v90_v3 = vsel %vm86_vm0, %v83_v1, 0.0 }
  0x13   :  { %88 = vadd.xlane.f32.xlu0 %v87_v2 }
  0x17   :  { %91 = vadd.xlane.f32.xlu0 %v90_v3 }
  0x18   :  { %32 = vsyncpa [#allocation5], 0  ;;  %s4861_s1 = sld [smem:[#allocation12_spill]]  ;;  %s4862_s4 = sld [smem:[#allocation14_spill]]  ;;  %v4011_v16 = vmov 0.0   ;;  %vm4012_vm1 = vmmov 0  }
  0x19   :  { %3479 = vmatprep.subr.bf16.mxu0 %v4011_v16  ;;  %3487 = vmatprep.subr.bf16.mxu1 %v4011_v16  ;;  %s4863_s6 = sld [smem:[#allocation10_spill]]  ;;  %s4864_s3 = sld [smem:[#allocation11_spill]]  ;;  %vm338_vm2 = vcmask 64512   ;;  %vm838_vm3 = vcmask 1043456   ;;  %vm1044_vm4 = vcmask 130048   ;;  %vm1046_vm5 = vcmask 195584  }
  0x1a   :  { %3483 = vmatprep.mubr.msk.bf16.mxu0 %vm4012_vm1, %v4011_v16  ;;  %3491 = vmatprep.mubr.msk.bf16.mxu1 %vm4012_vm1, %v4011_v16  ;;  %s4865_s27 = sld [smem:[#allocation16_spill]]  ;;  %s4866_s29 = sld [smem:[#allocation13_spill]]  ;;  %vm1498_vm6 = vcmask 523264   ;;  %vm3047_vm7 = vcmask 1040384   ;;  %vm3184_vm8 = vcmask 9216  }
  0x1b   :  { %s4867_s30 = sld [smem:[#allocation15_spill]]  ;;  %s4844_s7 = smov 112  }
  0x1c   :  { %s4868_s28 = sld [smem:[#allocation17_spill]]  ;;  %s4846_s9 = smov 104  }
  0x1d   :  { %s4869_s2 = sld [smem:[#allocation9_spill]]  ;;  %s4843_s26 = smov 8  }
  0x1e   :  { %v3831_v14 = vld [vmem:[%s4861_s1] sm:$0xff]   ;;  %v3833_v17 = vld [vmem:[%s4861_s1 + $0x8] sm:$0xff]   ;;  %s4842_s8 = smov 16   ;;  %s4841_s5 = smov 24  }
  0x1f   :  { %v3832_v15 = vld [vmem:[%s4862_s4] sm:$0xff]   ;;  %3480 = vmatpush3.bf16.msra.mxu0 %v3831_v14  ;;  %v3834_v18 = vld [vmem:[%s4862_s4 + $0x8] sm:$0xff]   ;;  %s4871_s0 = smov 104  }
  0x20   :  { %3488 = vmatpush3.bf16.msra.mxu1 %v3832_v15  ;;  %3481 = vmatprep.subr.bf16.mxu0 %v4011_v16  ;;  %v3226_v27 = vld [vmem:[%s4863_s6] ss:$0 sm:$0xff]  ;;  %v3836_v37 = vld [vmem:[%s4865_s27 + $0x8] sm:$0xff]  }
  0x21   :  { %3489 = vmatprep.subr.bf16.mxu1 %v4011_v16  ;;  %v3227_v31 = vld [vmem:[%s4864_s3] ss:$0 sm:$0xff]  ;;  %s4848_s3 = smov 120  }
  0x22   :  { %v3835_v35 = vld [vmem:[%s4865_s27] sm:$0xff]  }
  0x23   :  { %3482 = vmatpush3.bf16.msra.mxu0 %v3833_v17  ;;  %v3228_v38 = vld [vmem:[%s4866_s29] ss:$0 sm:$0xff] }
  0x24   :  { %3490 = vmatpush3.bf16.msra.mxu1 %v3834_v18  ;;  %3495 = vmatprep.subr.bf16.mxu0 %v4011_v16  ;;  %v3232_v40 = vld [vmem:[%s4867_s30] ss:$0 sm:$0xff] }
  0x25   :  { %3503 = vmatprep.subr.bf16.mxu1 %v4011_v16  ;;  %v3236_v57 = vld [vmem:[%s4868_s28] ss:$0 sm:$0xff] }
  0xa0   :  { %v89_v4 = vpop.xlane.xlu0 %88 }
  0xa1   :  { %v94_v5 = vmul.f32 0.03125, %v89_v4 }
  0xa3   :  { %v96_v6 = vsub.f32 %v82_v0, %v94_v5 }
  0xa4   :  { %v92_v7 = vpop.xlane.xlu0 %91 }
  0xa5   :  { %v95_v8 = vmul.f32 0.03125, %v92_v7  ;;  %v98_v9 = vmul.f32 %v96_v6, %v96_v6 }
  0xa7   :  { %v97_v10 = vsub.f32 %v83_v1, %v95_v8  ;;  %v100_v11 = vsel %vm86_vm0, %v98_v9, 0.0 }
  0xa8   :  { %101 = vadd.xlane.f32.xlu1 %v100_v11 }
  0xa9   :  { %v99_v12 = vmul.f32 %v97_v10, %v97_v10 }
  0xab   :  { %v103_v13 = vsel %vm86_vm0, %v99_v12, 0.0 }
  0xac   :  { %104 = vadd.xlane.f32.xlu1 %v103_v13 }
 0x135   :  { %v102_v19 = vpop.xlane.xlu1 %101 }
 0x136   :  { %v106_v20 = vmul.f32 0.03125, %v102_v19 }
 0x138   :  { %v108_v21 = vadd.f32 1e-12, %v106_v20 }
 0x139   :  { %v105_v22 = vpop.xlane.xlu1 %104 }
 0x13a   :  { %3863 = vrsqrt.f32 %v108_v21  ;;  %v107_v23 = vmul.f32 0.03125, %v105_v22 }
 0x13c   :  { %v109_v24 = vadd.f32 1e-12, %v107_v23 }
 0x13e   :  { %3865 = vrsqrt.f32 %v109_v24  ;;  %v3240_v24 = vld [vmem:[%s4869_s2] ss:$0 sm:$0xff] }
 0x144   :  { %v3864_v25 = vpop.eup %3863 }
 0x145   :  { %v112_v26 = vmul.f32 %v3864_v25, %v96_v6 }
 0x147   :  { %v120_v30 = vmul.f32 %v3226_v27, %v112_v26 }
 0x148   :  { %v3866_v28 = vpop.eup %3865 }
 0x149   :  { %v113_v29 = vmul.f32 %v3866_v28, %v97_v10  ;;  %v4189_v33 = vadd.f32 %v3227_v31, %v120_v30 }
 0x14b   :  { %v121_v32 = vmul.f32 %v3226_v27, %v113_v29 }
 0x14d   :  { %v4191_v34 = vadd.f32 %v3227_v31, %v121_v32 }
 0x14f   :  { %v130_v36 = vpack.c.bf16 %v4191_v34, %v4189_v33 }
 0x151   :  { %3484 = vmatmul.mubr.msk.bf16.vlgmr.msra.gmra.mrb[0].mxu0 %vm86_vm0, %v130_v36  ;;  %3492 = vmatmul.mubr.msk.bf16.vlgmr.msra.gmra.mrb[0].mxu1 %vm86_vm0, %v130_v36 }
 0x152   :  { %3496 = vmatpush3.bf16.msra.mxu0 %v3835_v35  ;;  %3499 = vmatprep.mubr.msk.bf16.mxu0 %vm4012_vm1, %v4011_v16 }
 0x153   :  { %3497 = vmatprep.subr.bf16.mxu0 %v4011_v16  ;;  %3505 = vmatprep.mubr.msk.bf16.mxu1 %vm4012_vm1, %v4011_v16 }
 0x156   :  { %3498 = vmatpush3.bf16.msra.mxu0 %v3836_v37 }
 0x157   :  { %3509 = vmatprep.subr.bf16.mxu0 %v4011_v16 }
 0x159   :  { %3500 = vmatmul.mubr.msk.bf16.vlgmr.msra.gmra.mrb[4].mxu0 %vm86_vm0, %v130_v36 }
 0x15a   :  { %3511 = vmatprep.mubr.msk.bf16.mxu0 %vm4012_vm1, %v4011_v16 }
 0x224   :  { %v191_v39 = vpop.f32.mrb[0].mxu0  ;;  %v255_v41 = vpop.f32.mrb[0].mxu1 }
 0x225   :  { %v192_v42 = vadd.f32 %v3228_v38, %v191_v39  ;;  %v3485_v43 = vpop.f32.mrb[1].mxu0  ;;  %v3493_v44 = vpop.f32.mrb[1].mxu1  ;;  %v256_v47 = vadd.f32 %v3232_v40, %v255_v41 }
 0x226   :  { %v194_v45 = vpop.f32.mrb[2].mxu0  ;;  %v258_v46 = vpop.f32.mrb[2].mxu1 }
 0x227   :  { %v195_v48 = vadd.f32 %v3228_v38, %v194_v45  ;;  %v259_v49 = vadd.f32 %v3232_v40, %v258_v46  ;;  %v3486_v50 = vpop.f32.mrb[3].mxu0  ;;  %v3494_v51 = vpop.f32.mrb[3].mxu1  ;;  %v326_v52 = vmul.f32 0.35355338, %v192_v42  ;;  %v3246_v46 = vld [vmem:[%s4869_s2 + $0x1] ss:$0 sm:$0xff] }
 0x229   :  { %v327_v53 = vmul.f32 0.35355338, %v195_v48  ;;  %v329_v54 = vpack.c.bf16 %v259_v49, %v256_v47 }
 0x22b   :  { %v328_v55 = vpack.c.bf16 %v327_v53, %v326_v52  ;;  %439 = vrot.lane.b32.xlu1 %v329_v54, %s4844_s7  ;;  %389 = vrot.lane.b32.xlu0 %v329_v54, %s4848_s3  ;;  %v343_v56 = vsel %vm338_vm2, %v329_v54, 0  ;;  %v546_v1 = vrot.slane %v329_v54, 4 }
 0x22c   :  { %v319_v58 = vpop.f32.mrb[4].mxu0  ;;  %3504 = vmatpush3.bf16.xpose.msra.mxu1 %v343_v56 }
 0x22d   :  { %v3501_v59 = vpop.f32.mrb[5].mxu0  ;;  %3515 = vmatprep.subr.bf16.mxu1 %v4011_v16  ;;  %v320_v61 = vadd.f32 %v3236_v57, %v319_v58  ;;  %v545_v2 = vrot.slane %v328_v55, 4  ;;  %v551_v12 = vsel %vm338_vm2, %v546_v1, 0 }
 0x22e   :  { %v322_v60 = vpop.f32.mrb[6].mxu0 }
 0x22f   :  { %v323_v62 = vadd.f32 %v3236_v57, %v322_v60  ;;  %437 = vrot.lane.b32.xlu0 %v328_v55, %s4844_s7  ;;  %386 = vrot.lane.b32.xlu1 %v328_v55, %s4848_s3  ;;  %v3502_v63 = vpop.f32.mrb[7].mxu0 }
 0x231   :  { %v4227_v0 = vpack.c.bf16 %v323_v62, %v320_v61 }
 0x233   :  { %595 = vrot.lane.b32.xlu0 %v546_v1, %s4848_s3  ;;  %489 = vrot.lane.b32.xlu1 %v329_v54, %s4846_s9  ;;  %v840_v22 = vsel %vm838_vm3, %v4227_v0, 0 }
 0x234   :  { %3506 = vmatmul.mubr.msk.bf16.vlgmr.msra.gmra.mrb[4].mxu1 %vm338_vm2, %v328_v55 }
 0x235   :  { %3517 = vmatprep.mubr.msk.bf16.mxu1 %vm4012_vm1, %v4011_v16 }
 0x237   :  { %645 = vrot.lane.b32.xlu0 %v546_v1, %s4844_s7  ;;  %487 = vrot.lane.b32.xlu1 %v328_v55, %s4846_s9 }
 0x23b   :  { %643 = vrot.lane.b32.xlu0 %v545_v2, %s4844_s7  ;;  %593 = vrot.lane.b32.xlu1 %v545_v2, %s4848_s3 }
 0x23f   :  { %695 = vrot.lane.b32.xlu1 %v546_v1, %s4846_s9 }
 0x243   :  { %693 = vrot.lane.b32.xlu1 %v545_v2, %s4846_s9 }
 0x29d   :  { %v440_v3 = vpop.permute.xlu1 %439  ;;  %v390_v4 = vpop.permute.xlu0 %389 }
 0x29e   :  { %v445_v5 = vsel %vm338_vm2, %v440_v3, 0  ;;  %v395_v6 = vsel %vm338_vm2, %v390_v4, 0 }
 0x29f   :  { %3510 = vmatpush3.bf16.xpose.msra.mxu0 %v395_v6  ;;  %3516 = vmatpush3.bf16.xpose.msra.mxu1 %v445_v5 }
 0x2a0   :  { %3521 = vmatprep.subr.bf16.mxu0 %v4011_v16  ;;  %3527 = vmatprep.subr.bf16.mxu1 %v4011_v16 }
 0x2a1   :  { %v438_v7 = vpop.permute.xlu0 %437  ;;  %v387_v8 = vpop.permute.xlu1 %386 }
 0x2a5   :  { %v596_v9 = vpop.permute.xlu0 %595  ;;  %v490_v10 = vpop.permute.xlu1 %489 }
 0x2a6   :  { %v495_v11 = vsel %vm338_vm2, %v490_v10, 0  ;;  %3512 = vmatmul.mubr.msk.bf16.vlgmr.msra.gmra.mrb[8].mxu0 %vm338_vm2, %v387_v8  ;;  %3518 = vmatmul.mubr.msk.bf16.vlgmr.msra.gmra.mrb[8].mxu1 %vm338_vm2, %v438_v7  ;;  %v601_v17 = vsel %vm338_vm2, %v596_v9, 0 }
 0x2a7   :  { %3522 = vmatpush3.bf16.xpose.msra.mxu0 %v495_v11  ;;  %3528 = vmatpush3.bf16.xpose.msra.mxu1 %v551_v12 }
 0x2a8   :  { %3523 = vmatprep.mubr.msk.bf16.mxu0 %vm4012_vm1, %v4011_v16  ;;  %3529 = vmatprep.mubr.msk.bf16.mxu1 %vm4012_vm1, %v4011_v16 }
 0x2a9   :  { %v488_v13 = vpop.permute.xlu1 %487  ;;  %3533 = vmatprep.subr.bf16.mxu0 %v4011_v16  ;;  %3539 = vmatprep.subr.bf16.mxu1 %v4011_v16  ;;  %v646_v14 = vpop.permute.xlu0 %645 }
 0x2aa   :  { %v651_v18 = vsel %vm338_vm2, %v646_v14, 0 }
 0x2ad   :  { %v594_v15 = vpop.permute.xlu1 %593  ;;  %v644_v20 = vpop.permute.xlu0 %643 }
 0x2ae   :  { %3524 = vmatmul.mubr.msk.bf16.vlgmr.msra.gmra.mrb[12].mxu0 %vm338_vm2, %v488_v13  ;;  %3530 = vmatmul.mubr.msk.bf16.vlgmr.msra.gmra.mrb[12].mxu1 %vm338_vm2, %v545_v2 }
 0x2af   :  { %3534 = vmatpush3.bf16.xpose.msra.mxu0 %v601_v17  ;;  %3540 = vmatpush3.bf16.xpose.msra.mxu1 %v651_v18 }
 0x2b0   :  { %3535 = vmatprep.mubr.msk.bf16.mxu0 %vm4012_vm1, %v4011_v16  ;;  %3541 = vmatprep.mubr.msk.bf16.mxu1 %vm4012_vm1, %v4011_v16 }
 0x2b1   :  { %3545 = vmatprep.subr.bf16.mxu0 %v4011_v16  ;;  %3551 = vmatprep.subr.bf16.mxu1 %v4011_v16  ;;  %v696_v19 = vpop.permute.xlu1 %695 }
 0x2b2   :  { %v701_v21 = vsel %vm338_vm2, %v696_v19, 0 }
 0x2b5   :  { %v694_v23 = vpop.permute.xlu1 %693 }
 0x2b6   :  { %3536 = vmatmul.mubr.msk.bf16.vlgmr.msra.gmra.mrb[16].mxu0 %vm338_vm2, %v594_v15  ;;  %3542 = vmatmul.mubr.msk.bf16.vlgmr.msra.gmra.mrb[16].mxu1 %vm338_vm2, %v644_v20 }
 0x2b7   :  { %3546 = vmatpush3.bf16.xpose.msra.mxu0 %v701_v21  ;;  %3552 = vmatpush3.bf16.msra.mxu1 %v840_v22 }
 0x2b8   :  { %3547 = vmatprep.mubr.msk.bf16.mxu0 %vm4012_vm1, %v4011_v16  ;;  %3557 = vmatprep.subr.bf16.mxu0 %v4011_v16 }
 0x2b9   :  { %3553 = vmatprep.mubr.msk.bf16.mxu1 %vm4012_vm1, %v4011_v16  ;;  %3563 = vmatprep.subr.bf16.mxu1 %v4011_v16 }
 0x2be   :  { %3548 = vmatmul.mubr.msk.bf16.vlgmr.msra.gmra.mrb[20].mxu0 %vm338_vm2, %v694_v23 }
 0x2bf   :  { %3559 = vmatprep.mubr.msk.bf16.mxu0 %vm4012_vm1, %v4011_v16 }
 0x307   :  { %v379_v25 = vpop.f32.mrb[4].mxu1 }
 0x308   :  { %v380_v26 = vadd.f32 %v3240_v24, %v379_v25  ;;  %v3507_v27 = vpop.f32.mrb[5].mxu1 }
 0x309   :  { %v382_v28 = vpop.f32.mrb[6].mxu1 }
 0x30a   :  { %v3508_v29 = vpop.f32.mrb[7].mxu1  ;;  %v743_v30 = vsel %vm338_vm2, %v380_v26, -inf }
 0x30b   :  { %744 = vmax.xlane.f32.xlu0 %v743_v30  ;;  %v4311_v30 = vrot.slane %v4227_v0, 4 }
 0x379   :  { %v431_v31 = vpop.f32.mrb[8].mxu0  ;;  %v481_v32 = vpop.f32.mrb[8].mxu1 }
 0x37a   :  { %v432_v35 = vadd.f32 %v3240_v24, %v431_v31  ;;  %v482_v36 = vadd.f32 %v3240_v24, %v481_v32  ;;  %v3513_v37 = vpop.f32.mrb[9].mxu0  ;;  %v3519_v38 = vpop.f32.mrb[9].mxu1 }
 0x37b   :  { %v434_v39 = vpop.f32.mrb[10].mxu0  ;;  %v484_v40 = vpop.f32.mrb[10].mxu1 }
 0x37c   :  { %v3514_v41 = vpop.f32.mrb[11].mxu0  ;;  %v3520_v42 = vpop.f32.mrb[11].mxu1  ;;  %v749_v43 = vsel %vm338_vm2, %v482_v36, -inf  ;;  %v746_v44 = vsel %vm338_vm2, %v432_v35, -inf }
 0x37d   :  { %750 = vmax.xlane.f32.xlu0 %v749_v43  ;;  %747 = vmax.xlane.f32.xlu1 %v746_v44 }
 0x381   :  { %v531_v45 = vpop.f32.mrb[12].mxu0  ;;  %v587_v47 = vpop.f32.mrb[12].mxu1 }
 0x382   :  { %v4287_v48 = vadd.f32 %v3240_v24, %v531_v45  ;;  %v3525_v49 = vpop.f32.mrb[13].mxu0  ;;  %v3531_v50 = vpop.f32.mrb[13].mxu1  ;;  %v588_v53 = vadd.f32 %v3246_v46, %v587_v47 }
 0x383   :  { %v534_v51 = vpop.f32.mrb[14].mxu0  ;;  %v590_v52 = vpop.f32.mrb[14].mxu1 }
 0x384   :  { %v3526_v54 = vpop.f32.mrb[15].mxu0  ;;  %v3532_v55 = vpop.f32.mrb[15].mxu1  ;;  %v752_v56 = vsel %vm338_vm2, %v4287_v48, -inf  ;;  %v755_v57 = vsel %vm338_vm2, %v588_v53, -inf }
 0x385   :  { %753 = vmax.xlane.f32.xlu0 %v752_v56 }
 0x389   :  { %v687_v58 = vpop.f32.mrb[16].mxu1  ;;  %756 = vmax.xlane.f32.xlu0 %v755_v57  ;;  %v637_v59 = vpop.f32.mrb[16].mxu0 }
 0x38a   :  { %v688_v60 = vadd.f32 %v3246_v46, %v687_v58  ;;  %v638_v61 = vadd.f32 %v3246_v46, %v637_v59  ;;  %v3537_v62 = vpop.f32.mrb[17].mxu0  ;;  %v3543_v63 = vpop.f32.mrb[17].mxu1 }
 0x38b   :  { %v640_v1 = vpop.f32.mrb[18].mxu0  ;;  %v690_v2 = vpop.f32.mrb[18].mxu1 }
 0x38c   :  { %v3538_v3 = vpop.f32.mrb[19].mxu0  ;;  %v3544_v4 = vpop.f32.mrb[19].mxu1  ;;  %v761_v5 = vsel %vm338_vm2, %v688_v60, -inf  ;;  %v758_v6 = vsel %vm338_vm2, %v638_v61, -inf }
 0x38d   :  { %762 = vmax.xlane.f32.xlu0 %v761_v5  ;;  %759 = vmax.xlane.f32.xlu1 %v758_v6 }
 0x391   :  { %v737_v7 = vpop.f32.mrb[20].mxu0 }
 0x392   :  { %v738_v8 = vadd.f32 %v3246_v46, %v737_v7  ;;  %v3549_v9 = vpop.f32.mrb[21].mxu0 }
 0x393   :  { %v740_v10 = vpop.f32.mrb[22].mxu0 }
 0x394   :  { %v3550_v11 = vpop.f32.mrb[23].mxu0  ;;  %v764_v12 = vsel %vm338_vm2, %v738_v8, -inf }
 0x395   :  { %765 = vmax.xlane.f32.xlu1 %v764_v12 }
 0x398   :  { %v745_v13 = vpop.xlane.xlu0 %744 }
 0x399   :  { %v767_v14 = vsub.f32 %v380_v26, %v745_v13 }
 0x39b   :  { %v775_v15 = vmul.f32 1.442695, %v767_v14 }
 0x39d   :  { %3867 = vpow2.f32 %v775_v15 }
 0x3a7   :  { %v4295_v17 = vpop.eup %3867 }
 0x3a8   :  { %v791_v18 = vsel %vm338_vm2, %v4295_v17, 0.0 }
 0x3a9   :  { %792 = vadd.xlane.f32.xlu0 %v791_v18 }
 0x40a   :  { %v751_v19 = vpop.xlane.xlu0 %750  ;;  %v748_v20 = vpop.xlane.xlu1 %747 }
 0x40b   :  { %v769_v21 = vsub.f32 %v482_v36, %v751_v19  ;;  %v768_v22 = vsub.f32 %v432_v35, %v748_v20 }
 0x40d   :  { %v779_v23 = vmul.f32 1.442695, %v769_v21  ;;  %v777_v24 = vmul.f32 1.442695, %v768_v22 }
 0x40f   :  { %3869 = vpow2.f32 %v779_v23  ;;  %v1053_v23 = vsel %vm838_vm3, %v4311_v30, 0 }
 0x410   :  { %3871 = vpow2.f32 %v777_v24 }
 0x412   :  { %v754_v29 = vpop.xlane.xlu0 %753 }
 0x413   :  { %v770_v39 = vsub.f32 %v4287_v48, %v754_v29 }
 0x415   :  { %v781_v41 = vmul.f32 1.442695, %v770_v39 }
 0x416   :  { %v757_v31 = vpop.xlane.xlu0 %756 }
 0x417   :  { %v771_v32 = vsub.f32 %v588_v53, %v757_v31 }
 0x419   :  { %v4299_v25 = vpop.eup %3869  ;;  %v783_v36 = vmul.f32 1.442695, %v771_v32 }
 0x41a   :  { %v3872_v27 = vpop.eup %3871  ;;  %v797_v26 = vsel %vm338_vm2, %v4299_v25, 0.0  ;;  %v763_v35 = vpop.xlane.xlu0 %762 }
 0x41b   :  { %798 = vadd.xlane.f32.xlu0 %v797_v26  ;;  %v794_v28 = vsel %vm338_vm2, %v3872_v27, 0.0  ;;  %v773_v37 = vsub.f32 %v688_v60, %v763_v35  ;;  %3873 = vpow2.f32 %v783_v36  ;;  %v760_v40 = vpop.xlane.xlu1 %759 }
 0x41c   :  { %795 = vadd.xlane.f32.xlu1 %v794_v28  ;;  %v772_v42 = vsub.f32 %v638_v61, %v760_v40 }
 0x41d   :  { %v787_v38 = vmul.f32 1.442695, %v773_v37 }
 0x41f   :  { %3875 = vpow2.f32 %v787_v38 }
 0x420   :  { %3877 = vpow2.f32 %v781_v41 }
 0x422   :  { %v766_v43 = vpop.xlane.xlu1 %765 }
 0x423   :  { %v774_v44 = vsub.f32 %v738_v8, %v766_v43 }
 0x425   :  { %v4316_v45 = vpop.eup %3873  ;;  %v789_v46 = vmul.f32 1.442695, %v774_v44 }
 0x426   :  { %v803_v47 = vsel %vm338_vm2, %v4316_v45, 0.0 }
 0x429   :  { %v4320_v49 = vpop.eup %3875 }
 0x42a   :  { %v809_v48 = vsel %vm338_vm2, %v4320_v49, 0.0  ;;  %v3878_v50 = vpop.eup %3877 }
 0x42b   :  { %v800_v51 = vsel %vm338_vm2, %v3878_v50, 0.0 }
 0x42d   :  { %933 = vrot.lane.b32.xlu1 %v4227_v0, %s4844_s7 }
 0x431   :  { %983 = vrot.lane.b32.xlu1 %v4227_v0, %s4846_s9  ;;  %885 = vrot.lane.b32.xlu0 %v4227_v0, %s4848_s3  ;;  %v785_v0 = vmul.f32 1.442695, %v772_v42 }
 0x433   :  { %3879 = vpow2.f32 %v785_v0 }
 0x434   :  { %3881 = vpow2.f32 %v789_v46 }
 0x435   :  { %1097 = vrot.lane.b32.xlu1 %v4311_v30, %s4848_s3 }
 0x436   :  { %v793_v56 = vpop.xlane.xlu0 %792 }
 0x437   :  { %3883 = vrcp.f32 %v793_v56  ;;  %v3837_v56 = vld [vmem:[%s4817_s10] sm:$0xff]  }
 0x43d   :  { %v3880_v52 = vpop.eup %3879 }
 0x43e   :  { %v806_v53 = vsel %vm338_vm2, %v3880_v52, 0.0  ;;  %v4326_v54 = vpop.eup %3881 }
 0x43f   :  { %v812_v55 = vsel %vm338_vm2, %v4326_v54, 0.0 }
 0x441   :  { %v3884_v61 = vpop.eup %3883 }
 0x442   :  { %v823_v1 = vmul.f32 %v3884_v61, %v4295_v17 }
 0x450   :  { %804 = vadd.xlane.f32.xlu0 %v803_v47 }
 0x454   :  { %810 = vadd.xlane.f32.xlu0 %v809_v48 }
 0x459   :  { %801 = vadd.xlane.f32.xlu1 %v800_v51 }
 0x45d   :  { %807 = vadd.xlane.f32.xlu1 %v806_v53 }
 0x461   :  { %813 = vadd.xlane.f32.xlu1 %v812_v55 }
 0x46a   :  { %1145 = vrot.lane.b32.xlu0 %v4311_v30, %s4844_s7 }
 0x472   :  { %1195 = vrot.lane.b32.xlu1 %v4311_v30, %s4846_s9 }
 0x4a8   :  { %v799_v57 = vpop.xlane.xlu0 %798 }
 0x4a9   :  { %v796_v58 = vpop.xlane.xlu1 %795 }
 0x4aa   :  { %3885 = vrcp.f32 %v796_v58 }
 0x4ab   :  { %3887 = vrcp.f32 %v799_v57 }
 0x4ac   :  { %v886_v59 = vpop.permute.xlu0 %885 }
 0x4ad   :  { %v891_v60 = vsel %vm838_vm3, %v886_v59, 0  ;;  %v934_v62 = vpop.permute.xlu1 %933  ;;  %v3838_v59 = vld [vmem:[%s4817_s10 + $0x8] sm:$0xff]  }
 0x4ae   :  { %3558 = vmatpush3.bf16.msra.mxu0 %v891_v60  ;;  %v939_v5 = vsel %vm838_vm3, %v934_v62, 0 }
 0x4af   :  { %3569 = vmatprep.subr.bf16.mxu0 %v4011_v16 }
 0x4b1   :  { %v984_v4 = vpop.permute.xlu1 %983 }
 0x4b2   :  { %v989_v7 = vsel %vm838_vm3, %v984_v4, 0 }
 0x4b4   :  { %v3886_v63 = vpop.eup %3885 }
 0x4b5   :  { %v824_v2 = vmul.f32 %v3886_v63, %v3872_v27  ;;  %v1098_v8 = vpop.permute.xlu1 %1097  ;;  %v3888_v13 = vpop.eup %3887 }
 0x4b6   :  { %v825_v17 = vmul.f32 %v3888_v13, %v4299_v25  ;;  %v1103_v27 = vsel %vm838_vm3, %v1098_v8, 0 }
 0x4b7   :  { %v831_v3 = vpack.c.bf16 %v824_v2, %v823_v1 }
 0x4b9   :  { %3554 = vmatmul.mubr.msk.bf16.vlgmr.msra.gmra.mrb[20].mxu1 %vm338_vm2, %v831_v3  ;;  %v883_v6 = vrot.slane %v831_v3, 4 }
 0x4ba   :  { %3564 = vmatpush3.bf16.msra.mxu1 %v939_v5  ;;  %3565 = vmatprep.mubr.msk.bf16.mxu1 %vm4012_vm1, %v4011_v16 }
 0x4bb   :  { %3560 = vmatmul.mubr.msk.bf16.vlgmr.msra.gmra.mrb[24].mxu0 %vm338_vm2, %v883_v6  ;;  %3575 = vmatprep.subr.bf16.mxu1 %v4011_v16 }
 0x4bc   :  { %3570 = vmatpush3.bf16.msra.mxu0 %v989_v7  ;;  %3571 = vmatprep.mubr.msk.bf16.mxu0 %vm4012_vm1, %v4011_v16 }
 0x4bd   :  { %3581 = vmatprep.subr.bf16.mxu0 %v4011_v16 }
 0x4dd   :  { %v805_v10 = vpop.xlane.xlu0 %804 }
 0x4e1   :  { %v811_v14 = vpop.xlane.xlu0 %810 }
 0x4e5   :  { %v1146_v29 = vpop.permute.xlu0 %1145 }
 0x4e6   :  { %v802_v9 = vpop.xlane.xlu1 %801  ;;  %v1151_v32 = vsel %vm838_vm3, %v1146_v29, 0 }
 0x4e7   :  { %3889 = vrcp.f32 %v802_v9 }
 0x4e8   :  { %3891 = vrcp.f32 %v805_v10 }
 0x4ea   :  { %v808_v11 = vpop.xlane.xlu1 %807 }
 0x4eb   :  { %3893 = vrcp.f32 %v808_v11 }
 0x4ee   :  { %v814_v12 = vpop.xlane.xlu1 %813 }
 0x4ef   :  { %3895 = vrcp.f32 %v814_v12 }
 0x4f0   :  { %3897 = vrcp.f32 %v811_v14 }
 0x4f1   :  { %v3890_v15 = vpop.eup %3889 }
 0x4f2   :  { %v826_v18 = vmul.f32 %v3890_v15, %v3878_v50  ;;  %v3892_v19 = vpop.eup %3891  ;;  %v1196_v31 = vpop.permute.xlu1 %1195 }
 0x4f3   :  { %v827_v25 = vmul.f32 %v3892_v19, %v4316_v45  ;;  %v1201_v38 = vsel %vm838_vm3, %v1196_v31, 0  ;;  %v3259_v31 = vld [vmem:[%s4818_s11] ss:$0 sm:$0xff] }
 0x4f4   :  { %v832_v20 = vpack.c.bf16 %v826_v18, %v825_v17 }
 0x4f5   :  { %v3894_v21 = vpop.eup %3893 }
 0x4f6   :  { %v828_v22 = vmul.f32 %v3894_v21, %v3880_v52  ;;  %3566 = vmatmul.mubr.msk.bf16.vlgmr.msra.gmra.mrb[24].mxu1 %vm338_vm2, %v832_v20  ;;  %v982_v24 = vrot.slane %v832_v20, 4 }
 0x4f7   :  { %3576 = vmatpush3.bf16.msra.mxu1 %v1053_v23  ;;  %3577 = vmatprep.mubr.msk.bf16.mxu1 %vm4012_vm1, %v4011_v16 }
 0x4f8   :  { %3572 = vmatmul.mubr.msk.bf16.vlgmr.msra.gmra.mrb[28].mxu0 %vm338_vm2, %v982_v24  ;;  %3587 = vmatprep.subr.bf16.mxu1 %v4011_v16  ;;  %v833_v26 = vpack.c.bf16 %v828_v22, %v827_v25 }
 0x4f9   :  { %3582 = vmatpush3.bf16.msra.mxu0 %v1103_v27  ;;  %3583 = vmatprep.mubr.msk.bf16.mxu0 %vm4012_vm1, %v4011_v16  ;;  %v3896_v28 = vpop.eup %3895 }
 0x4fa   :  { %3593 = vmatprep.subr.bf16.mxu0 %v4011_v16  ;;  %v3898_v30 = vpop.eup %3897  ;;  %v830_v35 = vmul.f32 %v3896_v28, %v4326_v54  ;;  %v1096_v36 = vrot.slane %v833_v26, 4 }
 0x4fb   :  { %v829_v37 = vmul.f32 %v3898_v30, %v4320_v49 }
 0x4fd   :  { %v834_v39 = vpack.c.bf16 %v830_v35, %v829_v37 }
 0x4fe   :  { %3578 = vmatmul.mubr.msk.bf16.vlgmr.msra.gmra.mrb[28].mxu1 %vm338_vm2, %v833_v26 }
 0x4ff   :  { %3588 = vmatpush3.bf16.msra.mxu1 %v1151_v32  ;;  %3589 = vmatprep.mubr.msk.bf16.mxu1 %vm4012_vm1, %v4011_v16  ;;  %v1194_v40 = vrot.slane %v834_v39, 4 }
 0x500   :  { %3584 = vmatmul.mubr.msk.bf16.vlgmr.msra.gmra.mrb[32].mxu0 %vm338_vm2, %v1096_v36  ;;  %3599 = vmatprep.subr.bf16.mxu1 %v4011_v16 }
 0x501   :  { %3594 = vmatpush3.bf16.msra.mxu0 %v1201_v38  ;;  %3595 = vmatprep.mubr.msk.bf16.mxu0 %vm4012_vm1, %v4011_v16 }
 0x502   :  { %3607 = vmatprep.subr.bf16.mxu0 %v4011_v16 }
 0x506   :  { %3590 = vmatmul.mubr.msk.bf16.vlgmr.msra.gmra.mrb[32].mxu1 %vm338_vm2, %v834_v39 }
 0x507   :  { %3603 = vmatprep.mubr.msk.bf16.mxu1 %vm4012_vm1, %v4011_v16  ;;  %3600 = vmatpush3.bf16.msra.mxu1 %v3837_v56 }
 0x508   :  { %3596 = vmatmul.mubr.msk.bf16.vlgmr.msra.gmra.mrb[36].mxu0 %vm338_vm2, %v1194_v40  ;;  %3601 = vmatprep.subr.bf16.mxu1 %v4011_v16 }
 0x509   :  { %3611 = vmatprep.mubr.msk.bf16.mxu0 %vm4012_vm1, %v4011_v16 }
 0x50b   :  { %3602 = vmatpush3.bf16.msra.mxu1 %v3838_v59 }
 0x50c   :  { %3615 = vmatprep.subr.bf16.mxu1 %v4011_v16 }
 0x58c   :  { %v876_v41 = vpop.f32.mrb[20].mxu1 }
 0x58d   :  { %v3555_v42 = vpop.f32.mrb[21].mxu1 }
 0x58e   :  { %v879_v43 = vpop.f32.mrb[22].mxu1  ;;  %v927_v0 = vpop.f32.mrb[24].mxu0 }
 0x58f   :  { %v3556_v44 = vpop.f32.mrb[23].mxu1  ;;  %v3561_v45 = vpop.f32.mrb[25].mxu0 }
 0x590   :  { %v930_v46 = vpop.f32.mrb[26].mxu0 }
 0x591   :  { %v3562_v47 = vpop.f32.mrb[27].mxu0 }
 0x5c9   :  { %v975_v49 = vpop.f32.mrb[24].mxu1 }
 0x5ca   :  { %v3567_v48 = vpop.f32.mrb[25].mxu1 }
 0x5cb   :  { %v978_v50 = vpop.f32.mrb[26].mxu1  ;;  %v1025_v51 = vpop.f32.mrb[28].mxu0 }
 0x5cc   :  { %v3568_v52 = vpop.f32.mrb[27].mxu1  ;;  %v3573_v53 = vpop.f32.mrb[29].mxu0 }
 0x5cd   :  { %v1028_v54 = vpop.f32.mrb[30].mxu0  ;;  %v3840_v52 = vld [vmem:[%s4821_s14 + $0x8] sm:$0xff]  }
 0x5ce   :  { %v3574_v55 = vpop.f32.mrb[31].mxu0 }
 0x5d1   :  { %v1089_v57 = vpop.f32.mrb[28].mxu1 }
 0x5d2   :  { %v3579_v58 = vpop.f32.mrb[29].mxu1 }
 0x5d3   :  { %v1092_v60 = vpop.f32.mrb[30].mxu1  ;;  %v1139_v61 = vpop.f32.mrb[32].mxu0 }
 0x5d4   :  { %v3801_v62 = vpack.i.bf16 %v1139_v61, %v927_v0  ;;  %v3580_v63 = vpop.f32.mrb[31].mxu1  ;;  %v3585_v1 = vpop.f32.mrb[33].mxu0  ;;  %v3263_v61 = vld [vmem:[%s4819_s12] ss:$0 sm:$0xff] }
 0x5d5   :  { %v1142_v2 = vpop.f32.mrb[34].mxu0 }
 0x5d6   :  { %3802 = vrot.lane.b32.xlu0 %v3801_v62, %s4843_s26  ;;  %v3586_v3 = vpop.f32.mrb[35].mxu0  ;;  %v3264_v2 = vld [vmem:[%s4820_s13] ss:$0 sm:$0xff] }
 0x5d9   :  { %v1187_v4 = vpop.f32.mrb[32].mxu1 }
 0x5da   :  { %v3806_v5 = vpack.i.bf16 %v1187_v4, %v975_v49  ;;  %v3591_v6 = vpop.f32.mrb[33].mxu1 }
 0x5db   :  { %v1190_v7 = vpop.f32.mrb[34].mxu1  ;;  %v1237_v8 = vpop.f32.mrb[36].mxu0 }
 0x5dc   :  { %v3811_v9 = vpack.i.bf16 %v1237_v8, %v1025_v51  ;;  %3807 = vrot.lane.b32.xlu1 %v3806_v5, %s4842_s8  ;;  %v3592_v10 = vpop.f32.mrb[35].mxu1  ;;  %v3597_v11 = vpop.f32.mrb[37].mxu0  ;;  %v3841_v7 = vld [vmem:[%s4823_s16] sm:$0xff]   ;;  %v3842_v8 = vld [vmem:[%s4823_s16 + $0x8] sm:$0xff]  }
 0x5dd   :  { %v1240_v12 = vpop.f32.mrb[38].mxu0  ;;  %v3844_v10 = vld [vmem:[%s4823_s16 + $0x18] sm:$0xff]   ;;  %v3265_v11 = vld [vmem:[%s4822_s15] ss:$0 sm:$0xff] }
 0x5de   :  { %3812 = vrot.lane.b32.xlu0 %v3811_v9, %s4841_s5  ;;  %v3598_v13 = vpop.f32.mrb[39].mxu0  ;;  %v3843_v9 = vld [vmem:[%s4823_s16 + $0x10] sm:$0xff]  }
 0x648   :  { %v3803_v14 = vpop.permute.xlu0 %3802 }
 0x649   :  { %v3805_v15 = vunpack.i.h.bf16 %v3803_v14  ;;  %v3804_v17 = vunpack.i.l.bf16 %v3803_v14 }
 0x64b   :  { %v1255_v21 = vsel %vm338_vm2, %v1089_v57, %v3805_v15  ;;  %v1043_v22 = vsel %vm338_vm2, %v876_v41, %v3804_v17 }
 0x64e   :  { %v3808_v18 = vpop.permute.xlu1 %3807 }
 0x64f   :  { %v3810_v19 = vunpack.i.h.bf16 %v3808_v18  ;;  %v3809_v20 = vunpack.i.l.bf16 %v3808_v18 }
 0x650   :  { %v3813_v23 = vpop.permute.xlu0 %3812 }
 0x651   :  { %v1045_v24 = vsel %vm1044_vm4, %v1043_v22, %v3809_v20  ;;  %v1256_v27 = vsel %vm1044_vm4, %v1255_v21, %v3810_v19  ;;  %v3815_v25 = vunpack.i.h.bf16 %v3813_v23  ;;  %v3814_v26 = vunpack.i.l.bf16 %v3813_v23 }
 0x653   :  { %v1257_v28 = vsel %vm1046_vm5, %v1256_v27, %v3815_v25  ;;  %v1047_v29 = vsel %vm1046_vm5, %v1045_v24, %v3814_v26 }
 0x654   :  { %v1258_v30 = vpack.c.bf16 %v1257_v28, %v1047_v29 }
 0x656   :  { %3604 = vmatmul.mubr.msk.bf16.vlgmr.msra.gmra.mrb[36].mxu1 %vm86_vm0, %v1258_v30 }
 0x657   :  { %3623 = vmatprep.mubr.msk.bf16.mxu1 %vm4012_vm1, %v4011_v16  ;;  %3616 = vmatpush3.bf16.msra.mxu1 %v3841_v7 }
 0x658   :  { %3617 = vmatprep.subr.bf16.mxu1 %v4011_v16 }
 0x65b   :  { %3618 = vmatpush3.bf16.msra.mxu1 %v3842_v8 }
 0x65c   :  { %3619 = vmatprep.subr.bf16.mxu1 %v4011_v16 }
 0x65f   :  { %3620 = vmatpush3.bf16.msra.mxu1 %v3843_v9 }
 0x660   :  { %3621 = vmatprep.subr.bf16.mxu1 %v4011_v16 }
 0x663   :  { %3622 = vmatpush3.bf16.msra.mxu1 %v3844_v10 }
 0x664   :  { %3643 = vmatprep.subr.bf16.mxu1 %v4011_v16 }
 0x729   :  { %v1319_v32 = vpop.f32.mrb[36].mxu1 }
 0x72a   :  { %v1320_v35 = vadd.f32 %v3259_v31, %v1319_v32  ;;  %v3605_v36 = vpop.f32.mrb[37].mxu1 }
 0x72b   :  { %v1322_v37 = vpop.f32.mrb[38].mxu1 }
 0x72c   :  { %v1323_v38 = vadd.f32 %v3259_v31, %v1322_v37  ;;  %v3606_v39 = vpop.f32.mrb[39].mxu1  ;;  %v1326_v40 = vadd.f32 %v1320_v35, %v4189_v33 }
 0x72e   :  { %v1330_v41 = vsel %vm86_vm0, %v1326_v40, 0.0  ;;  %v1327_v42 = vadd.f32 %v1323_v38, %v4191_v34  ;;  %v3839_v34 = vld [vmem:[%s4821_s14] sm:$0xff]  }
 0x72f   :  { %1331 = vadd.xlane.f32.xlu1 %v1330_v41  ;;  %3608 = vmatpush3.bf16.msra.mxu0 %v3839_v34 }
 0x730   :  { %v1333_v43 = vsel %vm86_vm0, %v1327_v42, 0.0  ;;  %3609 = vmatprep.subr.bf16.mxu0 %v4011_v16 }
 0x731   :  { %1334 = vadd.xlane.f32.xlu0 %v1333_v43 }
 0x733   :  { %3610 = vmatpush3.bf16.msra.mxu0 %v3840_v52 }
 0x734   :  { %3627 = vmatprep.subr.bf16.mxu0 %v4011_v16 }
 0x7bc   :  { %v1332_v0 = vpop.xlane.xlu1 %1331 }
 0x7bd   :  { %v1336_v44 = vmul.f32 0.03125, %v1332_v0 }
 0x7be   :  { %v1335_v45 = vpop.xlane.xlu0 %1334 }
 0x7bf   :  { %v1338_v46 = vsub.f32 %v1326_v40, %v1336_v44  ;;  %v1337_v47 = vmul.f32 0.03125, %v1335_v45  ;;  %v3269_v40 = vld [vmem:[%s4824_s17] ss:$0 sm:$0xff] }
 0x7c1   :  { %v1339_v49 = vsub.f32 %v1327_v42, %v1337_v47  ;;  %v1340_v48 = vmul.f32 %v1338_v46, %v1338_v46 }
 0x7c3   :  { %v1342_v50 = vsel %vm86_vm0, %v1340_v48, 0.0  ;;  %v1341_v51 = vmul.f32 %v1339_v49, %v1339_v49 }
 0x7c4   :  { %1343 = vadd.xlane.f32.xlu0 %v1342_v50 }
 0x7c5   :  { %v1345_v33 = vsel %vm86_vm0, %v1341_v51, 0.0 }
 0x7c8   :  { %1346 = vadd.xlane.f32.xlu0 %v1345_v33 }
 0x851   :  { %v1344_v53 = vpop.xlane.xlu0 %1343 }
 0x852   :  { %v1348_v54 = vmul.f32 0.03125, %v1344_v53 }
 0x854   :  { %v1350_v55 = vadd.f32 1e-12, %v1348_v54 }
 0x855   :  { %v1347_v56 = vpop.xlane.xlu0 %1346 }
 0x856   :  { %3899 = vrsqrt.f32 %v1350_v55  ;;  %v1349_v57 = vmul.f32 0.03125, %v1347_v56 }
 0x858   :  { %v1351_v58 = vadd.f32 1e-12, %v1349_v57 }
 0x85a   :  { %3901 = vrsqrt.f32 %v1351_v58  ;;  %v3845_v58 = vld [vmem:[%s4861_s1 + $0x10] sm:$0xff]  }
 0x860   :  { %v3900_v59 = vpop.eup %3899 }
 0x861   :  { %v1354_v60 = vmul.f32 %v3900_v59, %v1338_v46  ;;  %v3846_v59 = vld [vmem:[%s4865_s27 + $0x10] sm:$0xff]  }
 0x863   :  { %v1362_v63 = vmul.f32 %v3263_v61, %v1354_v60  ;;  %v3847_v60 = vld [vmem:[%s4861_s1 + $0x18] sm:$0xff]   ;;  %s4875_s1 = smov 24  }
 0x864   :  { %v3902_v62 = vpop.eup %3901 }
 0x865   :  { %v1355_v1 = vmul.f32 %v3902_v62, %v1339_v49  ;;  %v1370_v4 = vadd.f32 %v3264_v2, %v1362_v63 }
 0x867   :  { %v1363_v3 = vmul.f32 %v3263_v61, %v1355_v1  ;;  %v3848_v61 = vld [vmem:[%s4865_s27 + $0x18] sm:$0xff]  }
 0x869   :  { %v1371_v5 = vadd.f32 %v3264_v2, %v1363_v3 }
 0x86b   :  { %v1372_v6 = vpack.c.bf16 %v1371_v5, %v1370_v4 }
 0x86d   :  { %3612 = vmatmul.mubr.msk.bf16.vlgmr.msra.gmra.mrb[40].mxu0 %vm86_vm0, %v1372_v6  ;;  %v3275_v6 = vld [vmem:[%s4825_s18] ss:$0 sm:$0xff] }
 0x86e   :  { %3631 = vmatprep.mubr.msk.bf16.mxu0 %vm4012_vm1, %v4011_v16  ;;  %3628 = vmatpush3.bf16.msra.mxu0 %v3845_v58 }
 0x86f   :  { %3629 = vmatprep.subr.bf16.mxu0 %v4011_v16 }
 0x872   :  { %3630 = vmatpush3.bf16.msra.mxu0 %v3847_v60 }
 0x873   :  { %3635 = vmatprep.subr.bf16.mxu0 %v4011_v16 }
 0x940   :  { %v1433_v12 = vpop.f32.mrb[40].mxu0 }
 0x941   :  { %v1434_v13 = vadd.f32 %v3265_v11, %v1433_v12  ;;  %v3613_v14 = vpop.f32.mrb[41].mxu0 }
 0x942   :  { %v1436_v15 = vpop.f32.mrb[42].mxu0 }
 0x943   :  { %v1442_v17 = vmul.f32 0.044715, %v1434_v13  ;;  %v1437_v18 = vadd.f32 %v3265_v11, %v1436_v15  ;;  %v3614_v19 = vpop.f32.mrb[43].mxu0  ;;  %v1440_v32 = vmul.f32 0.5, %v1434_v13  ;;  %v3276_v11 = vld [vmem:[%s4826_s19] ss:$0 sm:$0xff] }
 0x944   :  { %v3849_v15 = vld [vmem:[%s4862_s4 + $0x10] sm:$0xff]   ;;  %v3282_v19 = vld [vmem:[%s4866_s29 + $0x1] ss:$0 sm:$0xff] }
 0x945   :  { %v1444_v20 = vmul.f32 %v1442_v17, %v1434_v13  ;;  %v1443_v21 = vmul.f32 0.044715, %v1437_v18  ;;  %v1441_v35 = vmul.f32 0.5, %v1437_v18 }
 0x947   :  { %v1446_v22 = vmul.f32 %v1444_v20, %v1434_v13  ;;  %v1445_v23 = vmul.f32 %v1443_v21, %v1437_v18  ;;  %v3300_v21 = vld [vmem:[%s4868_s28 + $0x1] ss:$0 sm:$0xff]  ;;  %s4870_s28 = smov 120  }
 0x949   :  { %v1448_v24 = vadd.f32 %v1446_v22, %v1434_v13  ;;  %v1447_v27 = vmul.f32 %v1445_v23, %v1437_v18 }
 0x94b   :  { %v1450_v25 = vmul.f32 0.7978846, %v1448_v24  ;;  %v1449_v26 = vadd.f32 %v1447_v27, %v1437_v18  ;;  %v3850_v18 = vld [vmem:[%s4862_s4 + $0x18] sm:$0xff]   ;;  %s4873_s4 = smov 8  }
 0x94d   :  { %3903 = vtanh.f32 %v1450_v25  ;;  %v1451_v28 = vmul.f32 0.7978846, %v1449_v26 }
 0x94f   :  { %3905 = vtanh.f32 %v1451_v28 }
 0x957   :  { %v3904_v29 = vpop.eup %3903 }
 0x958   :  { %v1454_v30 = vadd.f32 1.0, %v3904_v29 }
 0x959   :  { %v3906_v31 = vpop.eup %3905 }
 0x95a   :  { %v1455_v36 = vadd.f32 1.0, %v3906_v31  ;;  %v1456_v37 = vmul.f32 %v1454_v30, %v1440_v32 }
 0x95c   :  { %v1457_v38 = vmul.f32 %v1455_v36, %v1441_v35 }
 0x95e   :  { %v1458_v39 = vpack.c.bf16 %v1457_v38, %v1456_v37 }
 0x960   :  { %3624 = vmatmul.mubr.msk.bf16.vlgmr.msra.gmra.mrb[40].mxu1 %vm1498_vm6, %v1458_v39  ;;  %v3291_v39 = vld [vmem:[%s4867_s30 + $0x1] ss:$0 sm:$0xff]  ;;  %s4872_s30 = smov 112  }
 0x961   :  { %3647 = vmatprep.mubr.msk.bf16.mxu1 %vm4012_vm1, %v4011_v16  ;;  %3644 = vmatpush3.bf16.msra.mxu1 %v3846_v59 }
 0x962   :  { %3645 = vmatprep.subr.bf16.mxu1 %v4011_v16 }
 0x965   :  { %3646 = vmatpush3.bf16.msra.mxu1 %v3848_v61 }
 0x966   :  { %3657 = vmatprep.subr.bf16.mxu1 %v4011_v16 }
 0xa33   :  { %v1536_v41 = vpop.f32.mrb[40].mxu1 }
 0xa34   :  { %v1537_v42 = vadd.f32 %v3269_v40, %v1536_v41  ;;  %v3625_v43 = vpop.f32.mrb[41].mxu1 }
 0xa35   :  { %v1539_v0 = vpop.f32.mrb[42].mxu1 }
 0xa36   :  { %v1540_v44 = vadd.f32 %v3269_v40, %v1539_v0  ;;  %v3626_v45 = vpop.f32.mrb[43].mxu1  ;;  %v1543_v46 = vadd.f32 %v1537_v42, %v1370_v4 }
 0xa38   :  { %v1547_v47 = vsel %vm86_vm0, %v1543_v46, 0.0  ;;  %v1544_v49 = vadd.f32 %v1540_v44, %v1371_v5 }
 0xa39   :  { %1548 = vadd.xlane.f32.xlu1 %v1547_v47 }
 0xa3a   :  { %v1550_v48 = vsel %vm86_vm0, %v1544_v49, 0.0 }
 0xa3b   :  { %1551 = vadd.xlane.f32.xlu0 %v1550_v48 }
 0xac6   :  { %v1549_v50 = vpop.xlane.xlu1 %1548 }
 0xac7   :  { %v1553_v51 = vmul.f32 0.03125, %v1549_v50 }
 0xac8   :  { %v1552_v33 = vpop.xlane.xlu0 %1551 }
 0xac9   :  { %v1555_v34 = vsub.f32 %v1543_v46, %v1553_v51  ;;  %v1554_v52 = vmul.f32 0.03125, %v1552_v33 }
 0xacb   :  { %v1556_v53 = vsub.f32 %v1544_v49, %v1554_v52  ;;  %v1557_v54 = vmul.f32 %v1555_v34, %v1555_v34 }
 0xacd   :  { %v1559_v55 = vsel %vm86_vm0, %v1557_v54, 0.0  ;;  %v1558_v56 = vmul.f32 %v1556_v53, %v1556_v53 }
 0xace   :  { %1560 = vadd.xlane.f32.xlu1 %v1559_v55 }
 0xacf   :  { %v1562_v57 = vsel %vm86_vm0, %v1558_v56, 0.0 }
 0xad0   :  { %1563 = vadd.xlane.f32.xlu0 %v1562_v57 }
 0xb5b   :  { %v1561_v62 = vpop.xlane.xlu1 %1560 }
 0xb5c   :  { %v1565_v63 = vmul.f32 0.03125, %v1561_v62 }
 0xb5d   :  { %v1564_v1 = vpop.xlane.xlu0 %1563 }
 0xb5e   :  { %v1567_v2 = vadd.f32 1e-12, %v1565_v63  ;;  %v1566_v3 = vmul.f32 0.03125, %v1564_v1 }
 0xb60   :  { %3907 = vrsqrt.f32 %v1567_v2  ;;  %v1568_v4 = vadd.f32 1e-12, %v1566_v3 }
 0xb62   :  { %3909 = vrsqrt.f32 %v1568_v4 }
 0xb6a   :  { %v3908_v5 = vpop.eup %3907 }
 0xb6b   :  { %v1571_v7 = vmul.f32 %v3908_v5, %v1555_v34  ;;  %v3961_v5 = vld [vmem:[%s4869_s2] ss:$0 sm:$0xff] }
 0xb6c   :  { %v3910_v8 = vpop.eup %3909 }
 0xb6d   :  { %v1579_v9 = vmul.f32 %v3275_v6, %v1571_v7  ;;  %v1572_v10 = vmul.f32 %v3910_v8, %v1556_v53 }
 0xb6f   :  { %v1580_v12 = vmul.f32 %v3275_v6, %v1572_v10  ;;  %v4475_v13 = vadd.f32 %v3276_v11, %v1579_v9 }
 0xb71   :  { %v4477_v14 = vadd.f32 %v3276_v11, %v1580_v12 }
 0xb73   :  { %v1589_v17 = vpack.c.bf16 %v4477_v14, %v4475_v13 }
 0xb75   :  { %3632 = vmatmul.mubr.msk.bf16.vlgmr.msra.gmra.mrb[44].mxu0 %vm86_vm0, %v1589_v17  ;;  %3648 = vmatmul.mubr.msk.bf16.vlgmr.msra.gmra.mrb[44].mxu1 %vm86_vm0, %v1589_v17 }
 0xb76   :  { %3636 = vmatpush3.bf16.msra.mxu0 %v3849_v15  ;;  %3639 = vmatprep.mubr.msk.bf16.mxu0 %vm4012_vm1, %v4011_v16 }
 0xb77   :  { %3637 = vmatprep.subr.bf16.mxu0 %v4011_v16  ;;  %3659 = vmatprep.mubr.msk.bf16.mxu1 %vm4012_vm1, %v4011_v16 }
 0xb7a   :  { %3638 = vmatpush3.bf16.msra.mxu0 %v3850_v18 }
 0xb7b   :  { %3651 = vmatprep.subr.bf16.mxu0 %v4011_v16 }
 0xb7d   :  { %3640 = vmatmul.mubr.msk.bf16.vlgmr.msra.gmra.mrb[48].mxu0 %vm86_vm0, %v1589_v17 }
 0xb7e   :  { %3653 = vmatprep.mubr.msk.bf16.mxu0 %vm4012_vm1, %v4011_v16 }
 0xc48   :  { %v1652_v20 = vpop.f32.mrb[44].mxu0  ;;  %v1784_v22 = vpop.f32.mrb[44].mxu1 }
 0xc49   :  { %v1653_v23 = vadd.f32 %v3282_v19, %v1652_v20  ;;  %v3633_v24 = vpop.f32.mrb[45].mxu0  ;;  %v3649_v27 = vpop.f32.mrb[45].mxu1  ;;  %v1785_v28 = vadd.f32 %v3300_v21, %v1784_v22 }
 0xc4a   :  { %v1655_v25 = vpop.f32.mrb[46].mxu0  ;;  %v1787_v26 = vpop.f32.mrb[46].mxu1 }
 0xc4b   :  { %v1656_v29 = vadd.f32 %v3282_v19, %v1655_v25  ;;  %v1788_v30 = vadd.f32 %v3300_v21, %v1787_v26  ;;  %v3634_v31 = vpop.f32.mrb[47].mxu0  ;;  %v3650_v32 = vpop.f32.mrb[47].mxu1  ;;  %v1791_v35 = vmul.f32 0.35355338, %v1653_v23 }
 0xc4d   :  { %v1792_v36 = vmul.f32 0.35355338, %v1656_v29  ;;  %v4504_v37 = vpack.c.bf16 %v1788_v30, %v1785_v28 }
 0xc4f   :  { %v1793_v38 = vpack.c.bf16 %v1792_v36, %v1791_v35  ;;  %v2288_v2 = vsel %vm838_vm3, %v4504_v37, 0  ;;  %v3962_v35 = vld [vmem:[%s4869_s2 + $0x1] ss:$0 sm:$0xff] }
 0xc50   :  { %v1718_v40 = vpop.f32.mrb[48].mxu0 }
 0xc51   :  { %1843 = vrot.lane.b32.xlu0 %v1793_v38, %s4870_s28  ;;  %v3641_v41 = vpop.f32.mrb[49].mxu0  ;;  %v1719_v43 = vadd.f32 %v3291_v39, %v1718_v40  ;;  %v1994_v47 = vrot.slane %v1793_v38, 4 }
 0xc52   :  { %v1721_v42 = vpop.f32.mrb[50].mxu0 }
 0xc53   :  { %v1722_v0 = vadd.f32 %v3291_v39, %v1721_v42  ;;  %v3642_v44 = vpop.f32.mrb[51].mxu0 }
 0xc55   :  { %v1794_v45 = vpack.c.bf16 %v1722_v0, %v1719_v43  ;;  %1944 = vrot.lane.b32.xlu0 %v1793_v38, %s4871_s0 }
 0xc57   :  { %1846 = vrot.lane.b32.xlu1 %v1794_v45, %s4870_s28  ;;  %v1800_v46 = vsel %vm338_vm2, %v1794_v45, 0  ;;  %v1995_v49 = vrot.slane %v1794_v45, 4 }
 0xc58   :  { %3652 = vmatpush3.bf16.xpose.msra.mxu0 %v1800_v46 }
 0xc59   :  { %2042 = vrot.lane.b32.xlu0 %v1994_v47, %s4870_s28  ;;  %3663 = vmatprep.subr.bf16.mxu0 %v4011_v16  ;;  %v2000_v56 = vsel %vm338_vm2, %v1995_v49, 0 }
 0xc5b   :  { %1896 = vrot.lane.b32.xlu1 %v1794_v45, %s4872_s30 }
 0xc5d   :  { %2144 = vrot.lane.b32.xlu0 %v1995_v49, %s4871_s0 }
 0xc5f   :  { %1946 = vrot.lane.b32.xlu1 %v1794_v45, %s4871_s0  ;;  %3654 = vmatmul.mubr.msk.bf16.vlgmr.msra.gmra.mrb[52].mxu0 %vm338_vm2, %v1793_v38 }
 0xc60   :  { %3665 = vmatprep.mubr.msk.bf16.mxu0 %vm4012_vm1, %v4011_v16 }
 0xc61   :  { %2142 = vrot.lane.b32.xlu0 %v1994_v47, %s4871_s0 }
 0xc63   :  { %1894 = vrot.lane.b32.xlu1 %v1793_v38, %s4872_s30 }
 0xc67   :  { %2044 = vrot.lane.b32.xlu1 %v1995_v49, %s4870_s28 }
 0xc6b   :  { %2094 = vrot.lane.b32.xlu1 %v1995_v49, %s4872_s30 }
 0xc6f   :  { %2092 = vrot.lane.b32.xlu1 %v1994_v47, %s4872_s30 }
 0xcc3   :  { %v1844_v51 = vpop.permute.xlu0 %1843 }
 0xcc7   :  { %v1945_v54 = vpop.permute.xlu0 %1944 }
 0xcc9   :  { %v1847_v48 = vpop.permute.xlu1 %1846 }
 0xcca   :  { %v1852_v50 = vsel %vm338_vm2, %v1847_v48, 0 }
 0xccb   :  { %3658 = vmatpush3.bf16.xpose.msra.mxu1 %v1852_v50  ;;  %v2043_v57 = vpop.permute.xlu0 %2042 }
 0xccc   :  { %3669 = vmatprep.subr.bf16.mxu1 %v4011_v16 }
 0xccd   :  { %v1897_v33 = vpop.permute.xlu1 %1896 }
 0xcce   :  { %v1902_v34 = vsel %vm338_vm2, %v1897_v33, 0 }
 0xccf   :  { %3664 = vmatpush3.bf16.xpose.msra.mxu0 %v1902_v34  ;;  %v2145_v62 = vpop.permute.xlu0 %2144 }
 0xcd0   :  { %3675 = vmatprep.subr.bf16.mxu0 %v4011_v16  ;;  %v2150_v63 = vsel %vm338_vm2, %v2145_v62, 0 }
 0xcd1   :  { %v1947_v52 = vpop.permute.xlu1 %1946 }
 0xcd2   :  { %v1952_v53 = vsel %vm338_vm2, %v1947_v52, 0  ;;  %3660 = vmatmul.mubr.msk.bf16.vlgmr.msra.gmra.mrb[48].mxu1 %vm338_vm2, %v1844_v51 }
 0xcd3   :  { %3670 = vmatpush3.bf16.xpose.msra.mxu1 %v1952_v53  ;;  %3671 = vmatprep.mubr.msk.bf16.mxu1 %vm4012_vm1, %v4011_v16  ;;  %v2143_v3 = vpop.permute.xlu0 %2142 }
 0xcd4   :  { %3681 = vmatprep.subr.bf16.mxu1 %v4011_v16 }
 0xcd5   :  { %v1895_v55 = vpop.permute.xlu1 %1894 }
 0xcd6   :  { %3666 = vmatmul.mubr.msk.bf16.vlgmr.msra.gmra.mrb[56].mxu0 %vm338_vm2, %v1895_v55 }
 0xcd7   :  { %3676 = vmatpush3.bf16.xpose.msra.mxu0 %v2000_v56  ;;  %3677 = vmatprep.mubr.msk.bf16.mxu0 %vm4012_vm1, %v4011_v16 }
 0xcd8   :  { %3687 = vmatprep.subr.bf16.mxu0 %v4011_v16 }
 0xcd9   :  { %v2045_v58 = vpop.permute.xlu1 %2044 }
 0xcda   :  { %v2050_v59 = vsel %vm338_vm2, %v2045_v58, 0  ;;  %3672 = vmatmul.mubr.msk.bf16.vlgmr.msra.gmra.mrb[52].mxu1 %vm338_vm2, %v1945_v54 }
 0xcdb   :  { %3682 = vmatpush3.bf16.xpose.msra.mxu1 %v2050_v59  ;;  %3683 = vmatprep.mubr.msk.bf16.mxu1 %vm4012_vm1, %v4011_v16 }
 0xcdc   :  { %3693 = vmatprep.subr.bf16.mxu1 %v4011_v16 }
 0xcdd   :  { %v2095_v60 = vpop.permute.xlu1 %2094 }
 0xcde   :  { %v2100_v61 = vsel %vm338_vm2, %v2095_v60, 0  ;;  %3678 = vmatmul.mubr.msk.bf16.vlgmr.msra.gmra.mrb[60].mxu0 %vm338_vm2, %v1994_v47 }
 0xcdf   :  { %3688 = vmatpush3.bf16.xpose.msra.mxu0 %v2100_v61  ;;  %3689 = vmatprep.mubr.msk.bf16.mxu0 %vm4012_vm1, %v4011_v16 }
 0xce0   :  { %3699 = vmatprep.subr.bf16.mxu0 %v4011_v16 }
 0xce1   :  { %v2093_v1 = vpop.permute.xlu1 %2092 }
 0xce2   :  { %3684 = vmatmul.mubr.msk.bf16.vlgmr.msra.gmra.mrb[56].mxu1 %vm338_vm2, %v2043_v57 }
 0xce3   :  { %3694 = vmatpush3.bf16.xpose.msra.mxu1 %v2150_v63  ;;  %3695 = vmatprep.mubr.msk.bf16.mxu1 %vm4012_vm1, %v4011_v16 }
 0xce4   :  { %3705 = vmatprep.subr.bf16.mxu1 %v4011_v16 }
 0xce6   :  { %3690 = vmatmul.mubr.msk.bf16.vlgmr.msra.gmra.mrb[64].mxu0 %vm338_vm2, %v2093_v1 }
 0xce7   :  { %3700 = vmatpush3.bf16.msra.mxu0 %v2288_v2  ;;  %3701 = vmatprep.mubr.msk.bf16.mxu0 %vm4012_vm1, %v4011_v16 }
 0xce8   :  { %3711 = vmatprep.subr.bf16.mxu0 %v4011_v16 }
 0xcea   :  { %3696 = vmatmul.mubr.msk.bf16.vlgmr.msra.gmra.mrb[60].mxu1 %vm338_vm2, %v2143_v3 }
 0xceb   :  { %3707 = vmatprep.mubr.msk.bf16.mxu1 %vm4012_vm1, %v4011_v16 }
 0xd32   :  { %v1836_v4 = vpop.f32.mrb[52].mxu0 }
 0xd33   :  { %v1837_v6 = vadd.f32 %v3961_v5, %v1836_v4  ;;  %v3655_v7 = vpop.f32.mrb[53].mxu0 }
 0xd34   :  { %v1839_v8 = vpop.f32.mrb[54].mxu0 }
 0xd35   :  { %v3656_v9 = vpop.f32.mrb[55].mxu0  ;;  %v2192_v10 = vsel %vm338_vm2, %v1837_v6, -inf }
 0xd36   :  { %2193 = vmax.xlane.f32.xlu1 %v2192_v10 }
 0xda5   :  { %v1888_v11 = vpop.f32.mrb[48].mxu1 }
 0xda6   :  { %v1889_v12 = vadd.f32 %v3961_v5, %v1888_v11  ;;  %v3661_v15 = vpop.f32.mrb[49].mxu1 }
 0xda7   :  { %v1891_v17 = vpop.f32.mrb[50].mxu1 }
 0xda8   :  { %v3662_v18 = vpop.f32.mrb[51].mxu1  ;;  %v2195_v19 = vsel %vm338_vm2, %v1889_v12, -inf }
 0xda9   :  { %2196 = vmax.xlane.f32.xlu0 %v2195_v19  ;;  %v1938_v20 = vpop.f32.mrb[56].mxu0 }
 0xdaa   :  { %v1939_v21 = vadd.f32 %v3961_v5, %v1938_v20  ;;  %v3667_v22 = vpop.f32.mrb[57].mxu0 }
 0xdab   :  { %v1941_v23 = vpop.f32.mrb[58].mxu0 }
 0xdac   :  { %v3668_v24 = vpop.f32.mrb[59].mxu0  ;;  %v2198_v27 = vsel %vm338_vm2, %v1939_v21, -inf }
 0xdad   :  { %v1988_v25 = vpop.f32.mrb[52].mxu1  ;;  %2199 = vmax.xlane.f32.xlu0 %v2198_v27 }
 0xdae   :  { %v1989_v26 = vadd.f32 %v3961_v5, %v1988_v25  ;;  %v3673_v28 = vpop.f32.mrb[53].mxu1 }
 0xdaf   :  { %v1991_v29 = vpop.f32.mrb[54].mxu1 }
 0xdb0   :  { %v3674_v30 = vpop.f32.mrb[55].mxu1  ;;  %v2201_v31 = vsel %vm338_vm2, %v1989_v26, -inf }
 0xdb1   :  { %2202 = vmax.xlane.f32.xlu0 %v2201_v31  ;;  %v2036_v32 = vpop.f32.mrb[60].mxu0 }
 0xdb2   :  { %v4574_v36 = vadd.f32 %v3962_v35, %v2036_v32  ;;  %v3679_v38 = vpop.f32.mrb[61].mxu0 }
 0xdb3   :  { %v2039_v39 = vpop.f32.mrb[62].mxu0 }
 0xdb4   :  { %v3680_v40 = vpop.f32.mrb[63].mxu0  ;;  %v2204_v41 = vsel %vm338_vm2, %v4574_v36, -inf }
 0xdb5   :  { %v2086_v42 = vpop.f32.mrb[56].mxu1  ;;  %2205 = vmax.xlane.f32.xlu1 %v2204_v41 }
 0xdb6   :  { %v4578_v43 = vadd.f32 %v3962_v35, %v2086_v42  ;;  %v3685_v0 = vpop.f32.mrb[57].mxu1 }
 0xdb7   :  { %v2089_v44 = vpop.f32.mrb[58].mxu1 }
 0xdb8   :  { %v3686_v45 = vpop.f32.mrb[59].mxu1  ;;  %v2207_v46 = vsel %vm338_vm2, %v4578_v43, -inf }
 0xdb9   :  { %2208 = vmax.xlane.f32.xlu0 %v2207_v46  ;;  %v2136_v47 = vpop.f32.mrb[64].mxu0 }
 0xdba   :  { %v2137_v49 = vadd.f32 %v3962_v35, %v2136_v47  ;;  %v3691_v48 = vpop.f32.mrb[65].mxu0 }
 0xdbb   :  { %v2139_v50 = vpop.f32.mrb[66].mxu0 }
 0xdbc   :  { %v3692_v51 = vpop.f32.mrb[67].mxu0  ;;  %v2210_v33 = vsel %vm338_vm2, %v2137_v49, -inf }
 0xdbd   :  { %v2186_v34 = vpop.f32.mrb[60].mxu1  ;;  %2211 = vmax.xlane.f32.xlu1 %v2210_v33 }
 0xdbe   :  { %v2187_v52 = vadd.f32 %v3962_v35, %v2186_v34  ;;  %v3697_v53 = vpop.f32.mrb[61].mxu1 }
 0xdbf   :  { %v2189_v54 = vpop.f32.mrb[62].mxu1 }
 0xdc0   :  { %v3698_v55 = vpop.f32.mrb[63].mxu1  ;;  %v2213_v56 = vsel %vm338_vm2, %v2187_v52, -inf }
 0xdc1   :  { %2214 = vmax.xlane.f32.xlu0 %v2213_v56 }
 0xdc3   :  { %v2194_v57 = vpop.xlane.xlu1 %2193 }
 0xdc4   :  { %v2216_v58 = vsub.f32 %v1837_v6, %v2194_v57 }
 0xdc6   :  { %v2224_v59 = vmul.f32 1.442695, %v2216_v58 }
 0xdc8   :  { %3911 = vpow2.f32 %v2224_v59 }
 0xdce   :  { %2333 = vrot.lane.b32.xlu1 %v4504_v37, %s4870_s28 }
 0xdd2   :  { %v4586_v60 = vpop.eup %3911 }
 0xdd3   :  { %v2240_v61 = vsel %vm338_vm2, %v4586_v60, 0.0 }
 0xdf2   :  { %2241 = vadd.xlane.f32.xlu1 %v2240_v61 }
 0xe36   :  { %v2197_v62 = vpop.xlane.xlu0 %2196 }
 0xe37   :  { %v2217_v63 = vsub.f32 %v1889_v12, %v2197_v62 }
 0xe39   :  { %v2226_v1 = vmul.f32 1.442695, %v2217_v63 }
 0xe3a   :  { %v2200_v2 = vpop.xlane.xlu0 %2199 }
 0xe3b   :  { %3913 = vpow2.f32 %v2226_v1  ;;  %v2218_v3 = vsub.f32 %v1939_v21, %v2200_v2  ;;  %v4604_v21 = vrot.slane %v4504_v37, 4 }
 0xe3d   :  { %v2228_v4 = vmul.f32 1.442695, %v2218_v3  ;;  %v2499_v59 = vsel %vm838_vm3, %v4604_v21, 0 }
 0xe3e   :  { %v2203_v5 = vpop.xlane.xlu0 %2202 }
 0xe3f   :  { %3915 = vpow2.f32 %v2228_v4  ;;  %v2219_v7 = vsub.f32 %v1989_v26, %v2203_v5 }
 0xe41   :  { %v2230_v8 = vmul.f32 1.442695, %v2219_v7 }
 0xe42   :  { %v2206_v9 = vpop.xlane.xlu1 %2205 }
 0xe43   :  { %3917 = vpow2.f32 %v2230_v8  ;;  %v2220_v23 = vsub.f32 %v4574_v36, %v2206_v9 }
 0xe45   :  { %v3914_v6 = vpop.eup %3913  ;;  %v2232_v25 = vmul.f32 1.442695, %v2220_v23 }
 0xe46   :  { %v2243_v10 = vsel %vm338_vm2, %v3914_v6, 0.0  ;;  %v2209_v22 = vpop.xlane.xlu0 %2208 }
 0xe47   :  { %2244 = vadd.xlane.f32.xlu0 %v2243_v10  ;;  %v2221_v24 = vsub.f32 %v4578_v43, %v2209_v22  ;;  %3919 = vpow2.f32 %v2232_v25 }
 0xe49   :  { %v4591_v11 = vpop.eup %3915  ;;  %v2234_v28 = vmul.f32 1.442695, %v2221_v24 }
 0xe4a   :  { %v2212_v15 = vpop.xlane.xlu1 %2211  ;;  %v2246_v12 = vsel %vm338_vm2, %v4591_v11, 0.0 }
 0xe4b   :  { %2247 = vadd.xlane.f32.xlu1 %v2246_v12  ;;  %v2222_v26 = vsub.f32 %v2137_v49, %v2212_v15  ;;  %3921 = vpow2.f32 %v2234_v28 }
 0xe4d   :  { %v4595_v17 = vpop.eup %3917  ;;  %v2236_v30 = vmul.f32 1.442695, %v2222_v26 }
 0xe4e   :  { %v2334_v18 = vpop.permute.xlu1 %2333  ;;  %v2249_v19 = vsel %vm338_vm2, %v4595_v17, 0.0  ;;  %v2215_v27 = vpop.xlane.xlu0 %2214 }
 0xe4f   :  { %v2339_v20 = vsel %vm838_vm3, %v2334_v18, 0  ;;  %2250 = vadd.xlane.f32.xlu0 %v2249_v19  ;;  %v2223_v29 = vsub.f32 %v2187_v52, %v2215_v27  ;;  %3923 = vpow2.f32 %v2236_v30 }
 0xe50   :  { %3706 = vmatpush3.bf16.msra.mxu1 %v2339_v20 }
 0xe51   :  { %3717 = vmatprep.subr.bf16.mxu1 %v4011_v16  ;;  %v2238_v31 = vmul.f32 1.442695, %v2223_v29  ;;  %v4612_v32 = vpop.eup %3919 }
 0xe52   :  { %v2252_v38 = vsel %vm338_vm2, %v4612_v32, 0.0 }
 0xe53   :  { %3925 = vpow2.f32 %v2238_v31 }
 0xe55   :  { %v4614_v35 = vpop.eup %3921 }
 0xe56   :  { %v2255_v36 = vsel %vm338_vm2, %v4614_v35, 0.0 }
 0xe5c   :  { %2431 = vrot.lane.b32.xlu1 %v4504_v37, %s4871_s0 }
 0xe60   :  { %2543 = vrot.lane.b32.xlu1 %v4604_v21, %s4870_s28 }
 0xe65   :  { %2381 = vrot.lane.b32.xlu0 %v4504_v37, %s4872_s30  ;;  %v4616_v37 = vpop.eup %3923 }
 0xe66   :  { %v4622_v39 = vpop.eup %3925  ;;  %v2258_v41 = vsel %vm338_vm2, %v4616_v37, 0.0 }
 0xe67   :  { %v2261_v40 = vsel %vm338_vm2, %v4622_v39, 0.0 }
 0xe7f   :  { %v2242_v42 = vpop.xlane.xlu1 %2241 }
 0xe80   :  { %3927 = vrcp.f32 %v2242_v42 }
 0xe84   :  { %2256 = vadd.xlane.f32.xlu0 %v2255_v36  ;;  %2253 = vadd.xlane.f32.xlu1 %v2252_v38 }
 0xe88   :  { %2262 = vadd.xlane.f32.xlu0 %v2261_v40  ;;  %2259 = vadd.xlane.f32.xlu1 %v2258_v41  ;;  %v3851_v40 = vld [vmem:[%s4817_s10 + $0x10] sm:$0xff]  }
 0xe8a   :  { %v3928_v45 = vpop.eup %3927 }
 0xe8b   :  { %v2272_v47 = vmul.f32 %v3928_v45, %v4586_v60 }
 0xe99   :  { %2591 = vrot.lane.b32.xlu1 %v4604_v21, %s4872_s30 }
 0xe9e   :  { %2641 = vrot.lane.b32.xlu0 %v4604_v21, %s4871_s0 }
 0xed4   :  { %v2245_v43 = vpop.xlane.xlu0 %2244 }
 0xed5   :  { %3929 = vrcp.f32 %v2245_v43  ;;  %v3852_v43 = vld [vmem:[%s4817_s10 + $0x18] sm:$0xff]   ;;  %s4874_s10 = smov 16  }
 0xed8   :  { %v2248_v0 = vpop.xlane.xlu1 %2247 }
 0xed9   :  { %3931 = vrcp.f32 %v2248_v0 }
 0xedc   :  { %v2251_v44 = vpop.xlane.xlu0 %2250  ;;  %v2432_v51 = vpop.permute.xlu1 %2431 }
 0xedd   :  { %3933 = vrcp.f32 %v2251_v44  ;;  %v2437_v53 = vsel %vm838_vm3, %v2432_v51, 0 }
 0xedf   :  { %v3930_v46 = vpop.eup %3929 }
 0xee0   :  { %v2273_v49 = vmul.f32 %v3930_v46, %v3914_v6  ;;  %v2382_v48 = vpop.permute.xlu0 %2381  ;;  %v2544_v58 = vpop.permute.xlu1 %2543 }
 0xee1   :  { %v2387_v33 = vsel %vm838_vm3, %v2382_v48, 0  ;;  %v2549_v61 = vsel %vm838_vm3, %v2544_v58, 0 }
 0xee2   :  { %v2280_v50 = vpack.c.bf16 %v2273_v49, %v2272_v47 }
 0xee3   :  { %v3932_v52 = vpop.eup %3931 }
 0xee4   :  { %3702 = vmatmul.mubr.msk.bf16.vlgmr.msra.gmra.mrb[68].mxu0 %vm338_vm2, %v2280_v50  ;;  %v2331_v34 = vrot.slane %v2280_v50, 4  ;;  %v2274_v55 = vmul.f32 %v3932_v52, %v4591_v11 }
 0xee5   :  { %3712 = vmatpush3.bf16.msra.mxu0 %v2387_v33  ;;  %3713 = vmatprep.mubr.msk.bf16.mxu0 %vm4012_vm1, %v4011_v16 }
 0xee6   :  { %3708 = vmatmul.mubr.msk.bf16.vlgmr.msra.gmra.mrb[64].mxu1 %vm338_vm2, %v2331_v34  ;;  %3723 = vmatprep.subr.bf16.mxu0 %v4011_v16 }
 0xee7   :  { %v3934_v54 = vpop.eup %3933  ;;  %3718 = vmatpush3.bf16.msra.mxu1 %v2437_v53  ;;  %3719 = vmatprep.mubr.msk.bf16.mxu1 %vm4012_vm1, %v4011_v16 }
 0xee8   :  { %v2275_v56 = vmul.f32 %v3934_v54, %v4595_v17  ;;  %3729 = vmatprep.subr.bf16.mxu1 %v4011_v16 }
 0xeea   :  { %v2281_v57 = vpack.c.bf16 %v2275_v56, %v2274_v55 }
 0xeec   :  { %3714 = vmatmul.mubr.msk.bf16.vlgmr.msra.gmra.mrb[72].mxu0 %vm338_vm2, %v2281_v57  ;;  %v2430_v60 = vrot.slane %v2281_v57, 4 }
 0xeed   :  { %3724 = vmatpush3.bf16.msra.mxu0 %v2499_v59  ;;  %3725 = vmatprep.mubr.msk.bf16.mxu0 %vm4012_vm1, %v4011_v16 }
 0xeee   :  { %3720 = vmatmul.mubr.msk.bf16.vlgmr.msra.gmra.mrb[68].mxu1 %vm338_vm2, %v2430_v60  ;;  %3735 = vmatprep.subr.bf16.mxu0 %v4011_v16 }
 0xeef   :  { %3730 = vmatpush3.bf16.msra.mxu1 %v2549_v61  ;;  %3731 = vmatprep.mubr.msk.bf16.mxu1 %vm4012_vm1, %v4011_v16 }
 0xef0   :  { %3741 = vmatprep.subr.bf16.mxu1 %v4011_v16 }
 0xf11   :  { %v2257_v62 = vpop.xlane.xlu0 %2256  ;;  %v2254_v63 = vpop.xlane.xlu1 %2253 }
 0xf12   :  { %3935 = vrcp.f32 %v2257_v62 }
 0xf13   :  { %3937 = vrcp.f32 %v2254_v63 }
 0xf15   :  { %v2263_v1 = vpop.xlane.xlu0 %2262  ;;  %v2260_v2 = vpop.xlane.xlu1 %2259 }
 0xf16   :  { %3939 = vrcp.f32 %v2263_v1 }
 0xf17   :  { %3941 = vrcp.f32 %v2260_v2 }
 0xf19   :  { %v2592_v8 = vpop.permute.xlu1 %2591  ;;  %v2642_v11 = vpop.permute.xlu0 %2641 }
 0xf1a   :  { %v2597_v17 = vsel %vm838_vm3, %v2592_v8, 0  ;;  %v2647_v19 = vsel %vm838_vm3, %v2642_v11, 0  ;;  %v3325_v11 = vld [vmem:[%s4818_s11 + $0x1] ss:$0 sm:$0xff] }
 0xf1c   :  { %v3936_v3 = vpop.eup %3935 }
 0xf1d   :  { %v3938_v4 = vpop.eup %3937  ;;  %v2277_v5 = vmul.f32 %v3936_v3, %v4614_v35 }
 0xf1e   :  { %v2276_v7 = vmul.f32 %v3938_v4, %v4612_v32 }
 0xf20   :  { %v3940_v6 = vpop.eup %3939  ;;  %v2282_v9 = vpack.c.bf16 %v2277_v5, %v2276_v7 }
 0xf21   :  { %v3942_v10 = vpop.eup %3941  ;;  %v2279_v15 = vmul.f32 %v3940_v6, %v4622_v39 }
 0xf22   :  { %v2278_v12 = vmul.f32 %v3942_v10, %v4616_v37  ;;  %3726 = vmatmul.mubr.msk.bf16.vlgmr.msra.gmra.mrb[76].mxu0 %vm338_vm2, %v2282_v9  ;;  %v2542_v18 = vrot.slane %v2282_v9, 4 }
 0xf23   :  { %3736 = vmatpush3.bf16.msra.mxu0 %v2597_v17  ;;  %3737 = vmatprep.mubr.msk.bf16.mxu0 %vm4012_vm1, %v4011_v16 }
 0xf24   :  { %3732 = vmatmul.mubr.msk.bf16.vlgmr.msra.gmra.mrb[72].mxu1 %vm338_vm2, %v2542_v18  ;;  %3747 = vmatprep.subr.bf16.mxu0 %v4011_v16  ;;  %v2283_v20 = vpack.c.bf16 %v2279_v15, %v2278_v12 }
 0xf25   :  { %3742 = vmatpush3.bf16.msra.mxu1 %v2647_v19  ;;  %3743 = vmatprep.mubr.msk.bf16.mxu1 %vm4012_vm1, %v4011_v16 }
 0xf26   :  { %3755 = vmatprep.subr.bf16.mxu1 %v4011_v16  ;;  %v2640_v21 = vrot.slane %v2283_v20, 4 }
 0xf2a   :  { %3738 = vmatmul.mubr.msk.bf16.vlgmr.msra.gmra.mrb[80].mxu0 %vm338_vm2, %v2283_v20 }
 0xf2b   :  { %3751 = vmatprep.mubr.msk.bf16.mxu0 %vm4012_vm1, %v4011_v16  ;;  %3748 = vmatpush3.bf16.msra.mxu0 %v3851_v40 }
 0xf2c   :  { %3744 = vmatmul.mubr.msk.bf16.vlgmr.msra.gmra.mrb[76].mxu1 %vm338_vm2, %v2640_v21  ;;  %3749 = vmatprep.subr.bf16.mxu0 %v4011_v16 }
 0xf2d   :  { %3759 = vmatprep.mubr.msk.bf16.mxu1 %vm4012_vm1, %v4011_v16 }
 0xf2f   :  { %3750 = vmatpush3.bf16.msra.mxu0 %v3852_v43 }
 0xf30   :  { %3763 = vmatprep.subr.bf16.mxu0 %v4011_v16 }
 0xfb7   :  { %v2324_v22 = vpop.f32.mrb[68].mxu0 }
 0xfb8   :  { %v3703_v23 = vpop.f32.mrb[69].mxu0 }
 0xfb9   :  { %v2327_v24 = vpop.f32.mrb[70].mxu0  ;;  %v2375_v27 = vpop.f32.mrb[64].mxu1 }
 0xfba   :  { %v3704_v25 = vpop.f32.mrb[71].mxu0  ;;  %v3709_v26 = vpop.f32.mrb[65].mxu1 }
 0xfbb   :  { %v2378_v28 = vpop.f32.mrb[66].mxu1 }
 0xfbc   :  { %v3710_v29 = vpop.f32.mrb[67].mxu1 }
 0xfbf   :  { %v2423_v30 = vpop.f32.mrb[72].mxu0 }
 0xfc0   :  { %v3715_v31 = vpop.f32.mrb[73].mxu0 }
 0xfc1   :  { %v2426_v32 = vpop.f32.mrb[74].mxu0  ;;  %v2473_v35 = vpop.f32.mrb[68].mxu1 }
 0xfc2   :  { %v3716_v37 = vpop.f32.mrb[75].mxu0  ;;  %v3721_v36 = vpop.f32.mrb[69].mxu1 }
 0xfc3   :  { %v2476_v38 = vpop.f32.mrb[70].mxu1  ;;  %v3854_v37 = vld [vmem:[%s4821_s14 + $0x18] sm:$0xff]  }
 0xfc4   :  { %v3722_v39 = vpop.f32.mrb[71].mxu1 }
 0xff5   :  { %v2535_v41 = vpop.f32.mrb[76].mxu0 }
 0xff6   :  { %v3727_v42 = vpop.f32.mrb[77].mxu0 }
 0xff7   :  { %v2538_v0 = vpop.f32.mrb[78].mxu0  ;;  %v2585_v44 = vpop.f32.mrb[72].mxu1 }
 0xff8   :  { %v3816_v45 = vpack.i.bf16 %v2585_v44, %v2375_v27  ;;  %v3728_v46 = vpop.f32.mrb[79].mxu0  ;;  %v3733_v47 = vpop.f32.mrb[73].mxu1  ;;  %v3331_v44 = vld [vmem:[%s4819_s12 + $0x1] ss:$0 sm:$0xff] }
 0xff9   :  { %v2588_v49 = vpop.f32.mrb[74].mxu1 }
 0xffa   :  { %3817 = vrot.lane.b32.xlu1 %v3816_v45, %s4873_s4  ;;  %v3734_v48 = vpop.f32.mrb[75].mxu1  ;;  %v3332_v49 = vld [vmem:[%s4820_s13 + $0x1] ss:$0 sm:$0xff] }
 0xffd   :  { %v2633_v50 = vpop.f32.mrb[80].mxu0 }
 0xffe   :  { %v3821_v51 = vpack.i.bf16 %v2633_v50, %v2423_v30  ;;  %v3739_v33 = vpop.f32.mrb[81].mxu0 }
 0xfff   :  { %v2636_v34 = vpop.f32.mrb[82].mxu0  ;;  %v2683_v52 = vpop.f32.mrb[76].mxu1 }
0x1000   :  { %v3826_v53 = vpack.i.bf16 %v2683_v52, %v2473_v35  ;;  %v3745_v54 = vpop.f32.mrb[77].mxu1  ;;  %3822 = vrot.lane.b32.xlu0 %v3821_v51, %s4874_s10  ;;  %v3740_v55 = vpop.f32.mrb[83].mxu0  ;;  %v3855_v34 = vld [vmem:[%s4823_s16 + $0x20] sm:$0xff]   ;;  %v3856_v52 = vld [vmem:[%s4823_s16 + $0x28] sm:$0xff]  }
0x1001   :  { %v2686_v56 = vpop.f32.mrb[78].mxu1  ;;  %v3858_v54 = vld [vmem:[%s4823_s16 + $0x38] sm:$0xff]   ;;  %v3338_v55 = vld [vmem:[%s4822_s15 + $0x1] ss:$0 sm:$0xff] }
0x1002   :  { %3827 = vrot.lane.b32.xlu1 %v3826_v53, %s4875_s1  ;;  %v3746_v57 = vpop.f32.mrb[79].mxu1  ;;  %v3857_v53 = vld [vmem:[%s4823_s16 + $0x30] sm:$0xff]  }
0x106c   :  { %v3818_v58 = vpop.permute.xlu1 %3817 }
0x106d   :  { %v3820_v59 = vunpack.i.h.bf16 %v3818_v58  ;;  %v3819_v60 = vunpack.i.l.bf16 %v3818_v58 }
0x106f   :  { %v2491_v1 = vsel %vm338_vm2, %v2324_v22, %v3819_v60  ;;  %v2701_v2 = vsel %vm338_vm2, %v2535_v41, %v3820_v59 }
0x1072   :  { %v3823_v61 = vpop.permute.xlu0 %3822 }
0x1073   :  { %v3825_v62 = vunpack.i.h.bf16 %v3823_v61  ;;  %v3824_v63 = vunpack.i.l.bf16 %v3823_v61 }
0x1074   :  { %v3828_v3 = vpop.permute.xlu1 %3827 }
0x1075   :  { %v2702_v4 = vsel %vm1044_vm4, %v2701_v2, %v3825_v62  ;;  %v2492_v5 = vsel %vm1044_vm4, %v2491_v1, %v3824_v63  ;;  %v3830_v7 = vunpack.i.h.bf16 %v3828_v3  ;;  %v3829_v8 = vunpack.i.l.bf16 %v3828_v3 }
0x1077   :  { %v2493_v6 = vsel %vm1046_vm5, %v2492_v5, %v3829_v8  ;;  %v2703_v9 = vsel %vm1046_vm5, %v2702_v4, %v3830_v7 }
0x1078   :  { %v2704_v10 = vpack.c.bf16 %v2703_v9, %v2493_v6 }
0x107a   :  { %3752 = vmatmul.mubr.msk.bf16.vlgmr.msra.gmra.mrb[84].mxu0 %vm86_vm0, %v2704_v10 }
0x107b   :  { %3771 = vmatprep.mubr.msk.bf16.mxu0 %vm4012_vm1, %v4011_v16  ;;  %3764 = vmatpush3.bf16.msra.mxu0 %v3855_v34 }
0x107c   :  { %3765 = vmatprep.subr.bf16.mxu0 %v4011_v16 }
0x107f   :  { %3766 = vmatpush3.bf16.msra.mxu0 %v3856_v52 }
0x1080   :  { %3767 = vmatprep.subr.bf16.mxu0 %v4011_v16 }
0x1083   :  { %3768 = vmatpush3.bf16.msra.mxu0 %v3857_v53 }
0x1084   :  { %3769 = vmatprep.subr.bf16.mxu0 %v4011_v16 }
0x1087   :  { %3770 = vmatpush3.bf16.msra.mxu0 %v3858_v54  ;;  %v3360_v54 = vld [vmem:[%s4826_s19 + $0x1] ss:$0 sm:$0xff] }
0x114d   :  { %v2767_v15 = vpop.f32.mrb[84].mxu0 }
0x114e   :  { %v2768_v12 = vadd.f32 %v3325_v11, %v2767_v15  ;;  %v3753_v17 = vpop.f32.mrb[85].mxu0 }
0x114f   :  { %v2770_v18 = vpop.f32.mrb[86].mxu0 }
0x1150   :  { %v2771_v19 = vadd.f32 %v3325_v11, %v2770_v18  ;;  %v3754_v20 = vpop.f32.mrb[87].mxu0  ;;  %v2774_v21 = vadd.f32 %v2768_v12, %v4475_v13 }
0x1152   :  { %v2780_v22 = vsel %vm86_vm0, %v2774_v21, 0.0  ;;  %v2775_v23 = vadd.f32 %v2771_v19, %v4477_v14  ;;  %v3853_v14 = vld [vmem:[%s4821_s14 + $0x10] sm:$0xff]  }
0x1153   :  { %2781 = vadd.xlane.f32.xlu0 %v2780_v22  ;;  %3756 = vmatpush3.bf16.msra.mxu1 %v3853_v14 }
0x1154   :  { %v2783_v24 = vsel %vm86_vm0, %v2775_v23, 0.0  ;;  %3757 = vmatprep.subr.bf16.mxu1 %v4011_v16 }
0x1155   :  { %2784 = vadd.xlane.f32.xlu1 %v2783_v24 }
0x1157   :  { %3758 = vmatpush3.bf16.msra.mxu1 %v3854_v37 }
0x1158   :  { %3775 = vmatprep.subr.bf16.mxu1 %v4011_v16 }
0x11e0   :  { %v2782_v27 = vpop.xlane.xlu0 %2781 }
0x11e1   :  { %v2786_v25 = vmul.f32 0.03125, %v2782_v27 }
0x11e2   :  { %v2785_v26 = vpop.xlane.xlu1 %2784 }
0x11e3   :  { %v2788_v28 = vsub.f32 %v2774_v21, %v2786_v25  ;;  %v2787_v29 = vmul.f32 0.03125, %v2785_v26  ;;  %v3351_v21 = vld [vmem:[%s4824_s17 + $0x1] ss:$0 sm:$0xff] }
0x11e5   :  { %v2789_v30 = vsub.f32 %v2775_v23, %v2787_v29  ;;  %v2790_v31 = vmul.f32 %v2788_v28, %v2788_v28 }
0x11e7   :  { %v2792_v32 = vsel %vm86_vm0, %v2790_v31, 0.0  ;;  %v2791_v35 = vmul.f32 %v2789_v30, %v2789_v30 }
0x11e8   :  { %2793 = vadd.xlane.f32.xlu0 %v2792_v32 }
0x11e9   :  { %v2795_v13 = vsel %vm86_vm0, %v2791_v35, 0.0 }
0x11ec   :  { %2796 = vadd.xlane.f32.xlu0 %v2795_v13 }
0x1275   :  { %v2794_v36 = vpop.xlane.xlu0 %2793 }
0x1276   :  { %v2798_v38 = vmul.f32 0.03125, %v2794_v36 }
0x1278   :  { %v2800_v39 = vadd.f32 1e-12, %v2798_v38 }
0x1279   :  { %v2797_v40 = vpop.xlane.xlu0 %2796 }
0x127a   :  { %3943 = vrsqrt.f32 %v2800_v39  ;;  %v2799_v41 = vmul.f32 0.03125, %v2797_v40 }
0x127c   :  { %v2801_v42 = vadd.f32 1e-12, %v2799_v41 }
0x127e   :  { %3945 = vrsqrt.f32 %v2801_v42  ;;  %v3859_v42 = vld [vmem:[%s4827_s20] sm:$0xff]  }
0x1284   :  { %v3944_v43 = vpop.eup %3943 }
0x1285   :  { %v2804_v0 = vmul.f32 %v3944_v43, %v2788_v28  ;;  %v3860_v43 = vld [vmem:[%s4827_s20 + $0x8] sm:$0xff]  }
0x1287   :  { %v2812_v46 = vmul.f32 %v3331_v44, %v2804_v0 }
0x1288   :  { %v3946_v45 = vpop.eup %3945 }
0x1289   :  { %v2805_v47 = vmul.f32 %v3946_v45, %v2789_v30  ;;  %v2820_v50 = vadd.f32 %v3332_v49, %v2812_v46 }
0x128b   :  { %v2813_v48 = vmul.f32 %v3331_v44, %v2805_v47 }
0x128d   :  { %v2821_v51 = vadd.f32 %v3332_v49, %v2813_v48 }
0x128f   :  { %v2822_v33 = vpack.c.bf16 %v2821_v51, %v2820_v50 }
0x1291   :  { %3760 = vmatmul.mubr.msk.bf16.vlgmr.msra.gmra.mrb[80].mxu1 %vm86_vm0, %v2822_v33  ;;  %v3359_v33 = vld [vmem:[%s4825_s18 + $0x1] ss:$0 sm:$0xff] }
0x1292   :  { %3779 = vmatprep.mubr.msk.bf16.mxu1 %vm4012_vm1, %v4011_v16  ;;  %3776 = vmatpush3.bf16.msra.mxu1 %v3859_v42 }
0x1293   :  { %3777 = vmatprep.subr.bf16.mxu1 %v4011_v16 }
0x1296   :  { %3778 = vmatpush3.bf16.msra.mxu1 %v3860_v43 }
0x1297   :  { %3783 = vmatprep.subr.bf16.mxu1 %v4011_v16 }
0x1364   :  { %v2885_v56 = vpop.f32.mrb[80].mxu1 }
0x1365   :  { %v2886_v57 = vadd.f32 %v3338_v55, %v2885_v56  ;;  %v3761_v58 = vpop.f32.mrb[81].mxu1 }
0x1366   :  { %v2888_v59 = vpop.f32.mrb[82].mxu1 }
0x1367   :  { %v2894_v60 = vmul.f32 0.044715, %v2886_v57  ;;  %v2889_v61 = vadd.f32 %v3338_v55, %v2888_v59  ;;  %v3762_v62 = vpop.f32.mrb[83].mxu1  ;;  %v2892_v15 = vmul.f32 0.5, %v2886_v57 }
0x1368   :  { %v3361_v62 = vld [vmem:[%s4828_s21] ss:$0 sm:$0xff]  ;;  %s4019_s21 = smov [#allocation2]  }
0x1369   :  { %v2896_v63 = vmul.f32 %v2894_v60, %v2886_v57  ;;  %v2895_v1 = vmul.f32 0.044715, %v2889_v61  ;;  %v2893_v12 = vmul.f32 0.5, %v2889_v61  ;;  %v3861_v60 = vld [vmem:[%s4829_s22] sm:$0xff]  }
0x136b   :  { %v2898_v2 = vmul.f32 %v2896_v63, %v2886_v57  ;;  %v2897_v3 = vmul.f32 %v2895_v1, %v2889_v61 }
0x136d   :  { %v2900_v4 = vadd.f32 %v2898_v2, %v2886_v57  ;;  %v2899_v5 = vmul.f32 %v2897_v3, %v2889_v61 }
0x136f   :  { %v2902_v7 = vmul.f32 0.7978846, %v2900_v4  ;;  %v2901_v8 = vadd.f32 %v2899_v5, %v2889_v61  ;;  %v3862_v61 = vld [vmem:[%s4829_s22 + $0x8] sm:$0xff]   ;;  %s3204_s22 = sshll.u32 %s4019_s21, 4  ;;  %s3205_s22 = int_to_ptr.vmem [resolvable:$true] %s3204_s22 }
0x1370   :  { %p3968_p1 = scmp.lt.s32.totalorder %s3205_s22, %s3205_s22 }
0x1371   :  { %3947 = vtanh.f32 %v2902_v7  ;;  %v2903_v6 = vmul.f32 0.7978846, %v2901_v8 }
0x1373   :  { %3949 = vtanh.f32 %v2903_v6 }
0x137b   :  { %v3948_v9 = vpop.eup %3947 }
0x137c   :  { %v2906_v10 = vadd.f32 1.0, %v3948_v9 }
0x137d   :  { %v3950_v11 = vpop.eup %3949 }
0x137e   :  { %v2907_v17 = vadd.f32 1.0, %v3950_v11  ;;  %v2908_v18 = vmul.f32 %v2906_v10, %v2892_v15 }
0x1380   :  { %v2909_v19 = vmul.f32 %v2907_v17, %v2893_v12 }
0x1382   :  { %v2910_v20 = vpack.c.bf16 %v2909_v19, %v2908_v18 }
0x1384   :  { %3772 = vmatmul.mubr.msk.bf16.vlgmr.msra.gmra.mrb[88].mxu0 %vm1498_vm6, %v2910_v20 }
0x1457   :  { %v2989_v22 = vpop.f32.mrb[88].mxu0 }
0x1458   :  { %v2990_v23 = vadd.f32 %v3351_v21, %v2989_v22  ;;  %v3773_v24 = vpop.f32.mrb[89].mxu0 }
0x1459   :  { %v2992_v27 = vpop.f32.mrb[90].mxu0 }
0x145a   :  { %v2993_v25 = vadd.f32 %v3351_v21, %v2992_v27  ;;  %v3774_v26 = vpop.f32.mrb[91].mxu0  ;;  %v2996_v28 = vadd.f32 %v2990_v23, %v2820_v50 }
0x145c   :  { %v3002_v29 = vsel %vm86_vm0, %v2996_v28, 0.0  ;;  %v2997_v30 = vadd.f32 %v2993_v25, %v2821_v51 }
0x145d   :  { %3003 = vadd.xlane.f32.xlu1 %v3002_v29 }
0x145e   :  { %v3005_v31 = vsel %vm86_vm0, %v2997_v30, 0.0 }
0x145f   :  { %3006 = vadd.xlane.f32.xlu0 %v3005_v31 }
0x14ea   :  { %v3004_v32 = vpop.xlane.xlu1 %3003 }
0x14eb   :  { %v3008_v35 = vmul.f32 0.03125, %v3004_v32 }
0x14ec   :  { %v3007_v13 = vpop.xlane.xlu0 %3006 }
0x14ed   :  { %v3010_v14 = vsub.f32 %v2996_v28, %v3008_v35  ;;  %v3009_v37 = vmul.f32 0.03125, %v3007_v13 }
0x14ef   :  { %v3011_v36 = vsub.f32 %v2997_v30, %v3009_v37  ;;  %v3012_v38 = vmul.f32 %v3010_v14, %v3010_v14 }
0x14f1   :  { %v3014_v39 = vsel %vm86_vm0, %v3012_v38, 0.0  ;;  %v3013_v40 = vmul.f32 %v3011_v36, %v3011_v36 }
0x14f2   :  { %3015 = vadd.xlane.f32.xlu1 %v3014_v39 }
0x14f3   :  { %v3017_v41 = vsel %vm86_vm0, %v3013_v40, 0.0 }
0x14f4   :  { %3018 = vadd.xlane.f32.xlu0 %v3017_v41 }
0x157f   :  { %v3016_v0 = vpop.xlane.xlu1 %3015 }
0x1580   :  { %v3020_v44 = vmul.f32 0.03125, %v3016_v0 }
0x1581   :  { %v3019_v45 = vpop.xlane.xlu0 %3018 }
0x1582   :  { %v3022_v46 = vadd.f32 1e-12, %v3020_v44  ;;  %v3021_v47 = vmul.f32 0.03125, %v3019_v45 }
0x1584   :  { %3951 = vrsqrt.f32 %v3022_v46  ;;  %v3023_v49 = vadd.f32 1e-12, %v3021_v47 }
0x1586   :  { %3953 = vrsqrt.f32 %v3023_v49 }
0x158e   :  { %v3952_v48 = vpop.eup %3951 }
0x158f   :  { %v3026_v50 = vmul.f32 %v3952_v48, %v3010_v14 }
0x1590   :  { %v3954_v51 = vpop.eup %3953 }
0x1591   :  { %v3027_v34 = vmul.f32 %v3954_v51, %v3011_v36  ;;  %v3034_v52 = vmul.f32 %v3359_v33, %v3026_v50 }
0x1593   :  { %v3035_v53 = vmul.f32 %v3359_v33, %v3027_v34  ;;  %v3042_v56 = vadd.f32 %v3360_v54, %v3034_v52 }
0x1595   :  { %v3043_v55 = vadd.f32 %v3360_v54, %v3035_v53 }
0x1597   :  { %v3045_v57 = vrot.slane %v3043_v55, 7 }
0x1599   :  { %v3048_v58 = vsel %vm3047_vm7, %v3042_v56, %v3045_v57 }
0x159a   :  { %v3049_v59 = vpack.c.bf16 %v3048_v58, %v3048_v58 }
0x159c   :  { %3780 = vmatmul.mubr.msk.bf16.vlgmr.msra.gmra.mrb[84].mxu1 %vm86_vm0, %v3049_v59 }
0x159d   :  { %3787 = vmatprep.mubr.msk.bf16.mxu1 %vm4012_vm1, %v4011_v16  ;;  %3784 = vmatpush3.bf16.msra.mxu1 %v3861_v60 }
0x159e   :  { %3785 = vmatprep.subr.bf16.mxu1 %v4011_v16  ;;  %v3365_v16 = vld [vmem:[%s4830_s23] ss:$0 sm:$0xff]  ;;  %s3963_s23 = scalar_lea.vmem %s3205_s22, 32 }
0x159f   :  { %p3964_p0 = scmp.ne.s32.totalorder %s3205_s22, %s3963_s23  ;;  %p3969_p2 = scmp.lt.s32.totalorder %s3963_s23, %s3963_s23 }
0x15a1   :  { %3786 = vmatpush3.bf16.msra.mxu1 %v3862_v61  ;;  %p3970_p3 = por %p3969_p2, %p3968_p1 }
0x15a3   :  { %p3971_p4 = pnand %p3970_p3, %p3964_p0 }
0x166f   :  { %v3110_v63 = vpop.f32.mrb[84].mxu1 }
0x1670   :  { %v3111_v1 = vadd.f32 %v3361_v62, %v3110_v63  ;;  %v3781_v2 = vpop.f32.mrb[85].mxu1 }
0x1671   :  { %v3113_v3 = vpop.f32.mrb[86].mxu1 }
0x1672   :  { %3955 = vtanh.f32 %v3111_v1  ;;  %v3782_v4 = vpop.f32.mrb[87].mxu1 }
0x167c   :  { %v3956_v5 = vpop.eup %3955 }
0x167d   :  { %v3117_v7 = vpack.c.bf16 %v3956_v5, %v3956_v5 }
0x167f   :  { %3788 = vmatmul.mubr.msk.bf16.vlgmr.msra.gmra.mrb[88].mxu1 %vm86_vm0, %v3117_v7 }
0x1752   :  { %v3178_v8 = vpop.f32.mrb[88].mxu1 }
0x1753   :  { %v3179_v6 = vadd.f32 %v3365_v16, %v3178_v8  ;;  %v3789_v9 = vpop.f32.mrb[89].mxu1 }
0x1754   :  { %v3181_v10 = vpop.f32.mrb[90].mxu1 }
0x1755   :  { %v3790_v11 = vpop.f32.mrb[91].mxu1  ;;  %v3185_v15 = vsel %vm3184_vm8, %v3179_v6, -inf  ;;  %3196 = vst.msk [vmem:[#allocation2] sm:$0x3] %vm3184_vm8, %v3179_v6 }
0x1756   :  { %3186 = vmax.xlane.f32.xlu0 %v3185_v15 }
0x17e3   :  { %v3187_v12 = vpop.xlane.xlu0 %3186 }
0x17e4   :  { %v3188_v17 = vsub.f32 %v3179_v6, %v3187_v12 }
0x17e6   :  { %v3189_v18 = vmul.f32 1.442695, %v3188_v17 }
0x17e8   :  { %3957 = vpow2.f32 %v3189_v18 }
0x17f2   :  { %v3958_v19 = vpop.eup %3957 }
0x17f3   :  { %v3191_v20 = vsel %vm3184_vm8, %v3958_v19, 0.0 }
0x17f4   :  { %3192 = vadd.xlane.f32.xlu1 %v3191_v20 }
0x17f5   :  { %3974 = shalt.err (!%p3971_p4)
}
0x17f6   :  { %s3975_s13 = scalar_lea.hbm %s4831_s24, 32 }
0x17f7   :  { %p3976_p5 = scmp.ne.s32.totalorder %s4831_s24, %s3975_s13  ;;  %p3979_p6 = scmp.lt.u32.totalorder %s3975_s13, %s4831_s24 }
0x17f9   :  { %p3981_p7 = pnand %p3979_p6, %p3976_p5 }
0x17fb   :  { %3984 = shalt.err (!%p3981_p7)
}
0x17fc   :  { %3207 = dma.vmem_to_hbm [thread:$0]  %s3205_s22, 32, %s4831_s24, [#allocation3]  }
0x17fd   :  { %s4020_s16 = smov [#allocation4]  }
0x17fe   :  { %s3214_s17 = sshll.u32 %s4020_s16, 4  ;;  %s3215_s17 = int_to_ptr.vmem [resolvable:$true] %s3214_s17 }
0x17ff   :  { %s3985_s29 = scalar_lea.vmem %s3215_s17, 32  ;;  %p3990_p9 = scmp.lt.s32.totalorder %s3215_s17, %s3215_s17 }
0x1800   :  { %p3986_p8 = scmp.ne.s32.totalorder %s3215_s17, %s3985_s29  ;;  %p3991_p10 = scmp.lt.s32.totalorder %s3985_s29, %s3985_s29 }
0x1802   :  { %p3992_p11 = por %p3991_p10, %p3990_p9 }
0x1804   :  { %p3993_p12 = pnand %p3992_p11, %p3986_p8 }
0x1881   :  { %v3193_v21 = vpop.xlane.xlu1 %3192 }
0x1882   :  { %3959 = vrcp.f32 %v3193_v21 }
0x188c   :  { %v3960_v22 = vpop.eup %3959 }
0x188d   :  { %v3195_v23 = vmul.f32 %v3960_v22, %v3958_v19 }
0x188f   :  { %3197 = vst.msk [vmem:[#allocation4] sm:$0x3] %vm3184_vm8, %v3195_v23 }
0x1890   :  { %3996 = shalt.err (!%p3993_p12)
}
0x1891   :  { %s3997_s24 = scalar_lea.hbm %s4832_s25, 32 }
0x1892   :  { %p3998_p13 = scmp.ne.s32.totalorder %s4832_s25, %s3997_s24  ;;  %p4001_p0 = scmp.lt.u32.totalorder %s3997_s24, %s4832_s25 }
0x1894   :  { %p4003_p1 = pnand %p4001_p0, %p3998_p13 }
0x1896   :  { %4006 = shalt.err (!%p4003_p1)
}
0x1897   :  { %3217 = dma.vmem_to_hbm [thread:$0]  %s3215_s17, 32, %s4832_s25, [#allocation5]  }
0x1898   :  { %4007 = dma.done.wait [#allocation3], 32  }
0x1899   :  { %4008 = vsyncadd [#allocation3], 4294967264 }
0x189a   :  { %4009 = dma.done.wait [#allocation5], 32  }
0x189b   :  { %4010 = vsyncadd [#allocation5], 4294967264 }
0x189c   :  { %3224 = vsyncpa [#allocation3], 1 }
0x189d   :  { %3225 = vsyncpa [#allocation5], 1 }

</bundles_post_ra>
